<compile_context>
chip_gen: v6e
topology: v6e:2x2x1
jax: 0.10.0
libtpu: 0.0.40
codegen_flags: <defaults>
</compile_context>

<pallas_src>
import functools

import jax
import jax.numpy as jnp
from jax import lax
from jax.experimental import pallas as pl
from jax.experimental.pallas import tpu as pltpu

_EPS = 1e-5
_LANE = 128   # Cout padded to a multiple of this -> lane-dense stores
              # (256 could help on v6e/v7x MXU once compute-bound; memory-bound here)


# ----------------------------- Pallas kernel ------------------------------- #

def _make_fused_kernel(stride, ho, wo, cin, coutp):
    """Fused conv1+BN1+ReLU -> conv2+BN2 -> +shortcut(1x1 conv+BN) -> ReLU."""
    m2 = ho * wo

    def _flat(win, c):
        # Collapse (ho, wo, c) -> (ho*wo, c).  Do the collapse in f32 (8-row
        # sublane tiles) so it is layout-free for any wo % 8 == 0, then hand
        # the MXU a bf16 operand.
        return win.astype(jnp.float32).reshape(m2, c).astype(jnp.bfloat16)

    def kernel(xph_ref, w1_ref, s1_ref, b1_ref, w2_ref, s2_ref, b2_ref,
               wsc_ref, ssc_ref, bsc_ref, out_ref, out1_ref):
        # ---- conv1 (3x3, stride) + BN1 + ReLU : 9 accumulated MXU matmuls ----
        acc = None
        for kh in range(3):
            for kw in range(3):
                ph = (kh % stride) * stride + (kw % stride)
                r0, c0 = kh // stride, kw // stride
                tap = _flat(xph_ref[ph, r0:r0 + ho, c0:c0 + wo, :], cin)
                d = jnp.dot(tap, w1_ref[kh * 3 + kw],
                            preferred_element_type=jnp.float32)
                acc = d if acc is None else acc + d
        y1 = jnp.maximum(acc * s1_ref[...] + b1_ref[...], 0.0)

        # Intermediate activation stays in VMEM, spatially padded by 1 so the
        # conv2 halo is plain zero.  Zero every step (the grid axis is
        # "parallel": a step-0-only init would miss the second core on v7x).
        out1_ref[...] = jnp.zeros_like(out1_ref)
        out1_ref[1:ho + 1, 1:wo + 1, :] = y1.reshape(ho, wo, coutp)

        # ---- conv2 (3x3, stride 1) + BN2 ----
        acc = None
        for kh in range(3):
            for kw in range(3):
                tap = _flat(out1_ref[kh:kh + ho, kw:kw + wo, :], coutp)
                d = jnp.dot(tap, w2_ref[kh * 3 + kw],
                            preferred_element_type=jnp.float32)
                acc = d if acc is None else acc + d
        y2 = acc * s2_ref[...] + b2_ref[...]

        # ---- shortcut: 1x1 conv + BN (identity handled via an eye weight),
        #      reading the center tap of the same phase-split input ----
        phc = (1 % stride) * stride + (1 % stride)
        rc = 1 // stride
        xc = _flat(xph_ref[phc, rc:rc + ho, rc:rc + wo, :], cin)
        sc = jnp.dot(xc, wsc_ref[...], preferred_element_type=jnp.float32)
        sc = sc * ssc_ref[...] + bsc_ref[...]

        out_ref[0] = (jnp.maximum(y2 + sc, 0.0)
                      .reshape(ho, wo, coutp).astype(out_ref.dtype))

    return kernel


# ------------------------------- host glue --------------------------------- #

def _round_up(x, m):
    return (x + m - 1) // m * m


def _vmem_limit_bytes():
    # Per-generation VMEM budget: ~100 MiB on v5e/v6e (128 MiB physical),
    # ~44 MiB on v7x (64 MiB physical per TensorCore).
    try:
        cap = int(pltpu.get_tpu_info().vmem_capacity_bytes)
    except Exception:
        cap = 64 * 1024 * 1024
    return max(32 * 1024 * 1024,
               min(cap - 20 * 1024 * 1024, 100 * 1024 * 1024))


def _fold_bn(gamma, beta, mean, var, cout_p):
    scale = gamma / jnp.sqrt(var + _EPS)
    shift = beta - mean * scale
    pad = cout_p - scale.shape[0]
    scale = jnp.pad(scale, (0, pad)).reshape(1, cout_p).astype(jnp.float32)
    shift = jnp.pad(shift, (0, pad)).reshape(1, cout_p).astype(jnp.float32)
    return scale, shift


def residual_block_forward(x_nchw, params, stride=1):
    n, cin, h, w = x_nchw.shape
    cout = params["w1"].shape[-1]
    s = int(stride)
    ho = (h - 1) // s + 1
    wo = (w - 1) // s + 1
    coutp = _round_up(cout, _LANE)
    cpad = coutp - cout
    has_proj = (s != 1) or (cin != cout)
    nph = s * s
    hph = 2 // s + ho
    wph = 2 // s + wo

    # NHWC + bf16 *before* any padding so no f32-inflated buffer is
    # materialised; spatial zero-pad of 1 for the 3x3 convs.
    x = jnp.transpose(x_nchw, (0, 2, 3, 1)).astype(jnp.bfloat16)
    xp = jnp.pad(x, ((0, 0), (1, 1), (1, 1), (0, 0)))

    # Stride-phase decomposition: tap (kh, kw) of the strided 3x3 conv becomes
    # a *contiguous* (ho, wo) slice of phase (kh % s, kw % s) at offset
    # (kh // s, kw // s).  For stride 1 this is just the padded input.
    phases = []
    for p in range(s):
        for q in range(s):
            ph = xp[:, p::s, q::s, :][:, :hph, :wph, :]
            pad_h, pad_w = hph - ph.shape[1], wph - ph.shape[2]
            if pad_h or pad_w:
                ph = jnp.pad(ph, ((0, 0), (0, pad_h), (0, pad_w), (0, 0)))
            phases.append(ph)
    xph = jnp.stack(phases, axis=1).reshape(n * nph, hph, wph, cin)

    # Weights: HWIO -> (9, Cin, CoutP); conv2 also gets CoutP (zero) input rows
    # so it consumes the channel-padded intermediate directly.
    w1 = jnp.pad(params["w1"].reshape(9, cin, cout),
                 ((0, 0), (0, 0), (0, cpad))).astype(jnp.bfloat16)
    w2 = jnp.pad(params["w2"].reshape(9, cout, cout),
                 ((0, 0), (0, cpad), (0, cpad))).astype(jnp.bfloat16)
    s1, b1 = _fold_bn(params["bn1_gamma"], params["bn1_beta"],
                      params["bn1_mean"], params["bn1_var"], coutp)
    s2, b2 = _fold_bn(params["bn2_gamma"], params["bn2_beta"],
                      params["bn2_mean"], params["bn2_var"], coutp)
    if has_proj:
        wsc = jnp.pad(params["wsc"].reshape(cin, cout),
                      ((0, 0), (0, cpad))).astype(jnp.bfloat16)
        ssc, bsc = _fold_bn(params["bnsc_gamma"], params["bnsc_beta"],
                            params["bnsc_mean"], params["bnsc_var"], coutp)
    else:
        wsc = jnp.pad(jnp.eye(cin, dtype=jnp.float32),
                      ((0, 0), (0, cpad))).astype(jnp.bfloat16)
        ssc = jnp.pad(jnp.ones((cout,), jnp.float32),
                      (0, cpad)).reshape(1, coutp)
        bsc = jnp.zeros((1, coutp), jnp.float32)

    kernel = _make_fused_kernel(s, ho, wo, cin, coutp)
    const2 = lambda i: (0, 0)
    const3 = lambda i: (0, 0, 0)

    out = pl.pallas_call(
        kernel,
        out_shape=jax.ShapeDtypeStruct((n, ho, wo, coutp), jnp.bfloat16),
        grid=(n,),
        in_specs=[
            pl.BlockSpec((nph, hph, wph, cin), lambda i: (i, 0, 0, 0)),
            pl.BlockSpec((9, cin, coutp), const3),
            pl.BlockSpec((1, coutp), const2),
            pl.BlockSpec((1, coutp), const2),
            pl.BlockSpec((9, coutp, coutp), const3),
            pl.BlockSpec((1, coutp), const2),
            pl.BlockSpec((1, coutp), const2),
            pl.BlockSpec((cin, coutp), const2),
            pl.BlockSpec((1, coutp), const2),
            pl.BlockSpec((1, coutp), const2),
        ],
        out_specs=pl.BlockSpec((1, ho, wo, coutp), lambda i: (i, 0, 0, 0)),
        scratch_shapes=[pltpu.VMEM((ho + 2, wo + 2, coutp), jnp.float32)],
        compiler_params=pltpu.CompilerParams(
            dimension_semantics=("parallel",),
            vmem_limit_bytes=_vmem_limit_bytes()),
    )(xph, w1, s1, b1, w2, s2, b2, wsc, ssc, bsc)

    out = out[..., :cout].astype(jnp.float32)
    return jnp.transpose(out, (0, 3, 1, 2))                           # NCHW


# ------------------------ params / pure-JAX reference ----------------------- #

def init_params(key, cin, cout):
    ks = jax.random.split(key, 6)
    p = {}
    p["w1"] = jax.random.normal(ks[0], (3, 3, cin, cout), jnp.float32) / (9 * cin) ** 0.5
    p["w2"] = jax.random.normal(ks[1], (3, 3, cout, cout), jnp.float32) / (9 * cout) ** 0.5
    p["wsc"] = jax.random.normal(ks[2], (1, 1, cin, cout), jnp.float32) / cin ** 0.5

    def bn(k):
        k1, k2, k3, k4 = jax.random.split(k, 4)
        return (1.0 + 0.1 * jax.random.normal(k1, (cout,), jnp.float32),
                0.1 * jax.random.normal(k2, (cout,), jnp.float32),
                0.1 * jax.random.normal(k3, (cout,), jnp.float32),
                1.0 + 0.2 * jax.random.uniform(k4, (cout,), jnp.float32))

    p["bn1_gamma"], p["bn1_beta"], p["bn1_mean"], p["bn1_var"] = bn(ks[3])
    p["bn2_gamma"], p["bn2_beta"], p["bn2_mean"], p["bn2_var"] = bn(ks[4])
    p["bnsc_gamma"], p["bnsc_beta"], p["bnsc_mean"], p["bnsc_var"] = bn(ks[5])
    return p


def _ref_forward(x_nchw, params, stride=1):
    def conv(x, w_hwio, s, pad):
        return lax.conv_general_dilated(
            x, jnp.transpose(w_hwio, (3, 2, 0, 1)), (s, s),
            [(pad, pad), (pad, pad)],
            dimension_numbers=("NCHW", "OIHW", "NCHW"))

    def bn(x, g, b, mu, var):
        sc = g / jnp.sqrt(var + _EPS)
        sh = b - mu * sc
        return x * sc[None, :, None, None] + sh[None, :, None, None]

    _, cin, _, _ = x_nchw.shape
    cout = params["w1"].shape[-1]
    out = jnp.maximum(bn(conv(x_nchw, params["w1"], stride, 1),
                         params["bn1_gamma"], params["bn1_beta"],
                         params["bn1_mean"], params["bn1_var"]), 0.0)
    out = bn(conv(out, params["w2"], 1, 1),
             params["bn2_gamma"], params["bn2_beta"],
             params["bn2_mean"], params["bn2_var"])
    if stride != 1 or cin != cout:
        sc = bn(conv(x_nchw, params["wsc"], stride, 0),
                params["bnsc_gamma"], params["bnsc_beta"],
                params["bnsc_mean"], params["bnsc_var"])
    else:
        sc = x_nchw
    return jnp.maximum(out + sc, 0.0)


def _check(key, n, cin, cout, h, w, stride):
    k_x, k_p = jax.random.split(key)
    x = jax.random.normal(k_x, (n, cin, h, w), jnp.float32)
    params = init_params(k_p, cin, cout)

    fwd = jax.jit(functools.partial(residual_block_forward, stride=stride))
    out = jax.block_until_ready(fwd(x, params))
    ref = _ref_forward(x, params, stride)

    ho = (h - 1) // stride + 1
    wo = (w - 1) // stride + 1
    assert out.shape == (n, cout, ho, wo), out.shape
    err = float(jnp.max(jnp.abs(out - ref)))
    scale = float(jnp.max(jnp.abs(ref))) + 1.0
    # bf16 matmul operands / bf16 output -> ~1e-2 relative accuracy regime.
    assert err <= 3e-2 * scale, f"max abs err {err} (scale {scale})"


if __name__ == "__main__":
    key = jax.random.PRNGKey(0)
    k0, k1, k2 = jax.random.split(key, 3)

    _check(k0, n=2, cin=4, cout=8, h=16, w=16, stride=1)   # projection shortcut
    _check(k1, n=2, cin=8, cout=8, h=16, w=16, stride=1)   # identity shortcut
    _check(k2, n=2, cin=4, cout=8, h=16, w=16, stride=2)   # strided + projection

    print("KERNEL_OK")
</pallas_src>

<mosaic_0001>
module attributes {stable_mosaic.version = 11 : i64} {
  func.func @kernel(%arg0: i32, %arg1: memref<1x18x18x4xbf16, #tpu.memory_space<vmem>>, %arg2: memref<9x4x128xbf16, #tpu.memory_space<vmem>>, %arg3: memref<1x128xf32, #tpu.memory_space<vmem>>, %arg4: memref<1x128xf32, #tpu.memory_space<vmem>>, %arg5: memref<9x128x128xbf16, #tpu.memory_space<vmem>>, %arg6: memref<1x128xf32, #tpu.memory_space<vmem>>, %arg7: memref<1x128xf32, #tpu.memory_space<vmem>>, %arg8: memref<4x128xbf16, #tpu.memory_space<vmem>>, %arg9: memref<1x128xf32, #tpu.memory_space<vmem>>, %arg10: memref<1x128xf32, #tpu.memory_space<vmem>>, %arg11: memref<1x16x16x128xbf16, #tpu.memory_space<vmem>>, %arg12: memref<18x18x128xf32, #tpu.memory_space<vmem>>) attributes {dimension_semantics = [#tpu.dimension_semantics<parallel>], iteration_bounds = array<i64: 2>, scalar_prefetch = 0 : i64, scratch_operands = 1 : i64, tpu.core_type = #tpu.core_type<tc>, window_params = [{transform_indices = @transform_0, window_bounds = array<i64: 1, 18, 18, 4>}, {pipeline_mode = #tpu.pipeline_mode<synchronous>, transform_indices = @transform_1, window_bounds = array<i64: 9, 4, 128>}, {pipeline_mode = #tpu.pipeline_mode<synchronous>, transform_indices = @transform_2, window_bounds = array<i64: 1, 128>}, {pipeline_mode = #tpu.pipeline_mode<synchronous>, transform_indices = @transform_3, window_bounds = array<i64: 1, 128>}, {pipeline_mode = #tpu.pipeline_mode<synchronous>, transform_indices = @transform_4, window_bounds = array<i64: 9, 128, 128>}, {pipeline_mode = #tpu.pipeline_mode<synchronous>, transform_indices = @transform_5, window_bounds = array<i64: 1, 128>}, {pipeline_mode = #tpu.pipeline_mode<synchronous>, transform_indices = @transform_6, window_bounds = array<i64: 1, 128>}, {pipeline_mode = #tpu.pipeline_mode<synchronous>, transform_indices = @transform_7, window_bounds = array<i64: 4, 128>}, {pipeline_mode = #tpu.pipeline_mode<synchronous>, transform_indices = @transform_8, window_bounds = array<i64: 1, 128>}, {pipeline_mode = #tpu.pipeline_mode<synchronous>, transform_indices = @transform_9, window_bounds = array<i64: 1, 128>}, {transform_indices = @transform_10, window_bounds = array<i64: 1, 16, 16, 128>}]} {
    %c0 = arith.constant 0 : index
    %c0_0 = arith.constant 0 : index
    %c0_1 = arith.constant 0 : index
    %c0_2 = arith.constant 0 : index
    %0 = vector.load %arg1[%c0, %c0_0, %c0_1, %c0_2] : memref<1x18x18x4xbf16, #tpu.memory_space<vmem>>, vector<1x16x16x4xbf16>
    %1 = vector.shape_cast %0 : vector<1x16x16x4xbf16> to vector<16x16x4xbf16>
    %2 = arith.extf %1 : vector<16x16x4xbf16> to vector<16x16x4xf32>
    %3 = vector.shape_cast %2 : vector<16x16x4xf32> to vector<256x4xf32>
    %4 = arith.truncf %3 : vector<256x4xf32> to vector<256x4xbf16>
    %c0_3 = arith.constant 0 : index
    %c0_4 = arith.constant 0 : index
    %c0_5 = arith.constant 0 : index
    %5 = vector.load %arg2[%c0_3, %c0_4, %c0_5] : memref<9x4x128xbf16, #tpu.memory_space<vmem>>, vector<1x4x128xbf16>
    %6 = vector.shape_cast %5 : vector<1x4x128xbf16> to vector<4x128xbf16>
    %cst = arith.constant dense<0.000000e+00> : vector<256x128xf32>
    %7 = tpu.matmul %4, %6, %cst {dimension_numbers = #tpu.dot_dimension_numbers<[1], [0], [0], [1], [0, 0, 1, 1], [], []>} : vector<256x4xbf16>, vector<4x128xbf16>, vector<256x128xf32> -> vector<256x128xf32>
    %c0_6 = arith.constant 0 : index
    %c0_7 = arith.constant 0 : index
    %c1 = arith.constant 1 : index
    %c0_8 = arith.constant 0 : index
    %8 = vector.load %arg1[%c0_6, %c0_7, %c1, %c0_8] : memref<1x18x18x4xbf16, #tpu.memory_space<vmem>>, vector<1x16x16x4xbf16>
    %9 = vector.shape_cast %8 : vector<1x16x16x4xbf16> to vector<16x16x4xbf16>
    %10 = arith.extf %9 : vector<16x16x4xbf16> to vector<16x16x4xf32>
    %11 = vector.shape_cast %10 : vector<16x16x4xf32> to vector<256x4xf32>
    %12 = arith.truncf %11 : vector<256x4xf32> to vector<256x4xbf16>
    %c1_9 = arith.constant 1 : index
    %c0_10 = arith.constant 0 : index
    %c0_11 = arith.constant 0 : index
    %13 = vector.load %arg2[%c1_9, %c0_10, %c0_11] : memref<9x4x128xbf16, #tpu.memory_space<vmem>>, vector<1x4x128xbf16>
    %14 = vector.shape_cast %13 : vector<1x4x128xbf16> to vector<4x128xbf16>
    %cst_12 = arith.constant dense<0.000000e+00> : vector<256x128xf32>
    %15 = tpu.matmul %12, %14, %cst_12 {dimension_numbers = #tpu.dot_dimension_numbers<[1], [0], [0], [1], [0, 0, 1, 1], [], []>} : vector<256x4xbf16>, vector<4x128xbf16>, vector<256x128xf32> -> vector<256x128xf32>
    %16 = arith.addf %7, %15 : vector<256x128xf32>
    %c0_13 = arith.constant 0 : index
    %c0_14 = arith.constant 0 : index
    %c2 = arith.constant 2 : index
    %c0_15 = arith.constant 0 : index
    %17 = vector.load %arg1[%c0_13, %c0_14, %c2, %c0_15] : memref<1x18x18x4xbf16, #tpu.memory_space<vmem>>, vector<1x16x16x4xbf16>
    %18 = vector.shape_cast %17 : vector<1x16x16x4xbf16> to vector<16x16x4xbf16>
    %19 = arith.extf %18 : vector<16x16x4xbf16> to vector<16x16x4xf32>
    %20 = vector.shape_cast %19 : vector<16x16x4xf32> to vector<256x4xf32>
    %21 = arith.truncf %20 : vector<256x4xf32> to vector<256x4xbf16>
    %c2_16 = arith.constant 2 : index
    %c0_17 = arith.constant 0 : index
    %c0_18 = arith.constant 0 : index
    %22 = vector.load %arg2[%c2_16, %c0_17, %c0_18] : memref<9x4x128xbf16, #tpu.memory_space<vmem>>, vector<1x4x128xbf16>
    %23 = vector.shape_cast %22 : vector<1x4x128xbf16> to vector<4x128xbf16>
    %cst_19 = arith.constant dense<0.000000e+00> : vector<256x128xf32>
    %24 = tpu.matmul %21, %23, %cst_19 {dimension_numbers = #tpu.dot_dimension_numbers<[1], [0], [0], [1], [0, 0, 1, 1], [], []>} : vector<256x4xbf16>, vector<4x128xbf16>, vector<256x128xf32> -> vector<256x128xf32>
    %25 = arith.addf %16, %24 : vector<256x128xf32>
    %c0_20 = arith.constant 0 : index
    %c1_21 = arith.constant 1 : index
    %c0_22 = arith.constant 0 : index
    %c0_23 = arith.constant 0 : index
    %26 = vector.load %arg1[%c0_20, %c1_21, %c0_22, %c0_23] : memref<1x18x18x4xbf16, #tpu.memory_space<vmem>>, vector<1x16x16x4xbf16>
    %27 = vector.shape_cast %26 : vector<1x16x16x4xbf16> to vector<16x16x4xbf16>
    %28 = arith.extf %27 : vector<16x16x4xbf16> to vector<16x16x4xf32>
    %29 = vector.shape_cast %28 : vector<16x16x4xf32> to vector<256x4xf32>
    %30 = arith.truncf %29 : vector<256x4xf32> to vector<256x4xbf16>
    %c3 = arith.constant 3 : index
    %c0_24 = arith.constant 0 : index
    %c0_25 = arith.constant 0 : index
    %31 = vector.load %arg2[%c3, %c0_24, %c0_25] : memref<9x4x128xbf16, #tpu.memory_space<vmem>>, vector<1x4x128xbf16>
    %32 = vector.shape_cast %31 : vector<1x4x128xbf16> to vector<4x128xbf16>
    %cst_26 = arith.constant dense<0.000000e+00> : vector<256x128xf32>
    %33 = tpu.matmul %30, %32, %cst_26 {dimension_numbers = #tpu.dot_dimension_numbers<[1], [0], [0], [1], [0, 0, 1, 1], [], []>} : vector<256x4xbf16>, vector<4x128xbf16>, vector<256x128xf32> -> vector<256x128xf32>
    %34 = arith.addf %25, %33 : vector<256x128xf32>
    %c0_27 = arith.constant 0 : index
    %c1_28 = arith.constant 1 : index
    %c1_29 = arith.constant 1 : index
    %c0_30 = arith.constant 0 : index
    %35 = vector.load %arg1[%c0_27, %c1_28, %c1_29, %c0_30] : memref<1x18x18x4xbf16, #tpu.memory_space<vmem>>, vector<1x16x16x4xbf16>
    %36 = vector.shape_cast %35 : vector<1x16x16x4xbf16> to vector<16x16x4xbf16>
    %37 = arith.extf %36 : vector<16x16x4xbf16> to vector<16x16x4xf32>
    %38 = vector.shape_cast %37 : vector<16x16x4xf32> to vector<256x4xf32>
    %39 = arith.truncf %38 : vector<256x4xf32> to vector<256x4xbf16>
    %c4 = arith.constant 4 : index
    %c0_31 = arith.constant 0 : index
    %c0_32 = arith.constant 0 : index
    %40 = vector.load %arg2[%c4, %c0_31, %c0_32] : memref<9x4x128xbf16, #tpu.memory_space<vmem>>, vector<1x4x128xbf16>
    %41 = vector.shape_cast %40 : vector<1x4x128xbf16> to vector<4x128xbf16>
    %cst_33 = arith.constant dense<0.000000e+00> : vector<256x128xf32>
    %42 = tpu.matmul %39, %41, %cst_33 {dimension_numbers = #tpu.dot_dimension_numbers<[1], [0], [0], [1], [0, 0, 1, 1], [], []>} : vector<256x4xbf16>, vector<4x128xbf16>, vector<256x128xf32> -> vector<256x128xf32>
    %43 = arith.addf %34, %42 : vector<256x128xf32>
    %c0_34 = arith.constant 0 : index
    %c1_35 = arith.constant 1 : index
    %c2_36 = arith.constant 2 : index
    %c0_37 = arith.constant 0 : index
    %44 = vector.load %arg1[%c0_34, %c1_35, %c2_36, %c0_37] : memref<1x18x18x4xbf16, #tpu.memory_space<vmem>>, vector<1x16x16x4xbf16>
    %45 = vector.shape_cast %44 : vector<1x16x16x4xbf16> to vector<16x16x4xbf16>
    %46 = arith.extf %45 : vector<16x16x4xbf16> to vector<16x16x4xf32>
    %47 = vector.shape_cast %46 : vector<16x16x4xf32> to vector<256x4xf32>
    %48 = arith.truncf %47 : vector<256x4xf32> to vector<256x4xbf16>
    %c5 = arith.constant 5 : index
    %c0_38 = arith.constant 0 : index
    %c0_39 = arith.constant 0 : index
    %49 = vector.load %arg2[%c5, %c0_38, %c0_39] : memref<9x4x128xbf16, #tpu.memory_space<vmem>>, vector<1x4x128xbf16>
    %50 = vector.shape_cast %49 : vector<1x4x128xbf16> to vector<4x128xbf16>
    %cst_40 = arith.constant dense<0.000000e+00> : vector<256x128xf32>
    %51 = tpu.matmul %48, %50, %cst_40 {dimension_numbers = #tpu.dot_dimension_numbers<[1], [0], [0], [1], [0, 0, 1, 1], [], []>} : vector<256x4xbf16>, vector<4x128xbf16>, vector<256x128xf32> -> vector<256x128xf32>
    %52 = arith.addf %43, %51 : vector<256x128xf32>
    %c0_41 = arith.constant 0 : index
    %c2_42 = arith.constant 2 : index
    %c0_43 = arith.constant 0 : index
    %c0_44 = arith.constant 0 : index
    %53 = vector.load %arg1[%c0_41, %c2_42, %c0_43, %c0_44] : memref<1x18x18x4xbf16, #tpu.memory_space<vmem>>, vector<1x16x16x4xbf16>
    %54 = vector.shape_cast %53 : vector<1x16x16x4xbf16> to vector<16x16x4xbf16>
    %55 = arith.extf %54 : vector<16x16x4xbf16> to vector<16x16x4xf32>
    %56 = vector.shape_cast %55 : vector<16x16x4xf32> to vector<256x4xf32>
    %57 = arith.truncf %56 : vector<256x4xf32> to vector<256x4xbf16>
    %c6 = arith.constant 6 : index
    %c0_45 = arith.constant 0 : index
    %c0_46 = arith.constant 0 : index
    %58 = vector.load %arg2[%c6, %c0_45, %c0_46] : memref<9x4x128xbf16, #tpu.memory_space<vmem>>, vector<1x4x128xbf16>
    %59 = vector.shape_cast %58 : vector<1x4x128xbf16> to vector<4x128xbf16>
    %cst_47 = arith.constant dense<0.000000e+00> : vector<256x128xf32>
    %60 = tpu.matmul %57, %59, %cst_47 {dimension_numbers = #tpu.dot_dimension_numbers<[1], [0], [0], [1], [0, 0, 1, 1], [], []>} : vector<256x4xbf16>, vector<4x128xbf16>, vector<256x128xf32> -> vector<256x128xf32>
    %61 = arith.addf %52, %60 : vector<256x128xf32>
    %c0_48 = arith.constant 0 : index
    %c2_49 = arith.constant 2 : index
    %c1_50 = arith.constant 1 : index
    %c0_51 = arith.constant 0 : index
    %62 = vector.load %arg1[%c0_48, %c2_49, %c1_50, %c0_51] : memref<1x18x18x4xbf16, #tpu.memory_space<vmem>>, vector<1x16x16x4xbf16>
    %63 = vector.shape_cast %62 : vector<1x16x16x4xbf16> to vector<16x16x4xbf16>
    %64 = arith.extf %63 : vector<16x16x4xbf16> to vector<16x16x4xf32>
    %65 = vector.shape_cast %64 : vector<16x16x4xf32> to vector<256x4xf32>
    %66 = arith.truncf %65 : vector<256x4xf32> to vector<256x4xbf16>
    %c7 = arith.constant 7 : index
    %c0_52 = arith.constant 0 : index
    %c0_53 = arith.constant 0 : index
    %67 = vector.load %arg2[%c7, %c0_52, %c0_53] : memref<9x4x128xbf16, #tpu.memory_space<vmem>>, vector<1x4x128xbf16>
    %68 = vector.shape_cast %67 : vector<1x4x128xbf16> to vector<4x128xbf16>
    %cst_54 = arith.constant dense<0.000000e+00> : vector<256x128xf32>
    %69 = tpu.matmul %66, %68, %cst_54 {dimension_numbers = #tpu.dot_dimension_numbers<[1], [0], [0], [1], [0, 0, 1, 1], [], []>} : vector<256x4xbf16>, vector<4x128xbf16>, vector<256x128xf32> -> vector<256x128xf32>
    %70 = arith.addf %61, %69 : vector<256x128xf32>
    %c0_55 = arith.constant 0 : index
    %c2_56 = arith.constant 2 : index
    %c2_57 = arith.constant 2 : index
    %c0_58 = arith.constant 0 : index
    %71 = vector.load %arg1[%c0_55, %c2_56, %c2_57, %c0_58] : memref<1x18x18x4xbf16, #tpu.memory_space<vmem>>, vector<1x16x16x4xbf16>
    %72 = vector.shape_cast %71 : vector<1x16x16x4xbf16> to vector<16x16x4xbf16>
    %73 = arith.extf %72 : vector<16x16x4xbf16> to vector<16x16x4xf32>
    %74 = vector.shape_cast %73 : vector<16x16x4xf32> to vector<256x4xf32>
    %75 = arith.truncf %74 : vector<256x4xf32> to vector<256x4xbf16>
    %c8 = arith.constant 8 : index
    %c0_59 = arith.constant 0 : index
    %c0_60 = arith.constant 0 : index
    %76 = vector.load %arg2[%c8, %c0_59, %c0_60] : memref<9x4x128xbf16, #tpu.memory_space<vmem>>, vector<1x4x128xbf16>
    %77 = vector.shape_cast %76 : vector<1x4x128xbf16> to vector<4x128xbf16>
    %cst_61 = arith.constant dense<0.000000e+00> : vector<256x128xf32>
    %78 = tpu.matmul %75, %77, %cst_61 {dimension_numbers = #tpu.dot_dimension_numbers<[1], [0], [0], [1], [0, 0, 1, 1], [], []>} : vector<256x4xbf16>, vector<4x128xbf16>, vector<256x128xf32> -> vector<256x128xf32>
    %79 = arith.addf %70, %78 : vector<256x128xf32>
    %c0_62 = arith.constant 0 : index
    %c0_63 = arith.constant 0 : index
    %80 = vector.load %arg3[%c0_62, %c0_63] : memref<1x128xf32, #tpu.memory_space<vmem>>, vector<1x128xf32>
    %81 = vector.broadcast %80 : vector<1x128xf32> to vector<256x128xf32>
    %82 = arith.mulf %79, %81 : vector<256x128xf32>
    %c0_64 = arith.constant 0 : index
    %c0_65 = arith.constant 0 : index
    %83 = vector.load %arg4[%c0_64, %c0_65] : memref<1x128xf32, #tpu.memory_space<vmem>>, vector<1x128xf32>
    %84 = vector.broadcast %83 : vector<1x128xf32> to vector<256x128xf32>
    %85 = arith.addf %82, %84 : vector<256x128xf32>
    %cst_66 = arith.constant 0.000000e+00 : f32
    %86 = vector.broadcast %cst_66 : f32 to vector<256x128xf32>
    %87 = arith.maximumf %85, %86 : vector<256x128xf32>
    %cst_67 = arith.constant 0.000000e+00 : f32
    %88 = vector.broadcast %cst_67 : f32 to vector<18x18x128xf32>
    %c0_68 = arith.constant 0 : index
    %c0_69 = arith.constant 0 : index
    %c0_70 = arith.constant 0 : index
    %89 = vector.load %arg12[%c0_68, %c0_69, %c0_70] : memref<18x18x128xf32, #tpu.memory_space<vmem>>, vector<18x18x128xf32>
    tpu.vector_store %arg12[%c0_68, %c0_69, %c0_70], %88 {strides = array<i32>} : memref<18x18x128xf32, #tpu.memory_space<vmem>>, vector<18x18x128xf32>,
    %90 = vector.shape_cast %87 : vector<256x128xf32> to vector<16x16x128xf32>
    %c1_71 = arith.constant 1 : index
    %c1_72 = arith.constant 1 : index
    %c0_73 = arith.constant 0 : index
    %91 = vector.load %arg12[%c1_71, %c1_72, %c0_73] : memref<18x18x128xf32, #tpu.memory_space<vmem>>, vector<16x16x128xf32>
    tpu.vector_store %arg12[%c1_71, %c1_72, %c0_73], %90 {strides = array<i32>} : memref<18x18x128xf32, #tpu.memory_space<vmem>>, vector<16x16x128xf32>,
    %c0_74 = arith.constant 0 : index
    %c0_75 = arith.constant 0 : index
    %c0_76 = arith.constant 0 : index
    %92 = vector.load %arg12[%c0_74, %c0_75, %c0_76] : memref<18x18x128xf32, #tpu.memory_space<vmem>>, vector<16x16x128xf32>
    %93 = vector.shape_cast %92 : vector<16x16x128xf32> to vector<256x128xf32>
    %94 = arith.truncf %93 : vector<256x128xf32> to vector<256x128xbf16>
    %c0_77 = arith.constant 0 : index
    %c0_78 = arith.constant 0 : index
    %c0_79 = arith.constant 0 : index
    %95 = vector.load %arg5[%c0_77, %c0_78, %c0_79] : memref<9x128x128xbf16, #tpu.memory_space<vmem>>, vector<1x128x128xbf16>
    %96 = vector.shape_cast %95 : vector<1x128x128xbf16> to vector<128x128xbf16>
    %cst_80 = arith.constant dense<0.000000e+00> : vector<256x128xf32>
    %97 = tpu.matmul %94, %96, %cst_80 {dimension_numbers = #tpu.dot_dimension_numbers<[1], [0], [0], [1], [0, 0, 1, 1], [], []>} : vector<256x128xbf16>, vector<128x128xbf16>, vector<256x128xf32> -> vector<256x128xf32>
    %c0_81 = arith.constant 0 : index
    %c1_82 = arith.constant 1 : index
    %c0_83 = arith.constant 0 : index
    %98 = vector.load %arg12[%c0_81, %c1_82, %c0_83] : memref<18x18x128xf32, #tpu.memory_space<vmem>>, vector<16x16x128xf32>
    %99 = vector.shape_cast %98 : vector<16x16x128xf32> to vector<256x128xf32>
    %100 = arith.truncf %99 : vector<256x128xf32> to vector<256x128xbf16>
    %c1_84 = arith.constant 1 : index
    %c0_85 = arith.constant 0 : index
    %c0_86 = arith.constant 0 : index
    %101 = vector.load %arg5[%c1_84, %c0_85, %c0_86] : memref<9x128x128xbf16, #tpu.memory_space<vmem>>, vector<1x128x128xbf16>
    %102 = vector.shape_cast %101 : vector<1x128x128xbf16> to vector<128x128xbf16>
    %cst_87 = arith.constant dense<0.000000e+00> : vector<256x128xf32>
    %103 = tpu.matmul %100, %102, %cst_87 {dimension_numbers = #tpu.dot_dimension_numbers<[1], [0], [0], [1], [0, 0, 1, 1], [], []>} : vector<256x128xbf16>, vector<128x128xbf16>, vector<256x128xf32> -> vector<256x128xf32>
    %104 = arith.addf %97, %103 : vector<256x128xf32>
    %c0_88 = arith.constant 0 : index
    %c2_89 = arith.constant 2 : index
    %c0_90 = arith.constant 0 : index
    %105 = vector.load %arg12[%c0_88, %c2_89, %c0_90] : memref<18x18x128xf32, #tpu.memory_space<vmem>>, vector<16x16x128xf32>
    %106 = vector.shape_cast %105 : vector<16x16x128xf32> to vector<256x128xf32>
    %107 = arith.truncf %106 : vector<256x128xf32> to vector<256x128xbf16>
    %c2_91 = arith.constant 2 : index
    %c0_92 = arith.constant 0 : index
    %c0_93 = arith.constant 0 : index
    %108 = vector.load %arg5[%c2_91, %c0_92, %c0_93] : memref<9x128x128xbf16, #tpu.memory_space<vmem>>, vector<1x128x128xbf16>
    %109 = vector.shape_cast %108 : vector<1x128x128xbf16> to vector<128x128xbf16>
    %cst_94 = arith.constant dense<0.000000e+00> : vector<256x128xf32>
    %110 = tpu.matmul %107, %109, %cst_94 {dimension_numbers = #tpu.dot_dimension_numbers<[1], [0], [0], [1], [0, 0, 1, 1], [], []>} : vector<256x128xbf16>, vector<128x128xbf16>, vector<256x128xf32> -> vector<256x128xf32>
    %111 = arith.addf %104, %110 : vector<256x128xf32>
    %c1_95 = arith.constant 1 : index
    %c0_96 = arith.constant 0 : index
    %c0_97 = arith.constant 0 : index
    %112 = vector.load %arg12[%c1_95, %c0_96, %c0_97] : memref<18x18x128xf32, #tpu.memory_space<vmem>>, vector<16x16x128xf32>
    %113 = vector.shape_cast %112 : vector<16x16x128xf32> to vector<256x128xf32>
    %114 = arith.truncf %113 : vector<256x128xf32> to vector<256x128xbf16>
    %c3_98 = arith.constant 3 : index
    %c0_99 = arith.constant 0 : index
    %c0_100 = arith.constant 0 : index
    %115 = vector.load %arg5[%c3_98, %c0_99, %c0_100] : memref<9x128x128xbf16, #tpu.memory_space<vmem>>, vector<1x128x128xbf16>
    %116 = vector.shape_cast %115 : vector<1x128x128xbf16> to vector<128x128xbf16>
    %cst_101 = arith.constant dense<0.000000e+00> : vector<256x128xf32>
    %117 = tpu.matmul %114, %116, %cst_101 {dimension_numbers = #tpu.dot_dimension_numbers<[1], [0], [0], [1], [0, 0, 1, 1], [], []>} : vector<256x128xbf16>, vector<128x128xbf16>, vector<256x128xf32> -> vector<256x128xf32>
    %118 = arith.addf %111, %117 : vector<256x128xf32>
    %c1_102 = arith.constant 1 : index
    %c1_103 = arith.constant 1 : index
    %c0_104 = arith.constant 0 : index
    %119 = vector.load %arg12[%c1_102, %c1_103, %c0_104] : memref<18x18x128xf32, #tpu.memory_space<vmem>>, vector<16x16x128xf32>
    %120 = vector.shape_cast %119 : vector<16x16x128xf32> to vector<256x128xf32>
    %121 = arith.truncf %120 : vector<256x128xf32> to vector<256x128xbf16>
    %c4_105 = arith.constant 4 : index
    %c0_106 = arith.constant 0 : index
    %c0_107 = arith.constant 0 : index
    %122 = vector.load %arg5[%c4_105, %c0_106, %c0_107] : memref<9x128x128xbf16, #tpu.memory_space<vmem>>, vector<1x128x128xbf16>
    %123 = vector.shape_cast %122 : vector<1x128x128xbf16> to vector<128x128xbf16>
    %cst_108 = arith.constant dense<0.000000e+00> : vector<256x128xf32>
    %124 = tpu.matmul %121, %123, %cst_108 {dimension_numbers = #tpu.dot_dimension_numbers<[1], [0], [0], [1], [0, 0, 1, 1], [], []>} : vector<256x128xbf16>, vector<128x128xbf16>, vector<256x128xf32> -> vector<256x128xf32>
    %125 = arith.addf %118, %124 : vector<256x128xf32>
    %c1_109 = arith.constant 1 : index
    %c2_110 = arith.constant 2 : index
    %c0_111 = arith.constant 0 : index
    %126 = vector.load %arg12[%c1_109, %c2_110, %c0_111] : memref<18x18x128xf32, #tpu.memory_space<vmem>>, vector<16x16x128xf32>
    %127 = vector.shape_cast %126 : vector<16x16x128xf32> to vector<256x128xf32>
    %128 = arith.truncf %127 : vector<256x128xf32> to vector<256x128xbf16>
    %c5_112 = arith.constant 5 : index
    %c0_113 = arith.constant 0 : index
    %c0_114 = arith.constant 0 : index
    %129 = vector.load %arg5[%c5_112, %c0_113, %c0_114] : memref<9x128x128xbf16, #tpu.memory_space<vmem>>, vector<1x128x128xbf16>
    %130 = vector.shape_cast %129 : vector<1x128x128xbf16> to vector<128x128xbf16>
    %cst_115 = arith.constant dense<0.000000e+00> : vector<256x128xf32>
    %131 = tpu.matmul %128, %130, %cst_115 {dimension_numbers = #tpu.dot_dimension_numbers<[1], [0], [0], [1], [0, 0, 1, 1], [], []>} : vector<256x128xbf16>, vector<128x128xbf16>, vector<256x128xf32> -> vector<256x128xf32>
    %132 = arith.addf %125, %131 : vector<256x128xf32>
    %c2_116 = arith.constant 2 : index
    %c0_117 = arith.constant 0 : index
    %c0_118 = arith.constant 0 : index
    %133 = vector.load %arg12[%c2_116, %c0_117, %c0_118] : memref<18x18x128xf32, #tpu.memory_space<vmem>>, vector<16x16x128xf32>
    %134 = vector.shape_cast %133 : vector<16x16x128xf32> to vector<256x128xf32>
    %135 = arith.truncf %134 : vector<256x128xf32> to vector<256x128xbf16>
    %c6_119 = arith.constant 6 : index
    %c0_120 = arith.constant 0 : index
    %c0_121 = arith.constant 0 : index
    %136 = vector.load %arg5[%c6_119, %c0_120, %c0_121] : memref<9x128x128xbf16, #tpu.memory_space<vmem>>, vector<1x128x128xbf16>
    %137 = vector.shape_cast %136 : vector<1x128x128xbf16> to vector<128x128xbf16>
    %cst_122 = arith.constant dense<0.000000e+00> : vector<256x128xf32>
    %138 = tpu.matmul %135, %137, %cst_122 {dimension_numbers = #tpu.dot_dimension_numbers<[1], [0], [0], [1], [0, 0, 1, 1], [], []>} : vector<256x128xbf16>, vector<128x128xbf16>, vector<256x128xf32> -> vector<256x128xf32>
    %139 = arith.addf %132, %138 : vector<256x128xf32>
    %c2_123 = arith.constant 2 : index
    %c1_124 = arith.constant 1 : index
    %c0_125 = arith.constant 0 : index
    %140 = vector.load %arg12[%c2_123, %c1_124, %c0_125] : memref<18x18x128xf32, #tpu.memory_space<vmem>>, vector<16x16x128xf32>
    %141 = vector.shape_cast %140 : vector<16x16x128xf32> to vector<256x128xf32>
    %142 = arith.truncf %141 : vector<256x128xf32> to vector<256x128xbf16>
    %c7_126 = arith.constant 7 : index
    %c0_127 = arith.constant 0 : index
    %c0_128 = arith.constant 0 : index
    %143 = vector.load %arg5[%c7_126, %c0_127, %c0_128] : memref<9x128x128xbf16, #tpu.memory_space<vmem>>, vector<1x128x128xbf16>
    %144 = vector.shape_cast %143 : vector<1x128x128xbf16> to vector<128x128xbf16>
    %cst_129 = arith.constant dense<0.000000e+00> : vector<256x128xf32>
    %145 = tpu.matmul %142, %144, %cst_129 {dimension_numbers = #tpu.dot_dimension_numbers<[1], [0], [0], [1], [0, 0, 1, 1], [], []>} : vector<256x128xbf16>, vector<128x128xbf16>, vector<256x128xf32> -> vector<256x128xf32>
    %146 = arith.addf %139, %145 : vector<256x128xf32>
    %c2_130 = arith.constant 2 : index
    %c2_131 = arith.constant 2 : index
    %c0_132 = arith.constant 0 : index
    %147 = vector.load %arg12[%c2_130, %c2_131, %c0_132] : memref<18x18x128xf32, #tpu.memory_space<vmem>>, vector<16x16x128xf32>
    %148 = vector.shape_cast %147 : vector<16x16x128xf32> to vector<256x128xf32>
    %149 = arith.truncf %148 : vector<256x128xf32> to vector<256x128xbf16>
    %c8_133 = arith.constant 8 : index
    %c0_134 = arith.constant 0 : index
    %c0_135 = arith.constant 0 : index
    %150 = vector.load %arg5[%c8_133, %c0_134, %c0_135] : memref<9x128x128xbf16, #tpu.memory_space<vmem>>, vector<1x128x128xbf16>
    %151 = vector.shape_cast %150 : vector<1x128x128xbf16> to vector<128x128xbf16>
    %cst_136 = arith.constant dense<0.000000e+00> : vector<256x128xf32>
    %152 = tpu.matmul %149, %151, %cst_136 {dimension_numbers = #tpu.dot_dimension_numbers<[1], [0], [0], [1], [0, 0, 1, 1], [], []>} : vector<256x128xbf16>, vector<128x128xbf16>, vector<256x128xf32> -> vector<256x128xf32>
    %153 = arith.addf %146, %152 : vector<256x128xf32>
    %c0_137 = arith.constant 0 : index
    %c0_138 = arith.constant 0 : index
    %154 = vector.load %arg6[%c0_137, %c0_138] : memref<1x128xf32, #tpu.memory_space<vmem>>, vector<1x128xf32>
    %155 = vector.broadcast %154 : vector<1x128xf32> to vector<256x128xf32>
    %156 = arith.mulf %153, %155 : vector<256x128xf32>
    %c0_139 = arith.constant 0 : index
    %c0_140 = arith.constant 0 : index
    %157 = vector.load %arg7[%c0_139, %c0_140] : memref<1x128xf32, #tpu.memory_space<vmem>>, vector<1x128xf32>
    %158 = vector.broadcast %157 : vector<1x128xf32> to vector<256x128xf32>
    %159 = arith.addf %156, %158 : vector<256x128xf32>
    %c0_141 = arith.constant 0 : index
    %c1_142 = arith.constant 1 : index
    %c1_143 = arith.constant 1 : index
    %c0_144 = arith.constant 0 : index
    %160 = vector.load %arg1[%c0_141, %c1_142, %c1_143, %c0_144] : memref<1x18x18x4xbf16, #tpu.memory_space<vmem>>, vector<1x16x16x4xbf16>
    %161 = vector.shape_cast %160 : vector<1x16x16x4xbf16> to vector<16x16x4xbf16>
    %162 = arith.extf %161 : vector<16x16x4xbf16> to vector<16x16x4xf32>
    %163 = vector.shape_cast %162 : vector<16x16x4xf32> to vector<256x4xf32>
    %164 = arith.truncf %163 : vector<256x4xf32> to vector<256x4xbf16>
    %c0_145 = arith.constant 0 : index
    %c0_146 = arith.constant 0 : index
    %165 = vector.load %arg8[%c0_145, %c0_146] : memref<4x128xbf16, #tpu.memory_space<vmem>>, vector<4x128xbf16>
    %cst_147 = arith.constant dense<0.000000e+00> : vector<256x128xf32>
    %166 = tpu.matmul %164, %165, %cst_147 {dimension_numbers = #tpu.dot_dimension_numbers<[1], [0], [0], [1], [0, 0, 1, 1], [], []>} : vector<256x4xbf16>, vector<4x128xbf16>, vector<256x128xf32> -> vector<256x128xf32>
    %c0_148 = arith.constant 0 : index
    %c0_149 = arith.constant 0 : index
    %167 = vector.load %arg9[%c0_148, %c0_149] : memref<1x128xf32, #tpu.memory_space<vmem>>, vector<1x128xf32>
    %168 = vector.broadcast %167 : vector<1x128xf32> to vector<256x128xf32>
    %169 = arith.mulf %166, %168 : vector<256x128xf32>
    %c0_150 = arith.constant 0 : index
    %c0_151 = arith.constant 0 : index
    %170 = vector.load %arg10[%c0_150, %c0_151] : memref<1x128xf32, #tpu.memory_space<vmem>>, vector<1x128xf32>
    %171 = vector.broadcast %170 : vector<1x128xf32> to vector<256x128xf32>
    %172 = arith.addf %169, %171 : vector<256x128xf32>
    %173 = arith.addf %159, %172 : vector<256x128xf32>
    %cst_152 = arith.constant 0.000000e+00 : f32
    %174 = vector.broadcast %cst_152 : f32 to vector<256x128xf32>
    %175 = arith.maximumf %173, %174 : vector<256x128xf32>
    %176 = vector.shape_cast %175 : vector<256x128xf32> to vector<16x16x128xf32>
    %177 = arith.truncf %176 : vector<16x16x128xf32> to vector<16x16x128xbf16>
    %c0_153 = arith.constant 0 : index
    %c0_154 = arith.constant 0 : index
    %c0_155 = arith.constant 0 : index
    %c0_156 = arith.constant 0 : index
    %178 = vector.load %arg11[%c0_153, %c0_154, %c0_155, %c0_156] : memref<1x16x16x128xbf16, #tpu.memory_space<vmem>>, vector<1x16x16x128xbf16>
    %179 = vector.shape_cast %178 : vector<1x16x16x128xbf16> to vector<16x16x128xbf16>
    %180 = vector.shape_cast %177 : vector<16x16x128xbf16> to vector<1x16x16x128xbf16>
    tpu.vector_store %arg11[%c0_153, %c0_154, %c0_155, %c0_156], %180 {strides = array<i32>} : memref<1x16x16x128xbf16, #tpu.memory_space<vmem>>, vector<1x16x16x128xbf16>,
    return
  }
  func.func @transform_0(%arg0: i32) -> (i32, i32, i32, i32) {
    %c0_i32 = arith.constant 0 : i32
    %c0_i32_0 = arith.constant 0 : i32
    %c0_i32_1 = arith.constant 0 : i32
    %c0_i32_2 = arith.constant 0 : i32
    return %arg0, %c0_i32, %c0_i32_0, %c0_i32_1 : i32, i32, i32, i32
  }
  func.func @transform_1(%arg0: i32) -> (i32, i32, i32) {
    %c0_i32 = arith.constant 0 : i32
    %c0_i32_0 = arith.constant 0 : i32
    %c0_i32_1 = arith.constant 0 : i32
    %c0_i32_2 = arith.constant 0 : i32
    return %c0_i32, %c0_i32_0, %c0_i32_1 : i32, i32, i32
  }
  func.func @transform_2(%arg0: i32) -> (i32, i32) {
    %c0_i32 = arith.constant 0 : i32
    %c0_i32_0 = arith.constant 0 : i32
    %c0_i32_1 = arith.constant 0 : i32
    return %c0_i32, %c0_i32_0 : i32, i32
  }
  func.func @transform_3(%arg0: i32) -> (i32, i32) {
    %c0_i32 = arith.constant 0 : i32
    %c0_i32_0 = arith.constant 0 : i32
    %c0_i32_1 = arith.constant 0 : i32
    return %c0_i32, %c0_i32_0 : i32, i32
  }
  func.func @transform_4(%arg0: i32) -> (i32, i32, i32) {
    %c0_i32 = arith.constant 0 : i32
    %c0_i32_0 = arith.constant 0 : i32
    %c0_i32_1 = arith.constant 0 : i32
    %c0_i32_2 = arith.constant 0 : i32
    return %c0_i32, %c0_i32_0, %c0_i32_1 : i32, i32, i32
  }
  func.func @transform_5(%arg0: i32) -> (i32, i32) {
    %c0_i32 = arith.constant 0 : i32
    %c0_i32_0 = arith.constant 0 : i32
    %c0_i32_1 = arith.constant 0 : i32
    return %c0_i32, %c0_i32_0 : i32, i32
  }
  func.func @transform_6(%arg0: i32) -> (i32, i32) {
    %c0_i32 = arith.constant 0 : i32
    %c0_i32_0 = arith.constant 0 : i32
    %c0_i32_1 = arith.constant 0 : i32
    return %c0_i32, %c0_i32_0 : i32, i32
  }
  func.func @transform_7(%arg0: i32) -> (i32, i32) {
    %c0_i32 = arith.constant 0 : i32
    %c0_i32_0 = arith.constant 0 : i32
    %c0_i32_1 = arith.constant 0 : i32
    return %c0_i32, %c0_i32_0 : i32, i32
  }
  func.func @transform_8(%arg0: i32) -> (i32, i32) {
    %c0_i32 = arith.constant 0 : i32
    %c0_i32_0 = arith.constant 0 : i32
    %c0_i32_1 = arith.constant 0 : i32
    return %c0_i32, %c0_i32_0 : i32, i32
  }
  func.func @transform_9(%arg0: i32) -> (i32, i32) {
    %c0_i32 = arith.constant 0 : i32
    %c0_i32_0 = arith.constant 0 : i32
    %c0_i32_1 = arith.constant 0 : i32
    return %c0_i32, %c0_i32_0 : i32, i32
  }
  func.func @transform_10(%arg0: i32) -> (i32, i32, i32, i32) {
    %c0_i32 = arith.constant 0 : i32
    %c0_i32_0 = arith.constant 0 : i32
    %c0_i32_1 = arith.constant 0 : i32
    %c0_i32_2 = arith.constant 0 : i32
    return %arg0, %c0_i32, %c0_i32_0, %c0_i32_1 : i32, i32, i32, i32
  }
}

</mosaic_0001>

<bundles_post_ra>
// kernel: residual_block_forward.1
= control target key start
LH: loop header
LB: loop body
LE: loop exit
PB: predicated region body
PF: predicated region fallthrough
CT: control target
= control target key end

     0   :  { %s10178_s13 = smov 0   ;;  %s13606_s0 = inlined_call_operand.vmem [shape: bf16[2,18,18,4], index: 0, kind: input, shape index: {}]   ;;  %s13607_s1 = inlined_call_operand.vmem [shape: bf16[9,4,128], index: 1, kind: input, shape index: {}]   ;;  %s13608_s2 = inlined_call_operand.vmem [shape: f32[1,128], index: 2, kind: input, shape index: {}]   ;;  %s13609_s3 = inlined_call_operand.vmem [shape: f32[1,128], index: 3, kind: input, shape index: {}]   ;;  %s13610_s4 = inlined_call_operand.vmem [shape: bf16[9,128,128], index: 4, kind: input, shape index: {}]   ;;  %s13611_s5 = inlined_call_operand.vmem [shape: f32[1,128], index: 5, kind: input, shape index: {}]   ;;  %s13612_s6 = inlined_call_operand.vmem [shape: f32[1,128], index: 6, kind: input, shape index: {}]   ;;  %s13613_s7 = inlined_call_operand.vmem [shape: bf16[4,128], index: 7, kind: input, shape index: {}]   ;;  %s13614_s8 = inlined_call_operand.vmem [shape: f32[1,128], index: 8, kind: input, shape index: {}]   ;;  %s13615_s9 = inlined_call_operand.vmem [shape: f32[1,128], index: 9, kind: input, shape index: {}]   ;;  %s13616_s10 = inlined_call_operand.vmem [shape: bf16[2,16,16,128], index: 10, kind: output, shape index: {}]  }
   0x1 LB: > { %s7843_s14 = sadd.s32 4294967295, %s10119_s13   ;;  %p7847_p0 = scmp.ge.s32.totalorder %s10119_s13, 1  ;;  %s10119_s13 = sphi %s10178_s13, %s20_s13  }
   0x2   : > { %p312_p1 = scmp.lt.s32.totalorder %s10119_s13, 3 }
   0x4   : > { %p313_p2 = pnand %p7847_p0, %p312_p1 }
   0x6   : > { %316 = sbr.rel (%p313_p2) target bundleno = 1006 (0x3ee), region = 60 }
   0xb   : > { %v7867_v0 = vld [vmem:[%s13607_s1 + $0x2] sm:$0x3]  ;;  %vm702_vm0 = vcmask 1041408   ;;  %p350_p3 = scmp.lt.s32.totalorder %s7843_s14, 1  ;;  %v441_v2 = vld [vmem:[%s13607_s1] sm:$0x3] }
   0xc   : > { %9956 = vmatprep.subr.msk.bf16.mxu1 %vm702_vm0, %v7867_v0  ;;  %9955 = vmatprep.subr.msk.bf16.mxu0 %vm702_vm0, %v7867_v0  ;;  %v704_v1 = vsel %vm702_vm0, %v7867_v0, 0  ;;  %v7900_v3 = vld [vmem:[%s13607_s1 + $0x4] sm:$0x3]  ;;  %vm522_vm1 = vcmask 1046528   ;;  %vm653_vm2 = vcmask 31744   ;;  %v916_v24 = vsel %vm702_vm0, %v441_v2, 0 }
   0xd   : > { %9954 = vmatpush3.bf16.msra.mxu1 %v704_v1  ;;  %9182 = vmatpush3.bf16.msra.mxu0 %v704_v1  ;;  %s13954_s14 = smov (!%p350_p3, %s7843_s14), 1  ;;  %v1307_v30 = vsel %vm702_vm0, %v7900_v3, 0  ;;  %vm1127_vm3 = vcmask 1045504  }
   0xe   : > { %9957 = vmatprep.subr.msk.bf16.mxu1 %vm702_vm0, %v441_v2  ;;  %9958 = vmatprep.subr.msk.bf16.mxu0 %vm702_vm0, %v7900_v3  ;;  %s9966_s21 = smul.u32 216, %s13954_s14  ;;  %s8547_s23 = sshll.u32 %s13954_s14, 7 }
   0xf   : > { %s13430_s26 = scalar_lea.vmem %s13616_s10, %s8547_s23 }
  0x10   : > { %s10206_s24 = scalar_lea.vmem %s13606_s0, %s9966_s21 }
  0x11   : > { %v10209_v4 = vld [vmem:[%s10206_s24] sm:$0xff]   ;;  %v442_v5 = vld [vmem:[%s10206_s24 + $0x8] sm:$0x1]  ;;  %v10222_v12 = vld [vmem:[%s10206_s24 + $0xc] sm:$0xff]  }
  0x12   : > { %v10213_v6 = vld [vmem:[%s10206_s24 + $0x60] sm:$0xff]   ;;  %v393_v7 = vunpack.c.l.bf16 %v10209_v4  ;;  %v394_v8 = vunpack.c.h.bf16 %v10209_v4  ;;  %v458_v9 = vunpack.c.l.bf16 %v442_v5  ;;  %v10219_v11 = vld [vmem:[%s10206_s24 + $0x68] sm:$0x1]  ;;  %v395_v15 = vunpack.c.l.bf16 %v10222_v12  ;;  %v443_v23 = vld [vmem:[%s10206_s24 + $0x14] sm:$0x1] }
  0x13   : > { %v409_v10 = vunpack.c.l.bf16 %v10213_v6  ;;  %v410_v13 = vunpack.c.h.bf16 %v10213_v6  ;;  %v466_v14 = vunpack.c.l.bf16 %v10219_v11  ;;  %v396_v19 = vunpack.c.h.bf16 %v10222_v12  ;;  %v10239_v28 = vld [vmem:[%s10206_s24 + $0x6c] sm:$0xff]   ;;  %v10242_v29 = vld [vmem:[%s10206_s24 + $0x74] sm:$0x1]  ;;  %v10250_v35 = vld [vmem:[%s10206_s24 + $0x18] sm:$0xff]  }
  0x14   : > { %v523_v16 = vrot.slane %v393_v7, 1  ;;  %v524_v17 = vrot.slane %v394_v8, 1  ;;  %v526_v18 = vrot.slane %v458_v9, 1  ;;  %v10236_v27 = vrot.slane %v394_v8, 2  ;;  %v10259_v44 = vld [vmem:[%s10206_s24 + $0x20] sm:$0x1] }
  0x15   : > { %v563_v20 = vrot.slane %v409_v10, 1  ;;  %v564_v21 = vrot.slane %v410_v13, 1  ;;  %v566_v22 = vrot.slane %v466_v14, 1  ;;  %v10245_v32 = vrot.slane %v458_v9, 2  ;;  %v10262_v45 = vld [vmem:[%s10206_s24 + $0x78] sm:$0xff]   ;;  %v10281_v59 = vld [vmem:[%s10206_s24 + $0x24] sm:$0xff]  }
  0x16   : > { %v525_v25 = vsel %vm522_vm1, %v523_v16, %v524_v17  ;;  %v527_v26 = vsel %vm522_vm1, %v524_v17, %v526_v18  ;;  %v459_v37 = vunpack.c.l.bf16 %v443_v23  ;;  %v528_v38 = vrot.slane %v395_v15, 1  ;;  %v10275_v54 = vld [vmem:[%s10206_s24 + $0x80] sm:$0x1]  ;;  %v10288_v0 = vld [vmem:[%s10206_s24 + $0x2c] sm:$0x1]  ;;  %v10295_v7 = vld [vmem:[%s10206_s24 + $0x84] sm:$0xff]  }
  0x17   : > { %v635_v31 = vpack.c.bf16 %v527_v26, %v525_v25  ;;  %v565_v33 = vsel %vm522_vm1, %v563_v20, %v564_v21  ;;  %v567_v34 = vsel %vm522_vm1, %v564_v21, %v566_v22  ;;  %v529_v39 = vrot.slane %v396_v19, 1  ;;  %v10300_v8 = vld [vmem:[%s13607_s1 + $0x8] sm:$0x3]  ;;  %v10309_v17 = vld [vmem:[%s13607_s1 + $0x6] sm:$0x3] }
  0x18   : > { %v643_v36 = vpack.c.bf16 %v567_v34, %v565_v33  ;;  %v10253_v40 = vrot.slane %v396_v19, 2  ;;  %v411_v41 = vunpack.c.l.bf16 %v10239_v28  ;;  %v13626_v42 = vunpack.c.h.bf16 %v10239_v28  ;;  %v10319_v22 = vld [vmem:[%s10206_s24 + $0x8c] sm:$0x1] }
  0x19   : > { %9183 = vmatprep.mubr.msk.bf16.mxu0 %vm653_vm2, %v635_v31  ;;  %v13625_v43 = vunpack.c.l.bf16 %v10242_v29  ;;  %v530_v46 = vsel %vm522_vm1, %v528_v38, %v529_v39  ;;  %v531_v47 = vrot.slane %v459_v37, 1  ;;  %v10266_v48 = vrot.slane %v459_v37, 2  ;;  %v10325_v31 = vld [vmem:[%s10206_s24 + $0x30] sm:$0xff]   ;;  %v10335_v37 = vld [vmem:[%s10206_s24 + $0x38] sm:$0x1] }
  0x1a   : > { %9199 = vmatprep.mubr.msk.bf16.mxu1 %vm653_vm2, %v643_v36  ;;  %v397_v49 = vunpack.c.l.bf16 %v10250_v35  ;;  %v568_v50 = vrot.slane %v411_v41, 1  ;;  %v569_v51 = vrot.slane %v13626_v42, 1  ;;  %v398_v53 = vunpack.c.h.bf16 %v10250_v35  ;;  %v10338_v38 = vld [vmem:[%s10206_s24 + $0x90] sm:$0xff]  }
  0x1b   : > { %v571_v52 = vrot.slane %v13625_v43, 1  ;;  %v532_v55 = vsel %vm522_vm1, %v529_v39, %v531_v47  ;;  %v460_v56 = vunpack.c.l.bf16 %v10259_v44  ;;  %v413_v58 = vunpack.c.l.bf16 %v10262_v45 }
  0x1c   : > { %v533_v57 = vrot.slane %v397_v49, 1  ;;  %v636_v60 = vpack.c.bf16 %v532_v55, %v530_v46  ;;  %v570_v61 = vsel %vm522_vm1, %v568_v50, %v569_v51  ;;  %v534_v63 = vrot.slane %v398_v53, 1  ;;  %v10351_v55 = vld [vmem:[%s10206_s24 + $0x98] sm:$0x1] }
  0x1d   : > { %v572_v62 = vsel %vm522_vm1, %v569_v51, %v571_v52  ;;  %v536_v2 = vrot.slane %v460_v56, 1  ;;  %v13621_v3 = vunpack.c.h.bf16 %v10262_v45  ;;  %v13619_v5 = vunpack.c.l.bf16 %v10275_v54 }
  0x1e   : > { %v644_v1 = vpack.c.bf16 %v572_v62, %v570_v61  ;;  %9184 = vmatmul.mubr.msk.bf16.vlgmr.msra.gmra.mxu0 %vm653_vm2, %v636_v60  ;;  %v535_v9 = vsel %vm522_vm1, %v533_v57, %v534_v63  ;;  %v573_v10 = vrot.slane %v413_v58, 1  ;;  %v399_v15 = vunpack.c.l.bf16 %v10281_v59  ;;  %v10359_v62 = vld [vmem:[%s10206_s24 + $0x3c] sm:$0xff]  }
  0x1f   : > { %v400_v16 = vunpack.c.h.bf16 %v10281_v59  ;;  %9250 = vmatpush3.bf16.msra.mxu0 %v1307_v30  ;;  %v537_v18 = vsel %vm522_vm1, %v534_v63, %v536_v2  ;;  %v574_v19 = vrot.slane %v13621_v3, 1  ;;  %v576_v20 = vrot.slane %v13619_v5, 1  ;;  %v10362_v63 = vld [vmem:[%s10206_s24 + $0x44] sm:$0x1]  ;;  %v10430_v3 = vld [vmem:[%s10206_s24 + $0x5c] sm:$0x1] }
  0x20   : > { %9200 = vmatmul.mubr.msk.bf16.vlgmr.msra.gmra.mxu1 %vm653_vm2, %v644_v1  ;;  %v461_v21 = vunpack.c.l.bf16 %v10288_v0  ;;  %v637_v23 = vpack.c.bf16 %v537_v18, %v535_v9  ;;  %v538_v25 = vrot.slane %v399_v15, 1  ;;  %v415_v30 = vunpack.c.l.bf16 %v10295_v7  ;;  %9960 = vmatprep.subr.msk.bf16.mxu0 %vm702_vm0, %v10300_v8  ;;  %v10369_v15 = vld [vmem:[%s10206_s24 + $0x9c] sm:$0xff]   ;;  %v10513_v0 = vld [vmem:[%s13607_s1 + $0xc] sm:$0x3] }
  0x21   : > { %9216 = vmatpush3.bf16.msra.mxu1 %v916_v24  ;;  %v539_v26 = vrot.slane %v400_v16, 1  ;;  %v575_v33 = vsel %vm522_vm1, %v573_v10, %v574_v19  ;;  %v577_v34 = vsel %vm522_vm1, %v574_v19, %v576_v20  ;;  %v13624_v36 = vunpack.c.h.bf16 %v10295_v7 }
  0x22   : > { %v541_v24 = vrot.slane %v461_v21, 1  ;;  %9959 = vmatprep.subr.msk.bf16.mxu1 %vm702_vm0, %v10309_v17  ;;  %9187 = vmatprep.mubr.msk.bf16.mxu0 %vm653_vm2, %v637_v23  ;;  %v645_v39 = vpack.c.bf16 %v577_v34, %v575_v33  ;;  %v13623_v46 = vunpack.c.l.bf16 %v10319_v22  ;;  %v578_v47 = vrot.slane %v415_v30, 1 }
  0x23   : > { %v540_v41 = vsel %vm522_vm1, %v538_v25, %v539_v26  ;;  %v579_v50 = vrot.slane %v13624_v36, 1  ;;  %v401_v51 = vunpack.c.l.bf16 %v10325_v31  ;;  %v402_v52 = vunpack.c.h.bf16 %v10325_v31 }
  0x24   : > { %v542_v49 = vsel %vm522_vm1, %v539_v26, %v541_v24  ;;  %9203 = vmatprep.mubr.msk.bf16.mxu1 %vm653_vm2, %v645_v39  ;;  %v581_v58 = vrot.slane %v13623_v46, 1  ;;  %v462_v60 = vunpack.c.l.bf16 %v10335_v37  ;;  %v417_v61 = vunpack.c.l.bf16 %v10338_v38 }
  0x25   : > { %v638_v57 = vpack.c.bf16 %v542_v49, %v540_v41  ;;  %v580_v1 = vsel %vm522_vm1, %v578_v47, %v579_v50  ;;  %v543_v2 = vrot.slane %v401_v51, 1  ;;  %v544_v9 = vrot.slane %v402_v52, 1  ;;  %v10386_v47 = vld [vmem:[%s10206_s24 + $0xa4] sm:$0x1]  ;;  %v10389_v49 = vld [vmem:[%s10206_s24 + $0x48] sm:$0xff]  }
  0x26   : > { %v13618_v10 = vunpack.c.h.bf16 %v10338_v38  ;;  %v582_v18 = vsel %vm522_vm1, %v579_v50, %v581_v58  ;;  %v546_v19 = vrot.slane %v462_v60, 1  ;;  %v13617_v20 = vunpack.c.l.bf16 %v10351_v55 }
  0x27   : > { %9188 = vmatmul.mubr.msk.bf16.gmra.mxu0 %vm653_vm2, %v638_v57  ;;  %v583_v23 = vrot.slane %v417_v61, 1  ;;  %v646_v25 = vpack.c.bf16 %v582_v18, %v580_v1  ;;  %v545_v26 = vsel %vm522_vm1, %v543_v2, %v544_v9  ;;  %v403_v33 = vunpack.c.l.bf16 %v10359_v62  ;;  %v10401_v18 = vld [vmem:[%s10206_s24 + $0x50] sm:$0x1] }
  0x28   : > { %v584_v30 = vrot.slane %v13618_v10, 1  ;;  %v547_v34 = vsel %vm522_vm1, %v544_v9, %v546_v19  ;;  %v586_v24 = vrot.slane %v13617_v20, 1  ;;  %v404_v39 = vunpack.c.h.bf16 %v10359_v62 }
  0x29   : > { %v13631_v41 = vunpack.c.l.bf16 %v10362_v63  ;;  %9204 = vmatmul.mubr.msk.bf16.gmra.mxu1 %vm653_vm2, %v646_v25  ;;  %v639_v50 = vpack.c.bf16 %v547_v34, %v545_v26  ;;  %v548_v57 = vrot.slane %v403_v33, 1  ;;  %v419_v58 = vunpack.c.l.bf16 %v10369_v15  ;;  %v10410_v33 = vld [vmem:[%s10206_s24 + $0xb0] sm:$0x1] }
  0x2a   : > { %v585_v51 = vsel %vm522_vm1, %v583_v23, %v584_v30  ;;  %v587_v61 = vsel %vm522_vm1, %v584_v30, %v586_v24  ;;  %v549_v1 = vrot.slane %v404_v39, 1  ;;  %v13620_v9 = vunpack.c.h.bf16 %v10369_v15  ;;  %v10407_v30 = vld [vmem:[%s10206_s24 + $0xa8] sm:$0xff]  }
  0x2b   : > { %v551_v2 = vrot.slane %v13631_v41, 1  ;;  %9191 = vmatprep.mubr.msk.bf16.mxu0 %vm653_vm2, %v639_v50  ;;  %v647_v19 = vpack.c.bf16 %v587_v61, %v585_v51  ;;  %v13622_v23 = vunpack.c.l.bf16 %v10386_v47  ;;  %v588_v25 = vrot.slane %v419_v58, 1  ;;  %v10418_v51 = vld [vmem:[%s10206_s24 + $0x54] sm:$0xff]  }
  0x2c   : > { %v405_v26 = vunpack.c.l.bf16 %v10389_v49  ;;  %v550_v34 = vsel %vm522_vm1, %v548_v57, %v549_v1  ;;  %v589_v20 = vrot.slane %v13620_v9, 1  ;;  %v13628_v50 = vunpack.c.h.bf16 %v10389_v49 }
  0x2d   : > { %v552_v24 = vsel %vm522_vm1, %v549_v1, %v551_v2  ;;  %9207 = vmatprep.mubr.msk.bf16.mxu1 %vm653_vm2, %v647_v19  ;;  %v591_v61 = vrot.slane %v13622_v23, 1  ;;  %v13627_v10 = vunpack.c.l.bf16 %v10401_v18  ;;  %v421_v2 = vunpack.c.l.bf16 %v10407_v30 }
  0x2e   : > { %v640_v58 = vpack.c.bf16 %v552_v24, %v550_v34  ;;  %v553_v5 = vrot.slane %v405_v26, 1  ;;  %v590_v57 = vsel %vm522_vm1, %v588_v25, %v589_v20  ;;  %v554_v1 = vrot.slane %v13628_v50, 1  ;;  %v10439_v24 = vld [vmem:[%s10206_s24 + $0xb4] sm:$0xff]   ;;  %v1079_v50 = vld [vmem:[%s10206_s24] sm:$0xe] }
  0x2f   : > { %v13629_v9 = vunpack.c.h.bf16 %v10407_v30  ;;  %v592_v19 = vsel %vm522_vm1, %v589_v20, %v591_v61  ;;  %v556_v26 = vrot.slane %v13627_v10, 1  ;;  %v13630_v34 = vunpack.c.l.bf16 %v10410_v33 }
  0x30   : > { %9192 = vmatmul.mubr.msk.bf16.gmra.mxu0 %vm653_vm2, %v640_v58  ;;  %v407_v25 = vunpack.c.l.bf16 %v10418_v51  ;;  %v648_v23 = vpack.c.bf16 %v592_v19, %v590_v57  ;;  %v555_v46 = vsel %vm522_vm1, %v553_v5, %v554_v1  ;;  %v593_v36 = vrot.slane %v421_v2, 1  ;;  %v10445_v58 = vld [vmem:[%s10206_s24 + $0xbc] sm:$0x1] }
  0x31   : > { %v594_v43 = vrot.slane %v13629_v9, 1  ;;  %v557_v20 = vsel %vm522_vm1, %v554_v1, %v556_v26  ;;  %v596_v61 = vrot.slane %v13630_v34, 1  ;;  %v13632_v42 = vunpack.c.h.bf16 %v10418_v51  ;;  %v1080_v9 = vld [vmem:[%s10206_s24 + $0xc] sm:$0xe] }
  0x32   : > { %v13633_v10 = vunpack.c.l.bf16 %v10430_v3  ;;  %9208 = vmatmul.mubr.msk.bf16.gmra.mxu1 %vm653_vm2, %v648_v23  ;;  %v641_v57 = vpack.c.bf16 %v557_v20, %v555_v46  ;;  %v558_v2 = vrot.slane %v407_v25, 1  ;;  %v423_v19 = vunpack.c.l.bf16 %v10439_v24 }
  0x33   : > { %v595_v5 = vsel %vm522_vm1, %v593_v36, %v594_v43  ;;  %v597_v1 = vsel %vm522_vm1, %v594_v43, %v596_v61  ;;  %v559_v26 = vrot.slane %v13632_v42, 1  ;;  %v424_v41 = vunpack.c.h.bf16 %v10439_v24  ;;  %v1081_v42 = vld [vmem:[%s10206_s24 + $0x18] sm:$0xe] }
  0x34   : > { %v561_v34 = vrot.slane %v13633_v10, 1  ;;  %9195 = vmatprep.mubr.msk.bf16.mxu0 %vm653_vm2, %v641_v57  ;;  %v649_v46 = vpack.c.bf16 %v597_v1, %v595_v5  ;;  %v473_v36 = vunpack.c.l.bf16 %v10445_v58  ;;  %v598_v23 = vrot.slane %v423_v19, 1 }
  0x35   : > { %v560_v25 = vsel %vm522_vm1, %v558_v2, %v559_v26  ;;  %v599_v20 = vrot.slane %v424_v41, 1  ;;  %v1095_v61 = vunpack.c.l.bf16 %v1079_v50  ;;  %v1096_v5 = vunpack.c.l.bf16 %v1080_v9  ;;  %v1082_v2 = vld [vmem:[%s10206_s24 + $0x24] sm:$0xe] }
  0x36   : > { %v562_v43 = vsel %vm522_vm1, %v559_v26, %v561_v34  ;;  %9211 = vmatprep.mubr.msk.bf16.mxu1 %vm653_vm2, %v649_v46  ;;  %v601_v57 = vrot.slane %v473_v36, 1  ;;  %v1132_v34 = vsel %vm1127_vm3, %v10236_v27, %v10245_v32  ;;  %v1137_v50 = vsel %vm1127_vm3, %v10253_v40, %v10266_v48 }
  0x37   : > { %v642_v10 = vpack.c.bf16 %v562_v43, %v560_v25  ;;  %v600_v19 = vsel %vm522_vm1, %v598_v23, %v599_v20  ;;  %v1128_v1 = vrot.slane %v1095_v61, 2  ;;  %v1133_v46 = vrot.slane %v1096_v5, 2  ;;  %v1083_v61 = vld [vmem:[%s10206_s24 + $0x30] sm:$0xe] }
  0x38   : > { %v602_v26 = vsel %vm522_vm1, %v599_v20, %v601_v57  ;;  %v1097_v25 = vunpack.c.l.bf16 %v1081_v42  ;;  %v1139_v9 = vrot.slane %v398_v53, 2  ;;  %v1141_v32 = vrot.slane %v460_v56, 2 }
  0x39   : > { %9196 = vmatmul.mubr.msk.bf16.gmra.mxu0 %vm653_vm2, %v642_v10  ;;  %v650_v23 = vpack.c.bf16 %v602_v26, %v600_v19  ;;  %v1130_v43 = vsel %vm1127_vm3, %v1128_v1, %v10236_v27  ;;  %v1135_v10 = vsel %vm1127_vm3, %v1133_v46, %v10253_v40  ;;  %v1098_v57 = vunpack.c.l.bf16 %v1082_v2  ;;  %v1084_v1 = vld [vmem:[%s10206_s24 + $0x3c] sm:$0xe] }
  0x3a   : > { %v1240_v48 = vpack.c.bf16 %v1132_v34, %v1130_v43  ;;  %v1138_v20 = vrot.slane %v1097_v25, 2  ;;  %v1241_v42 = vpack.c.bf16 %v1137_v50, %v1135_v10  ;;  %v1142_v53 = vsel %vm1127_vm3, %v1139_v9, %v1141_v32  ;;  %v1085_v34 = vld [vmem:[%s10206_s24 + $0x48] sm:$0xe]  ;;  %v1087_v25 = vld [vmem:[%s10206_s24 + $0x60] sm:$0xe] }
  0x3b   : > { %9212 = vmatmul.mubr.msk.bf16.gmra.mxu1 %vm653_vm2, %v650_v23  ;;  %v1144_v27 = vrot.slane %v400_v16, 2  ;;  %v1143_v56 = vrot.slane %v1098_v57, 2  ;;  %v1146_v40 = vrot.slane %v461_v21, 2  ;;  %v1099_v5 = vunpack.c.l.bf16 %v1083_v61 }
  0x3c   : > { %9217 = vmatprep.mubr.msk.bf16.mxu1 %vm653_vm2, %v10209_v4  ;;  %9251 = vmatprep.mubr.msk.bf16.mxu0 %vm653_vm2, %v1240_v48  ;;  %v1140_v44 = vsel %vm1127_vm3, %v1138_v20, %v1139_v9  ;;  %v2152_v50 = vsel %vm702_vm0, %v10300_v8, 0  ;;  %v1149_v4 = vrot.slane %v402_v52, 2  ;;  %v1151_v2 = vrot.slane %v462_v60, 2  ;;  %v1086_v20 = vld [vmem:[%s10206_s24 + $0x54] sm:$0xe] }
  0x3d   : > { %v1242_v19 = vpack.c.bf16 %v1142_v53, %v1140_v44  ;;  %v1148_v16 = vrot.slane %v1099_v5, 2  ;;  %v1145_v21 = vsel %vm1127_vm3, %v1143_v56, %v1144_v27  ;;  %v1147_v26 = vsel %vm1127_vm3, %v1144_v27, %v1146_v40  ;;  %v1090_v44 = vld [vmem:[%s10206_s24 + $0x84] sm:$0xe] }
  0x3e   : > { %v1100_v8 = vunpack.c.l.bf16 %v1084_v1  ;;  %v1169_v46 = vrot.slane %v410_v13, 2  ;;  %v1171_v37 = vrot.slane %v466_v14, 2  ;;  %v1634_v52 = vsel %vm702_vm0, %v10309_v17, 0  ;;  %v8063_v13 = vld [vmem:[%s13607_s1 + $0xa] sm:$0x3] }
  0x3f   : > { %v1101_v60 = vunpack.c.l.bf16 %v1085_v34  ;;  %v1150_v9 = vsel %vm1127_vm3, %v1148_v16, %v1149_v4  ;;  %v1152_v23 = vsel %vm1127_vm3, %v1149_v4, %v1151_v2  ;;  %v1243_v11 = vpack.c.bf16 %v1147_v26, %v1145_v21  ;;  %v1088_v17 = vld [vmem:[%s10206_s24 + $0x6c] sm:$0xe] }
  0x40   : > { %v1154_v14 = vrot.slane %v404_v39, 2  ;;  %v1153_v43 = vrot.slane %v1100_v8, 2  ;;  %v13666_v32 = vunpack.c.l.bf16 %v10362_v63  ;;  %v13667_v48 = vunpack.c.h.bf16 %v10389_v49 }
  0x41   : > { %9252 = vmatmul.mubr.msk.bf16.vlgmr.msra.gmra.mxu0 %vm653_vm2, %v1241_v42  ;;  %v1103_v57 = vunpack.c.l.bf16 %v1087_v25  ;;  %v1244_v42 = vpack.c.bf16 %v1152_v23, %v1150_v9  ;;  %v13668_v53 = vunpack.c.l.bf16 %v10401_v18  ;;  %v1172_v39 = vsel %vm1127_vm3, %v1169_v46, %v1171_v37 }
  0x42   : > { %9318 = vmatpush3.bf16.msra.mxu0 %v2152_v50  ;;  %9255 = vmatprep.mubr.msk.bf16.mxu0 %vm653_vm2, %v1242_v19  ;;  %v1156_v61 = vrot.slane %v13666_v32, 2  ;;  %v1159_v10 = vrot.slane %v13667_v48, 2  ;;  %v1104_v56 = vunpack.c.l.bf16 %v1088_v17  ;;  %v13669_v63 = vunpack.c.h.bf16 %v10239_v28 }
  0x43   : > { %9962 = vmatprep.subr.msk.bf16.mxu0 %vm702_vm0, %v10513_v0  ;;  %9218 = vmatmul.mubr.msk.bf16.vlgmr.msra.gmra.mxu1 %vm653_vm2, %v10222_v12  ;;  %v1158_v12 = vrot.slane %v1101_v60, 2  ;;  %v1161_v27 = vrot.slane %v13668_v53, 2  ;;  %v13670_v5 = vunpack.c.l.bf16 %v10242_v29  ;;  %v1155_v1 = vsel %vm1127_vm3, %v1153_v43, %v1154_v14  ;;  %v1093_v53 = vld [vmem:[%s10206_s24 + $0xa8] sm:$0xe] }
  0x44   : > { %9284 = vmatpush3.bf16.msra.mxu1 %v1634_v52  ;;  %9221 = vmatprep.mubr.msk.bf16.mxu1 %vm653_vm2, %v10250_v35  ;;  %v1168_v35 = vrot.slane %v1103_v57, 2  ;;  %v1174_v40 = vrot.slane %v13669_v63, 2  ;;  %v1157_v18 = vsel %vm1127_vm3, %v1154_v14, %v1156_v61  ;;  %v1173_v50 = vrot.slane %v1104_v56, 2  ;;  %v1091_v57 = vld [vmem:[%s10206_s24 + $0x90] sm:$0xe] }
  0x45   : > { %9961 = vmatprep.subr.msk.bf16.mxu1 %vm702_vm0, %v8063_v13  ;;  %v1176_v19 = vrot.slane %v13670_v5, 2  ;;  %v1162_v16 = vsel %vm1127_vm3, %v1159_v10, %v1161_v27  ;;  %v1102_v4 = vunpack.c.l.bf16 %v1086_v20  ;;  %v1160_v29 = vsel %vm1127_vm3, %v1158_v12, %v1159_v10  ;;  %v1092_v12 = vld [vmem:[%s10206_s24 + $0x9c] sm:$0xe]  ;;  %v1094_v5 = vld [vmem:[%s10206_s24 + $0xb4] sm:$0xe] }
  0x46   : > { %v1170_v34 = vsel %vm1127_vm3, %v1168_v35, %v1169_v46  ;;  %v10565_v26 = vsel %vm1127_vm3, %v1173_v50, %v1174_v40  ;;  %v1106_v8 = vunpack.c.l.bf16 %v1090_v44  ;;  %v13671_v37 = vunpack.c.h.bf16 %v10295_v7 }
  0x47   : > { %v1248_v2 = vpack.c.bf16 %v1172_v39, %v1170_v34  ;;  %v10561_v21 = vsel %vm1127_vm3, %v1174_v40, %v1176_v19  ;;  %v13672_v60 = vunpack.c.l.bf16 %v10319_v22  ;;  %v1245_v9 = vpack.c.bf16 %v1157_v18, %v1155_v1  ;;  %v1089_v22 = vld [vmem:[%s10206_s24 + $0x78] sm:$0xe]  ;;  %v10614_v19 = vld [vmem:[%s10206_s24 + $0x14] sm:$0x1]  ;;  %v10619_v34 = vld [vmem:[%s10206_s24 + $0xc] sm:$0xff]  }
  0x48   : > { %v1184_v46 = vrot.slane %v13671_v37, 2  ;;  %v1249_v52 = vpack.c.bf16 %v10561_v21, %v10565_v26  ;;  %v13673_v23 = vunpack.c.h.bf16 %v10418_v51  ;;  %v1183_v14 = vrot.slane %v1106_v8, 2  ;;  %v10701_v21 = vld [vmem:[%s10206_s24 + $0x3c] sm:$0xff]   ;;  %v10704_v26 = vld [vmem:[%s10206_s24 + $0x44] sm:$0x1] }
  0x49   : > { %9256 = vmatmul.mubr.msk.bf16.gmra.mxu0 %vm653_vm2, %v1243_v11  ;;  %v1186_v25 = vrot.slane %v13672_v60, 2  ;;  %v1246_v17 = vpack.c.bf16 %v1162_v16, %v1160_v29  ;;  %v1163_v43 = vrot.slane %v1102_v4, 2  ;;  %v1105_v20 = vunpack.c.l.bf16 %v1089_v22 }
  0x4a   : > { %9259 = vmatprep.mubr.msk.bf16.mxu0 %vm653_vm2, %v1244_v42  ;;  %v1164_v11 = vrot.slane %v13673_v23, 2  ;;  %v10586_v48 = vsel %vm1127_vm3, %v1183_v14, %v1184_v46  ;;  %v10596_v42 = vsel %vm702_vm0, %v8063_v13, 0  ;;  %v13675_v39 = vunpack.c.h.bf16 %v10262_v45 }
  0x4b   : > { %9222 = vmatmul.mubr.msk.bf16.gmra.mxu1 %vm653_vm2, %v10281_v59  ;;  %v13674_v59 = vunpack.c.l.bf16 %v10430_v3  ;;  %v10582_v61 = vsel %vm1127_vm3, %v1184_v46, %v1186_v25  ;;  %v1107_v35 = vunpack.c.l.bf16 %v1091_v57  ;;  %v10608_v56 = vsel %vm702_vm0, %v10513_v0, 0 }
  0x4c   : > { %9225 = vmatprep.mubr.msk.bf16.mxu1 %vm653_vm2, %v10325_v31  ;;  %v1251_v31 = vpack.c.bf16 %v10582_v61, %v10586_v48  ;;  %v1165_v10 = vsel %vm1127_vm3, %v1163_v43, %v1164_v11  ;;  %v1179_v44 = vrot.slane %v13675_v39, 2  ;;  %v1178_v13 = vrot.slane %v1105_v20, 2 }
  0x4d   : > { %v1166_v32 = vrot.slane %v13674_v59, 2  ;;  %v13676_v63 = vunpack.c.l.bf16 %v10275_v54  ;;  %v13677_v1 = vunpack.c.h.bf16 %v10338_v38  ;;  %v1109_v18 = vunpack.c.l.bf16 %v1093_v53  ;;  %v10644_v59 = vld [vmem:[%s10206_s24 + $0x24] sm:$0xff]  }
  0x4e   : > { %v1188_v50 = vrot.slane %v1107_v35, 2  ;;  %v13678_v0 = vunpack.c.l.bf16 %v10351_v55  ;;  %v1180_v54 = vsel %vm1127_vm3, %v1178_v13, %v1179_v44  ;;  %v13679_v29 = vunpack.c.h.bf16 %v10369_v15  ;;  %v10683_v35 = vld [vmem:[%s10206_s24 + $0x30] sm:$0xff]  }
  0x4f   : > { %v1167_v3 = vsel %vm1127_vm3, %v1164_v11, %v1166_v32  ;;  %v1181_v40 = vrot.slane %v13676_v63, 2  ;;  %v13680_v37 = vunpack.c.l.bf16 %v10386_v47  ;;  %v13681_v25 = vunpack.c.h.bf16 %v10407_v30  ;;  %v10635_v11 = vld [vmem:[%s10206_s24 + $0x18] sm:$0xff]  }
  0x50   : > { %v1247_v27 = vpack.c.bf16 %v1167_v3, %v1165_v10  ;;  %v1191_v16 = vrot.slane %v13678_v0, 2  ;;  %v1194_v8 = vrot.slane %v13679_v29, 2  ;;  %v1110_v55 = vunpack.c.l.bf16 %v1094_v5  ;;  %v10716_v0 = vld [vmem:[%s10206_s24 + $0x50] sm:$0x1] }
  0x51   : > { %9260 = vmatmul.mubr.msk.bf16.gmra.mxu0 %vm653_vm2, %v1245_v9  ;;  %v1182_v4 = vsel %vm1127_vm3, %v1179_v44, %v1181_v40  ;;  %v1196_v46 = vrot.slane %v13680_v37, 2  ;;  %v1199_v9 = vrot.slane %v13681_v25, 2  ;;  %v1877_v23 = vunpack.c.l.bf16 %v10619_v34  ;;  %v10680_v44 = vld [vmem:[%s10206_s24 + $0x2c] sm:$0x1]  ;;  %v10692_v40 = vld [vmem:[%s10206_s24 + $0x38] sm:$0x1] }
  0x52   : > { %9263 = vmatprep.mubr.msk.bf16.mxu0 %vm653_vm2, %v1246_v17  ;;  %v13682_v14 = vunpack.c.l.bf16 %v10410_v33  ;;  %v13641_v47 = vunpack.c.h.bf16 %v10619_v34  ;;  %v13638_v43 = vunpack.c.l.bf16 %v10614_v19  ;;  %v1250_v32 = vpack.c.bf16 %v1182_v4, %v1180_v54  ;;  %v10655_v33 = vld [vmem:[%s10206_s24 + $0x20] sm:$0x1]  ;;  %v10736_v37 = vld [vmem:[%s10206_s24 + $0x5c] sm:$0x1] }
  0x53   : > { %9226 = vmatmul.mubr.msk.bf16.gmra.mxu1 %vm653_vm2, %v10359_v62  ;;  %v1108_v62 = vunpack.c.l.bf16 %v1092_v12  ;;  %v1204_v10 = vrot.slane %v424_v41, 2  ;;  %v1206_v3 = vrot.slane %v473_v36, 2  ;;  %v13637_v20 = vunpack.c.h.bf16 %v10635_v11 }
  0x54   : > { %9229 = vmatprep.mubr.msk.bf16.mxu1 %vm653_vm2, %v10389_v49  ;;  %v1189_v49 = vrot.slane %v13677_v1, 2  ;;  %v1201_v17 = vrot.slane %v13682_v14, 2  ;;  %v10667_v12 = vsel %vm1127_vm3, %v1194_v8, %v1196_v46  ;;  %v1203_v53 = vrot.slane %v1110_v55, 2 }
  0x55   : > { %v1193_v60 = vrot.slane %v1108_v62, 2  ;;  %v1974_v36 = vrot.slane %v13641_v47, 1  ;;  %v1976_v39 = vrot.slane %v13638_v43, 1  ;;  %v13635_v13 = vunpack.c.l.bf16 %v10655_v33  ;;  %v10800_v47 = vld [vmem:[%s10206_s24 + $0x78] sm:$0xff]  }
  0x56   : > { %v10649_v22 = vsel %vm1127_vm3, %v1188_v50, %v1189_v49  ;;  %v10673_v58 = vsel %vm1127_vm3, %v1199_v9, %v1201_v17  ;;  %v1883_v63 = vunpack.c.l.bf16 %v10644_v59  ;;  %v10697_v62 = vrot.slane %v13637_v20, 1  ;;  %v10713_v50 = vld [vmem:[%s10206_s24 + $0x48] sm:$0xff]  }
  0x57   : > { %v10664_v57 = vsel %vm1127_vm3, %v1193_v60, %v1194_v8  ;;  %v13634_v1 = vunpack.c.h.bf16 %v10644_v59  ;;  %v10724_v54 = vsel %vm1127_vm3, %v1204_v10, %v1206_v3  ;;  %v10730_v29 = vsel %vm522_vm1, %v1974_v36, %v1976_v39  ;;  %v10733_v8 = vld [vmem:[%s10206_s24 + $0x54] sm:$0xff]  }
  0x58   : > { %13683 = vst [vmem:[#allocation3_spill] sm:$0xff] %v10697_v62  ;;  %v13636_v46 = vunpack.c.l.bf16 %v10680_v44  ;;  %v1983_v60 = vrot.slane %v1883_v63, 1  ;;  %v8586_v25 = vunpack.c.l.bf16 %v10683_v35  ;;  %v1889_v14 = vunpack.c.l.bf16 %v10701_v21 }
  0x59   : > { %9264 = vmatmul.mubr.msk.bf16.gmra.mxu0 %vm653_vm2, %v1247_v27  ;;  %v1973_v27 = vrot.slane %v1877_v23, 1  ;;  %v1984_v55 = vrot.slane %v13634_v1, 1  ;;  %v13640_v23 = vunpack.c.h.bf16 %v10683_v35  ;;  %v13646_v17 = vunpack.c.h.bf16 %v10701_v21  ;;  %v10778_v1 = vld [vmem:[%s10206_s24 + $0x74] sm:$0x1] }
  0x5a   : > { %9267 = vmatprep.mubr.msk.bf16.mxu0 %vm653_vm2, %v1248_v2  ;;  %v1198_v2 = vrot.slane %v1109_v18, 2  ;;  %v13643_v3 = vunpack.c.l.bf16 %v10716_v0  ;;  %v1988_v39 = vrot.slane %v8586_v25, 1  ;;  %v13647_v63 = vunpack.c.l.bf16 %v10736_v37 }
  0x5b   : > { %9230 = vmatmul.mubr.msk.bf16.gmra.mxu1 %vm653_vm2, %v10418_v51  ;;  %v10652_v51 = vsel %vm1127_vm3, %v1189_v49, %v1191_v16  ;;  %v1253_v49 = vpack.c.bf16 %v10667_v12, %v10664_v57  ;;  %v10721_v16 = vsel %vm1127_vm3, %v1203_v53, %v1204_v10  ;;  %v10727_v4 = vsel %vm522_vm1, %v1973_v27, %v1974_v36  ;;  %v10767_v27 = vld [vmem:[%s10206_s24 + $0x6c] sm:$0xff]  }
  0x5c   : > { %9233 = vmatprep.mubr.msk.bf16.mxu1 %vm653_vm2, %v10213_v6  ;;  %v8582_v6 = vunpack.c.l.bf16 %v10635_v11  ;;  %v10670_v41 = vsel %vm1127_vm3, %v1198_v2, %v1199_v9  ;;  %v10753_v2 = vld [vmem:[%s10206_s24 + $0x60] sm:$0xff]   ;;  %v13642_v10 = vunpack.c.h.bf16 %v10713_v50  ;;  %v13644_v53 = vunpack.c.h.bf16 %v10733_v8 }
  0x5d   : > { %v1254_v18 = vpack.c.bf16 %v10673_v58, %v10670_v41  ;;  %v1986_v36 = vrot.slane %v13636_v46, 1  ;;  %v13648_v48 = vunpack.c.h.bf16 %v10753_v2  ;;  %v1993_v25 = vrot.slane %v1889_v14, 1 }
  0x5e   : > { %v1978_v5 = vrot.slane %v8582_v6, 1  ;;  %v1895_v6 = vunpack.c.l.bf16 %v10733_v8  ;;  %v1994_v46 = vrot.slane %v13646_v17, 1  ;;  %v2004_v14 = vrot.slane %v13644_v53, 1 }
  0x5f   : > { %v10821_v17 = vsel %vm522_vm1, %v1984_v55, %v1986_v36  ;;  %v10873_v36 = vld [vmem:[%s10206_s24 + $0x8c] sm:$0x1]  ;;  %v1255_v41 = vpack.c.bf16 %v10724_v54, %v10721_v16  ;;  %v13651_v58 = vunpack.c.h.bf16 %v10800_v47  ;;  %v13691_v16 = vunpack.c.l.bf16 %v10614_v19 }
  0x60   : > { %v10746_v9 = vsel %vm522_vm1, %v1978_v5, %v10697_v62  ;;  %v8594_v5 = vunpack.c.l.bf16 %v10753_v2 }
  0x61   : > { %9268 = vmatmul.mubr.msk.bf16.gmra.mxu0 %vm653_vm2, %v1249_v52  ;;  %v1252_v52 = vpack.c.bf16 %v10652_v51, %v10649_v22  ;;  %v8590_v22 = vunpack.c.l.bf16 %v10713_v50  ;;  %v10760_v51 = vld [vmem:[%s10206_s24 + $0x68] sm:$0x1] }
  0x62   : > { %9271 = vmatprep.mubr.msk.bf16.mxu0 %vm653_vm2, %v1250_v32  ;;  %v13645_v32 = vunpack.c.l.bf16 %v10704_v26 }
  0x63   : > { %9234 = vmatmul.mubr.msk.bf16.gmra.mxu1 %vm653_vm2, %v10239_v28  ;;  %v1981_v28 = vrot.slane %v13635_v13, 1  ;;  %v1989_v13 = vrot.slane %v13640_v23, 1  ;;  %v1998_v43 = vrot.slane %v8590_v22, 1  ;;  %v2003_v23 = vrot.slane %v1895_v6, 1 }
  0x64   : > { %9237 = vmatprep.mubr.msk.bf16.mxu1 %vm653_vm2, %v10262_v45  ;;  %v13639_v45 = vunpack.c.l.bf16 %v10692_v40  ;;  %v1996_v20 = vrot.slane %v13645_v32, 1  ;;  %v2009_v6 = vrot.slane %v13648_v48, 1  ;;  %v13650_v32 = vunpack.c.h.bf16 %v10767_v27 }
  0x65   : > { %v10806_v22 = vsel %vm522_vm1, %v10697_v62, %v1981_v28  ;;  %v10818_v28 = vsel %vm522_vm1, %v1983_v60, %v1984_v55  ;;  %v10830_v48 = vsel %vm522_vm1, %v1993_v25, %v1994_v46  ;;  %v10842_v55 = vld [vmem:[%s10206_s24 + $0x80] sm:$0x1] }
  0x66   : > { %v1991_v61 = vrot.slane %v13639_v45, 1  ;;  %v2001_v45 = vrot.slane %v13643_v3, 1  ;;  %v1901_v3 = vunpack.c.l.bf16 %v10767_v27  ;;  %v10896_v25 = vld [vmem:[%s10206_s24 + $0x9c] sm:$0xff]  }
  0x69   : > { %9272 = vmatmul.mubr.msk.bf16.gmra.mxu0 %vm653_vm2, %v1251_v31  ;;  %v13649_v31 = vunpack.c.l.bf16 %v10760_v51 }
  0x6a   : > { %9275 = vmatprep.mubr.msk.bf16.mxu0 %vm653_vm2, %v1252_v52  ;;  %v1999_v52 = vrot.slane %v13642_v10, 1  ;;  %v2008_v10 = vrot.slane %v8594_v5, 1  ;;  %v10824_v5 = vsel %vm522_vm1, %v1988_v39, %v1989_v13  ;;  %v2085_v39 = vpack.c.bf16 %v10730_v29, %v10727_v4  ;;  %v9992_v29 = vld [vmem:[%s10206_s24 + $0xc] sm:$0xff]  }
  0x6b   : > { %9238 = vmatmul.mubr.msk.bf16.gmra.mxu1 %vm653_vm2, %v10295_v7  ;;  %v2006_v7 = vrot.slane %v13647_v63, 1  ;;  %v2011_v53 = vrot.slane %v13649_v31, 1  ;;  %v10827_v63 = vsel %vm522_vm1, %v1989_v13, %v1991_v61  ;;  %v10833_v31 = vsel %vm522_vm1, %v1994_v46, %v1996_v20  ;;  %v10945_v61 = vld [vmem:[%s10206_s24 + $0xb4] sm:$0xff]  }
  0x6c   : > { %9241 = vmatprep.mubr.msk.bf16.mxu1 %vm653_vm2, %v10338_v38  ;;  %v10836_v38 = vsel %vm522_vm1, %v1998_v43, %v1999_v52  ;;  %v10839_v60 = vsel %vm522_vm1, %v1999_v52, %v2001_v45  ;;  %v10849_v13 = vsel %vm522_vm1, %v2003_v23, %v2004_v14  ;;  %v2013_v43 = vrot.slane %v1901_v3, 1  ;;  %v10856_v45 = vld [vmem:[%s10206_s24 + $0x84] sm:$0xff]  }
  0x6d   : > { %v10852_v20 = vsel %vm522_vm1, %v2004_v14, %v2006_v7  ;;  %v8598_v46 = vunpack.c.l.bf16 %v10800_v47  ;;  %v10863_v57 = vsel %vm522_vm1, %v2008_v10, %v2009_v6  ;;  %v10866_v12 = vsel %vm522_vm1, %v2009_v6, %v2011_v53  ;;  %v10880_v10 = vld [vmem:[%s10206_s24 + $0x90] sm:$0xff]   ;;  %v10883_v53 = vld [vmem:[%s10206_s24 + $0x98] sm:$0x1]  ;;  %v10899_v52 = vld [vmem:[%s10206_s24 + $0xa4] sm:$0x1] }
  0x6e   : > { %13684 = vst [vmem:[#allocation4_spill] sm:$0xff] %v10863_v57  ;;  %13685 = vst [vmem:[#allocation5_spill] sm:$0xff] %v10866_v12  ;;  %v13686_v23 = vunpack.c.l.bf16 %v10778_v1  ;;  %v8047_v14 = vld [vmem:[%s10206_s24 + $0xc] sm:$0xe]  ;;  %v10913_v6 = vld [vmem:[%s10206_s24 + $0xb0] sm:$0x1] }
  0x6f   : > { %v10931_v7 = vrot.slane %v13651_v58, 1  ;;  %v13690_v58 = vunpack.c.h.bf16 %v10619_v34  ;;  %v2398_v4 = vrot.slane %v13691_v16, 2  ;;  %v8050_v12 = vld [vmem:[%s10206_s24 + $0x30] sm:$0xe]  ;;  %v13702_v34 = vunpack.c.l.bf16 %v10692_v40  ;;  %v9994_v40 = vld [vmem:[%s10206_s24 + $0x24] sm:$0xff]  }
  0x70   : > { %v2016_v3 = vrot.slane %v13686_v23, 1  ;;  %v8048_v23 = vld [vmem:[%s10206_s24 + $0x18] sm:$0xe] }
  0x71   : > { %9276 = vmatmul.mubr.msk.bf16.gmra.mxu0 %vm653_vm2, %v1253_v49  ;;  %v2014_v49 = vrot.slane %v13650_v32, 1  ;;  %v10926_v32 = vld [vmem:[%s10206_s24 + $0xa8] sm:$0xff]   ;;  %13688 = vst [vmem:[#allocation7_spill] sm:$0xff] %v10931_v7  ;;  %v2396_v7 = vrot.slane %v13690_v58, 2  ;;  %v2364_v62 = vunpack.c.l.bf16 %v8048_v23 }
  0x72   : > { %9279 = vmatprep.mubr.msk.bf16.mxu0 %vm653_vm2, %v1254_v18  ;;  %v13653_v18 = vunpack.c.l.bf16 %v10842_v55 }
  0x73   : > { %9242 = vmatmul.mubr.msk.bf16.gmra.mxu1 %vm653_vm2, %v10369_v15  ;;  %v10917_v54 = vsel %vm522_vm1, %v2013_v43, %v2014_v49  ;;  %v10922_v15 = vrot.slane %v8598_v46, 1  ;;  %v8049_v46 = vld [vmem:[%s10206_s24 + $0x24] sm:$0xe]  ;;  %v10970_v19 = vsel %vm1127_vm3, %v2396_v7, %v2398_v4  ;;  %v2400_v16 = vrot.slane %v2364_v62, 2 }
  0x74   : > { %9245 = vmatprep.mubr.msk.bf16.mxu1 %vm653_vm2, %v10407_v30  ;;  %v10920_v30 = vsel %vm522_vm1, %v2014_v49, %v2016_v3  ;;  %v10935_v43 = vrot.slane %v13653_v18, 1  ;;  %v10940_v3 = vld [vmem:[%s10206_s24 + $0xbc] sm:$0x1]  ;;  %v10953_v49 = vld [vmem:[%s10206_s24 + $0xc0] sm:$0xff]   ;;  %13694 = vst [vmem:[#allocation10_spill] sm:$0xff] %v10970_v19  ;;  %v2365_v4 = vunpack.c.l.bf16 %v8049_v46  ;;  %v13701_v46 = vunpack.c.h.bf16 %v10683_v35 }
  0x75   : > { %13687 = vst [vmem:[#allocation6_spill] sm:$0xff] %v10922_v15  ;;  %v2363_v15 = vunpack.c.l.bf16 %v8047_v14  ;;  %v13692_v14 = vunpack.c.h.bf16 %v10635_v11  ;;  %v13705_v35 = vpack.c.bf16 %v10806_v22, %v10746_v9 }
  0x76   : > { %13689 = vst [vmem:[#allocation8_spill] sm:$0xff] %v10935_v43  ;;  %v10956_v43 = vld [vmem:[%s10206_s24 + $0xc8] sm:$0x1]  ;;  %v2405_v11 = vrot.slane %v2365_v4, 2 }
  0x77   : > { %v2395_v58 = vrot.slane %v2363_v15, 2  ;;  %v10965_v18 = vrot.slane %v13692_v14, 2  ;;  %v2411_v15 = vrot.slane %v13701_v46, 2  ;;  %v13709_v46 = vunpack.c.h.bf16 %v10733_v8 }
  0x78   : > { %v13711_v8 = vunpack.c.h.bf16 %v10753_v2 }
  0x79   : > { %9280 = vmatmul.mubr.msk.bf16.gmra.mxu0 %vm653_vm2, %v1255_v41  ;;  %13693 = vst [vmem:[#allocation9_spill] sm:$0xff] %v10965_v18  ;;  %v10981_v57 = vsel %vm1127_vm3, %v2395_v58, %v2396_v7  ;;  %v8051_v41 = vld [vmem:[%s10206_s24 + $0x3c] sm:$0xe]  ;;  %v13699_v58 = vunpack.c.h.bf16 %v10644_v59  ;;  %v2413_v7 = vrot.slane %v13702_v34, 2 }
  0x7a   : > { %9319 = vmatprep.mubr.msk.bf16.mxu0 %vm653_vm2, %v2085_v39  ;;  %v13695_v39 = vunpack.c.l.bf16 %v10655_v33  ;;  %13696 = vst [vmem:[#allocation11_spill] sm:$0xff] %v10981_v57  ;;  %v13700_v33 = vunpack.c.l.bf16 %v10680_v44  ;;  %v13704_v44 = vunpack.c.l.bf16 %v10704_v26 }
  0x7b   : > { %9246 = vmatmul.mubr.msk.bf16.gmra.mxu1 %vm653_vm2, %v10439_v24  ;;  %v10989_v24 = vsel %vm1127_vm3, %v2400_v16, %v10965_v18  ;;  %v2406_v16 = vrot.slane %v13699_v58, 2  ;;  %v13703_v58 = vunpack.c.h.bf16 %v10701_v21  ;;  %v13706_v21 = vpack.c.bf16 %v10821_v17, %v10818_v28 }
  0x7c   : > { %v2403_v23 = vrot.slane %v13695_v39, 2  ;;  %9285 = vmatprep.mubr.msk.bf16.mxu1 %vm653_vm2, %v9992_v29  ;;  %13697 = vst [vmem:[#allocation12_spill] sm:$0xff] %v10989_v24  ;;  %v8052_v39 = vld [vmem:[%s10206_s24 + $0x48] sm:$0xe]  ;;  %v11001_v29 = vld [vmem:[%s13607_s1 + $0x10] sm:$0x3] }
  0x7d   : > { %v2408_v14 = vrot.slane %v13700_v33, 2  ;;  %v8053_v24 = vld [vmem:[%s10206_s24 + $0x54] sm:$0xe]  ;;  %v2416_v19 = vrot.slane %v13703_v58, 2  ;;  %v8054_v33 = vld [vmem:[%s10206_s24 + $0x60] sm:$0xe]  ;;  %v11027_v34 = vsel %vm1127_vm3, %v2405_v11, %v2406_v16  ;;  %v2368_v4 = vunpack.c.l.bf16 %v8052_v39 }
  0x7e   : > { %v10993_v62 = vsel %vm1127_vm3, %v10965_v18, %v2403_v23  ;;  %v2366_v23 = vunpack.c.l.bf16 %v8050_v12  ;;  %v2367_v18 = vunpack.c.l.bf16 %v8051_v41  ;;  %v2418_v12 = vrot.slane %v13704_v44, 2 }
  0x7f   : > { %13698 = vst [vmem:[#allocation13_spill] sm:$0xff] %v10993_v62  ;;  %v9993_v62 = vld [vmem:[%s10206_s24 + $0x18] sm:$0xff]   ;;  %v11014_v57 = vsel %vm1127_vm3, %v2406_v16, %v2408_v14  ;;  %v11030_v41 = vsel %vm1127_vm3, %v2411_v15, %v2413_v7  ;;  %v13710_v58 = vunpack.c.l.bf16 %v10736_v37  ;;  %v8057_v37 = vld [vmem:[%s10206_s24 + $0x84] sm:$0xe]  ;;  %v13744_v16 = vunpack.c.l.bf16 %v10883_v53 }
  0x80   : > { %v2410_v59 = vrot.slane %v2366_v23, 2  ;;  %v2415_v14 = vrot.slane %v2367_v18, 2  ;;  %v11043_v11 = vsel %vm1127_vm3, %v2416_v19, %v2418_v12  ;;  %v13707_v18 = vunpack.c.h.bf16 %v10713_v50 }
  0x81   : > { %9320 = vmatmul.mubr.msk.bf16.vlgmr.msra.gmra.mxu0 %vm653_vm2, %v13705_v35  ;;  %v13708_v50 = vunpack.c.l.bf16 %v10716_v0  ;;  %v2369_v23 = vunpack.c.l.bf16 %v8053_v24  ;;  %v2428_v44 = vrot.slane %v13710_v58, 2  ;;  %v2370_v24 = vunpack.c.l.bf16 %v8054_v33  ;;  %v8056_v35 = vld [vmem:[%s10206_s24 + $0x78] sm:$0xe]  ;;  %v8058_v33 = vld [vmem:[%s10206_s24 + $0x90] sm:$0xe] }
  0x82   : > { %9386 = vmatpush3.bf16.msra.mxu0 %v10608_v56  ;;  %9323 = vmatprep.mubr.msk.bf16.mxu0 %vm653_vm2, %v13706_v21  ;;  %v11040_v22 = vsel %vm1127_vm3, %v2410_v59, %v2411_v15  ;;  %v2421_v39 = vrot.slane %v13707_v18, 2  ;;  %v11050_v56 = vld [vmem:[%s13607_s1 + $0xe] sm:$0x3]  ;;  %v11057_v28 = vsel %vm1127_vm3, %v2415_v14, %v2416_v19  ;;  %v2420_v15 = vrot.slane %v2368_v4, 2 }
  0x83   : > { %9964 = vmatprep.subr.msk.bf16.mxu0 %vm702_vm0, %v11001_v29  ;;  %v2423_v7 = vrot.slane %v13708_v50, 2  ;;  %9286 = vmatmul.mubr.msk.bf16.vlgmr.msra.gmra.mxu1 %vm653_vm2, %v9993_v62  ;;  %v2426_v59 = vrot.slane %v13709_v46, 2  ;;  %v8055_v19 = vld [vmem:[%s10206_s24 + $0x6c] sm:$0xe]  ;;  %v2431_v12 = vrot.slane %v13711_v8, 2  ;;  %v13712_v4 = vunpack.c.l.bf16 %v10760_v51  ;;  %v9995_v46 = vld [vmem:[%s10206_s24 + $0x30] sm:$0xff]  }
  0x84   : > { %9352 = vmatpush3.bf16.msra.mxu1 %v10596_v42  ;;  %9289 = vmatprep.mubr.msk.bf16.mxu1 %vm653_vm2, %v9994_v40  ;;  %v11072_v0 = vsel %vm1127_vm3, %v2420_v15, %v2421_v39  ;;  %v2425_v40 = vrot.slane %v2369_v23, 2  ;;  %v2430_v18 = vrot.slane %v2370_v24, 2  ;;  %v2371_v2 = vunpack.c.l.bf16 %v8055_v19 }
  0x85   : > { %v11075_v62 = vsel %vm1127_vm3, %v2421_v39, %v2423_v7  ;;  %9963 = vmatprep.subr.msk.bf16.mxu1 %vm702_vm0, %v11050_v56  ;;  %v11086_v14 = vsel %vm1127_vm3, %v2426_v59, %v2428_v44  ;;  %v2433_v21 = vrot.slane %v13712_v4, 2  ;;  %v13713_v39 = vunpack.c.h.bf16 %v10767_v27  ;;  %v9996_v27 = vld [vmem:[%s10206_s24 + $0x3c] sm:$0xff]  }
  0x86   : > { %v13714_v50 = vunpack.c.l.bf16 %v10778_v1  ;;  %v11097_v58 = vsel %vm1127_vm3, %v2425_v40, %v2426_v59  ;;  %v2372_v44 = vunpack.c.l.bf16 %v8056_v35  ;;  %v13715_v51 = vunpack.c.h.bf16 %v10800_v47  ;;  %v11176_v1 = vld [vmem:[%s10206_s24 + $0x20] sm:$0x1] }
  0x87   : > { %v2436_v15 = vrot.slane %v13713_v39, 2  ;;  %v11100_v23 = vsel %vm1127_vm3, %v2431_v12, %v2433_v21  ;;  %v13716_v19 = vpack.c.bf16 %v10827_v63, %v10824_v5  ;;  %v11112_v59 = vsel %vm1127_vm3, %v2430_v18, %v2431_v12 }
  0x88   : > { %v2438_v7 = vrot.slane %v13714_v50, 2  ;;  %v2441_v8 = vrot.slane %v13715_v51, 2  ;;  %v2435_v24 = vrot.slane %v2371_v2, 2  ;;  %v13717_v47 = vpack.c.bf16 %v10833_v31, %v10830_v48  ;;  %v8059_v50 = vld [vmem:[%s10206_s24 + $0x9c] sm:$0xe] }
  0x89   : > { %9324 = vmatmul.mubr.msk.bf16.gmra.mxu0 %vm653_vm2, %v13716_v19  ;;  %v2440_v5 = vrot.slane %v2372_v44, 2  ;;  %v13718_v35 = vunpack.c.l.bf16 %v10842_v55  ;;  %v2373_v21 = vunpack.c.l.bf16 %v8057_v37  ;;  %v13719_v18 = vunpack.c.h.bf16 %v10856_v45  ;;  %v8060_v44 = vld [vmem:[%s10206_s24 + $0xa8] sm:$0xe] }
  0x8a   : > { %v11115_v40 = vsel %vm1127_vm3, %v2436_v15, %v2438_v7  ;;  %9327 = vmatprep.mubr.msk.bf16.mxu0 %vm653_vm2, %v13717_v47  ;;  %v11126_v12 = vsel %vm1127_vm3, %v2435_v24, %v2436_v15  ;;  %v13720_v48 = vunpack.c.l.bf16 %v10873_v36  ;;  %v2374_v39 = vunpack.c.l.bf16 %v8058_v33  ;;  %v8061_v47 = vld [vmem:[%s10206_s24 + $0xb4] sm:$0xe] }
  0x8b   : > { %v2443_v4 = vrot.slane %v13718_v35, 2  ;;  %v2446_v2 = vrot.slane %v13719_v18, 2  ;;  %9290 = vmatmul.mubr.msk.bf16.gmra.mxu1 %vm653_vm2, %v9995_v46  ;;  %v11137_v37 = vsel %vm1127_vm3, %v2440_v5, %v2441_v8  ;;  %v2445_v7 = vrot.slane %v2373_v21, 2  ;;  %v8062_v18 = vld [vmem:[%s10206_s24 + $0xc0] sm:$0xe]  ;;  %v13739_v36 = vld [vmem:[#allocation3_spill] sm:$0xff] }
  0x8c   : > { %v2448_v31 = vrot.slane %v13720_v48, 2  ;;  %9293 = vmatprep.mubr.msk.bf16.mxu1 %vm653_vm2, %v9996_v27  ;;  %v2450_v51 = vrot.slane %v2374_v39, 2  ;;  %v13721_v19 = vunpack.c.h.bf16 %v10880_v10  ;;  %v13722_v5 = vunpack.c.l.bf16 %v10883_v53 }
  0x8d   : > { %v11140_v15 = vsel %vm1127_vm3, %v2441_v8, %v2443_v4  ;;  %v11153_v8 = vsel %vm1127_vm3, %v2445_v7, %v2446_v2  ;;  %v2375_v27 = vunpack.c.l.bf16 %v8059_v50  ;;  %v13723_v4 = vunpack.c.h.bf16 %v10896_v25  ;;  %v9997_v7 = vld [vmem:[%s10206_s24 + $0x48] sm:$0xff]  }
  0x8e   : > { %v11147_v46 = vsel %vm1127_vm3, %v2446_v2, %v2448_v31  ;;  %v2451_v24 = vrot.slane %v13721_v19, 2  ;;  %v2453_v35 = vrot.slane %v13722_v5, 2  ;;  %v13724_v39 = vunpack.c.l.bf16 %v10899_v52 }
  0x8f   : > { %v2456_v21 = vrot.slane %v13723_v4, 2  ;;  %v2376_v2 = vunpack.c.l.bf16 %v8060_v44  ;;  %v2455_v5 = vrot.slane %v2375_v27, 2  ;;  %v13725_v50 = vunpack.c.h.bf16 %v10926_v32 }
  0x90   : > { %v11163_v31 = vsel %vm1127_vm3, %v2450_v51, %v2451_v24  ;;  %v2458_v19 = vrot.slane %v13724_v39, 2  ;;  %v11169_v33 = vsel %vm1127_vm3, %v2451_v24, %v2453_v35  ;;  %v13726_v4 = vunpack.c.l.bf16 %v10913_v6  ;;  %v9998_v39 = vld [vmem:[%s10206_s24 + $0x54] sm:$0xff]  }
  0x91   : > { %v2461_v55 = vrot.slane %v13725_v50, 2  ;;  %v13727_v51 = vpack.c.bf16 %v10839_v60, %v10836_v38  ;;  %v2460_v35 = vrot.slane %v2376_v2, 2  ;;  %v2377_v27 = vunpack.c.l.bf16 %v8061_v47 }
  0x92   : > { %v2463_v63 = vrot.slane %v13726_v4, 2  ;;  %v11186_v24 = vsel %vm1127_vm3, %v2456_v21, %v2458_v19  ;;  %v13728_v50 = vpack.c.bf16 %v10852_v20, %v10849_v13  ;;  %v11193_v4 = vsel %vm1127_vm3, %v2455_v5, %v2456_v21 }
  0x93   : > { %9328 = vmatmul.mubr.msk.bf16.gmra.mxu0 %vm653_vm2, %v13727_v51  ;;  %v13729_v60 = vunpack.c.h.bf16 %v10945_v61  ;;  %v13730_v44 = vunpack.c.l.bf16 %v10940_v3  ;;  %v11205_v2 = vsel %vm1127_vm3, %v2460_v35, %v2461_v55  ;;  %v2465_v13 = vrot.slane %v2377_v27, 2  ;;  %9294 = vmatmul.mubr.msk.bf16.gmra.mxu1 %vm653_vm2, %v9997_v7 }
  0x94   : > { %9331 = vmatprep.mubr.msk.bf16.mxu0 %vm653_vm2, %v13728_v50  ;;  %v11196_v38 = vsel %vm1127_vm3, %v2461_v55, %v2463_v63  ;;  %v2378_v20 = vunpack.c.l.bf16 %v8062_v18  ;;  %v13731_v5 = vunpack.c.h.bf16 %v10953_v49  ;;  %v13732_v50 = vunpack.c.l.bf16 %v10956_v43  ;;  %9297 = vmatprep.mubr.msk.bf16.mxu1 %vm653_vm2, %v9998_v39 }
  0x95   : > { %v2466_v51 = vrot.slane %v13729_v60, 2  ;;  %v2468_v19 = vrot.slane %v13730_v44, 2  ;;  %v13733_v55 = vunpack.c.l.bf16 %v10856_v45  ;;  %v13663_v27 = vunpack.c.l.bf16 %v11176_v1 }
  0x96   : > { %v2471_v44 = vrot.slane %v13731_v5, 2  ;;  %v2473_v60 = vrot.slane %v13732_v50, 2  ;;  %v2470_v35 = vrot.slane %v2378_v20, 2  ;;  %v9999_v50 = vld [vmem:[%s10206_s24 + $0x60] sm:$0xff]   ;;  %v13734_v39 = vunpack.c.h.bf16 %v10856_v45  ;;  %v13737_v5 = vld [vmem:[#allocation4_spill] sm:$0xff] }
  0x97   : > { %v11211_v21 = vsel %vm1127_vm3, %v2466_v51, %v2468_v19  ;;  %v2023_v18 = vrot.slane %v13733_v55, 1  ;;  %v11221_v7 = vsel %vm1127_vm3, %v2465_v13, %v2466_v51  ;;  %v2093_v19 = vpack.c.bf16 %v10920_v30, %v10917_v54  ;;  %v10000_v54 = vld [vmem:[%s10206_s24 + $0x6c] sm:$0xff]  }
  0x98   : > { %v11229_v63 = vsel %vm1127_vm3, %v2471_v44, %v2473_v60  ;;  %v2024_v47 = vrot.slane %v13734_v39, 1  ;;  %v13735_v55 = vmov %v13720_v48  ;;  %v11237_v13 = vsel %vm1127_vm3, %v2470_v35, %v2471_v44  ;;  %v13736_v60 = vld [vmem:[#allocation5_spill] sm:$0xff]  ;;  %v13740_v44 = vld [vmem:[#allocation7_spill] sm:$0xff]  ;;  %v13741_v35 = vld [vmem:[#allocation6_spill] sm:$0xff] }
  0x99   : > { %v2026_v51 = vrot.slane %v13735_v55, 1  ;;  %v3243_v20 = vrot.slane %v13663_v27, 1  ;;  %v13738_v48 = vpack.c.bf16 %v13736_v60, %v13737_v5  ;;  %v8602_v45 = vunpack.c.l.bf16 %v10880_v10  ;;  %v13742_v27 = vld [vmem:[#allocation8_spill] sm:$0xff] }
  0x9a   : > { %v2020_v55 = vsel %vm522_vm1, %v13741_v35, %v13740_v44  ;;  %v2022_v30 = vsel %vm522_vm1, %v13740_v44, %v13742_v27  ;;  %v1913_v5 = vunpack.c.l.bf16 %v10896_v25  ;;  %v2025_v60 = vsel %vm522_vm1, %v2023_v18, %v2024_v47  ;;  %v10001_v35 = vld [vmem:[%s10206_s24 + $0x78] sm:$0xff]  }
  0x9b   : > { %9332 = vmatmul.mubr.msk.bf16.gmra.mxu0 %vm653_vm2, %v13738_v48  ;;  %v11251_v39 = vsel %vm522_vm1, %v13739_v36, %v3243_v20  ;;  %v2027_v20 = vsel %vm522_vm1, %v2024_v47, %v2026_v51  ;;  %9298 = vmatmul.mubr.msk.bf16.gmra.mxu1 %vm653_vm2, %v9999_v50  ;;  %v2028_v36 = vrot.slane %v8602_v45, 1  ;;  %v13743_v27 = vunpack.c.h.bf16 %v10880_v10  ;;  %v10002_v51 = vld [vmem:[%s10206_s24 + $0x84] sm:$0xff]  }
  0x9c   : > { %9335 = vmatprep.mubr.msk.bf16.mxu0 %vm653_vm2, %v2093_v19  ;;  %9301 = vmatprep.mubr.msk.bf16.mxu1 %vm653_vm2, %v10000_v54  ;;  %v2094_v19 = vpack.c.bf16 %v2022_v30, %v2020_v55  ;;  %v2095_v42 = vpack.c.bf16 %v2027_v20, %v2025_v60  ;;  %v2031_v17 = vrot.slane %v13744_v16, 1  ;;  %v2033_v26 = vrot.slane %v1913_v5, 1  ;;  %v10003_v55 = vld [vmem:[%s10206_s24 + $0x90] sm:$0xff]  }
  0x9d   : > { %v2029_v44 = vrot.slane %v13743_v27, 1  ;;  %v13745_v48 = vunpack.c.h.bf16 %v10896_v25  ;;  %v13746_v47 = vunpack.c.l.bf16 %v10899_v52  ;;  %v8606_v54 = vunpack.c.l.bf16 %v10926_v32 }
  0x9e   : > { %v1919_v16 = vunpack.c.l.bf16 %v10945_v61 }
  0x9f   : > { %v2034_v18 = vrot.slane %v13745_v48, 1  ;;  %v2036_v50 = vrot.slane %v13746_v47, 1  ;;  %v2030_v10 = vsel %vm522_vm1, %v2028_v36, %v2029_v44  ;;  %v2032_v53 = vsel %vm522_vm1, %v2029_v44, %v2031_v17 }
  0xa0   : > { %v2096_v52 = vpack.c.bf16 %v2032_v53, %v2030_v10  ;;  %v2038_v45 = vrot.slane %v8606_v54, 1  ;;  %v13748_v17 = vunpack.c.l.bf16 %v10913_v6  ;;  %v2043_v20 = vrot.slane %v1919_v16, 1  ;;  %v10005_v16 = vld [vmem:[%s10206_s24 + $0xa8] sm:$0xff]  }
  0xa1   : > { %v2035_v25 = vsel %vm522_vm1, %v2033_v26, %v2034_v18  ;;  %v2037_v30 = vsel %vm522_vm1, %v2034_v18, %v2036_v50  ;;  %v13750_v36 = vunpack.c.l.bf16 %v10940_v3  ;;  %v8610_v6 = vunpack.c.l.bf16 %v10953_v49 }
  0xa2   : > { %v2097_v5 = vpack.c.bf16 %v2037_v30, %v2035_v25  ;;  %v2041_v60 = vrot.slane %v13748_v17, 1  ;;  %v13752_v10 = vunpack.c.l.bf16 %v10956_v43  ;;  %v10006_v25 = vld [vmem:[%s10206_s24 + $0xb4] sm:$0xff]   ;;  %v10007_v43 = vld [vmem:[%s10206_s24 + $0xc0] sm:$0xff]  }
  0xa3   : > { %9336 = vmatmul.mubr.msk.bf16.gmra.mxu0 %vm653_vm2, %v2094_v19  ;;  %9302 = vmatmul.mubr.msk.bf16.gmra.mxu1 %vm653_vm2, %v10001_v35  ;;  %v13749_v19 = vunpack.c.h.bf16 %v10945_v61  ;;  %v2046_v27 = vrot.slane %v13750_v36, 1  ;;  %v10004_v35 = vld [vmem:[%s10206_s24 + $0x9c] sm:$0xff]   ;;  %v2048_v50 = vrot.slane %v8610_v6, 1  ;;  %v10010_v17 = vld [vmem:[%s10206_s24 + $0x30] sm:$0xff]  }
  0xa4   : > { %9339 = vmatprep.mubr.msk.bf16.mxu0 %vm653_vm2, %v2095_v42  ;;  %9305 = vmatprep.mubr.msk.bf16.mxu1 %vm653_vm2, %v10002_v51  ;;  %v13747_v42 = vunpack.c.h.bf16 %v10926_v32  ;;  %v13751_v51 = vunpack.c.h.bf16 %v10953_v49  ;;  %v2051_v53 = vrot.slane %v13752_v10, 1 }
  0xa5   : > { %v2044_v26 = vrot.slane %v13749_v19, 1  ;;  %v13756_v19 = vld [vmem:[#allocation13_spill] sm:$0xff] }
  0xa6   : > { %v2039_v48 = vrot.slane %v13747_v42, 1  ;;  %v2049_v54 = vrot.slane %v13751_v51, 1  ;;  %v10019_v51 = vld [vmem:[%s10206_s24 + $0x9c] sm:$0xff]  }
  0xa7   : > { %v2045_v18 = vsel %vm522_vm1, %v2043_v20, %v2044_v26  ;;  %v2047_v61 = vsel %vm522_vm1, %v2044_v26, %v2046_v27  ;;  %v3419_v20 = vsel %vm702_vm0, %v11050_v56, 0  ;;  %v13757_v26 = vld [vmem:[#allocation12_spill] sm:$0xff]  ;;  %v13759_v27 = vpack.c.bf16 %v11014_v57, %v11027_v34  ;;  %v10014_v34 = vld [vmem:[%s10206_s24 + $0x60] sm:$0xff]  }
  0xa8   : > { %v2040_v32 = vsel %vm522_vm1, %v2038_v45, %v2039_v48  ;;  %v2042_v44 = vsel %vm522_vm1, %v2039_v48, %v2041_v60  ;;  %v2099_v47 = vpack.c.bf16 %v2047_v61, %v2045_v18  ;;  %v2050_v30 = vsel %vm522_vm1, %v2048_v50, %v2049_v54  ;;  %v10008_v45 = vld [vmem:[%s10206_s24 + $0x18] sm:$0xff]   ;;  %v10009_v48 = vld [vmem:[%s10206_s24 + $0x24] sm:$0xff]  }
  0xa9   : > { %v2098_v3 = vpack.c.bf16 %v2042_v44, %v2040_v32  ;;  %v3841_v60 = vsel %vm702_vm0, %v11001_v29, 0  ;;  %v13758_v36 = vpack.c.bf16 %v13756_v19, %v13757_v26  ;;  %v10011_v29 = vld [vmem:[%s10206_s24 + $0x3c] sm:$0xff]   ;;  %v13760_v56 = vpack.c.bf16 %v11030_v41, %v11040_v22  ;;  %v10013_v57 = vld [vmem:[%s10206_s24 + $0x54] sm:$0xff]   ;;  %v10015_v22 = vld [vmem:[%s10206_s24 + $0x6c] sm:$0xff]  }
  0xaa   : > { %v13761_v32 = vpack.c.bf16 %v11043_v11, %v11057_v28  ;;  %v13762_v44 = vpack.c.bf16 %v11075_v62, %v11072_v0  ;;  %v13763_v41 = vpack.c.bf16 %v11086_v14, %v11097_v58  ;;  %v10016_v11 = vld [vmem:[%s10206_s24 + $0x78] sm:$0xff]   ;;  %v13764_v28 = vpack.c.bf16 %v11100_v23, %v11112_v59  ;;  %v10017_v62 = vld [vmem:[%s10206_s24 + $0x84] sm:$0xff]   ;;  %v10018_v14 = vld [vmem:[%s10206_s24 + $0x90] sm:$0xff]  }
  0xab   : > { %9340 = vmatmul.mubr.msk.bf16.gmra.mxu0 %vm653_vm2, %v2096_v52  ;;  %9306 = vmatmul.mubr.msk.bf16.gmra.mxu1 %vm653_vm2, %v10003_v55  ;;  %v2052_v52 = vsel %vm522_vm1, %v2049_v54, %v2051_v53  ;;  %v13753_v55 = vld [vmem:[#allocation10_spill] sm:$0xff]  ;;  %v13765_v0 = vpack.c.bf16 %v11115_v40, %v11126_v12  ;;  %v8210_v59 = vld [vmem:[%s10206_s24 + $0x18] sm:$0xe]  ;;  %v13766_v18 = vpack.c.bf16 %v11140_v15, %v11137_v37  ;;  %v8211_v37 = vld [vmem:[%s10206_s24 + $0x24] sm:$0xe] }
  0xac   : > { %9343 = vmatprep.mubr.msk.bf16.mxu0 %vm653_vm2, %v2097_v5  ;;  %9309 = vmatprep.mubr.msk.bf16.mxu1 %vm653_vm2, %v10004_v35  ;;  %v2100_v49 = vpack.c.bf16 %v2052_v52, %v2050_v30  ;;  %v13754_v5 = vld [vmem:[#allocation11_spill] sm:$0xff]  ;;  %v10012_v35 = vld [vmem:[%s10206_s24 + $0x48] sm:$0xff]   ;;  %v13767_v50 = vpack.c.bf16 %v11147_v46, %v11153_v8  ;;  %v8153_v30 = vld [vmem:[%s10206_s24 + $0x38] sm:$0x1]  ;;  %v13770_v26 = vpack.c.bf16 %v11169_v33, %v11163_v31 }
  0xad   : > { %v13755_v42 = vpack.c.bf16 %v13753_v55, %v13754_v5  ;;  %v8148_v54 = vld [vmem:[%s10206_s24 + $0x24] sm:$0xff]   ;;  %v8212_v8 = vld [vmem:[%s10206_s24 + $0x30] sm:$0xe]  ;;  %v13772_v31 = vpack.c.bf16 %v11186_v24, %v11193_v4 }
  0xae   : > { %v10020_v53 = vld [vmem:[%s10206_s24 + $0xa8] sm:$0xff]   ;;  %v3148_v46 = vunpack.c.h.bf16 %v8148_v54  ;;  %v3632_v19 = vunpack.c.l.bf16 %v8212_v8 }
  0xaf   : > { %v11456_v24 = vld [vmem:[%s10206_s24 + $0x48] sm:$0xff]  }
  0xb3   : > { %9344 = vmatmul.mubr.msk.bf16.gmra.mxu0 %vm653_vm2, %v2098_v3  ;;  %9310 = vmatmul.mubr.msk.bf16.gmra.mxu1 %vm653_vm2, %v10005_v16  ;;  %v3630_v3 = vunpack.c.l.bf16 %v8210_v59  ;;  %v8150_v16 = vld [vmem:[%s10206_s24 + $0x2c] sm:$0x1] }
  0xb4   : > { %9347 = vmatprep.mubr.msk.bf16.mxu0 %vm653_vm2, %v2099_v47  ;;  %9313 = vmatprep.mubr.msk.bf16.mxu1 %vm653_vm2, %v10006_v25  ;;  %v8765_v25 = vld [vmem:[%s10206_s24 + $0x30] sm:$0xff]   ;;  %v3149_v5 = vunpack.c.l.bf16 %v8150_v16 }
  0xb5   : > { %v3662_v52 = vrot.slane %v3630_v3, 2 }
  0xbb   : > { %9348 = vmatmul.mubr.msk.bf16.gmra.mxu0 %vm653_vm2, %v2100_v49  ;;  %9314 = vmatmul.mubr.msk.bf16.gmra.mxu1 %vm653_vm2, %v10007_v43  ;;  %v13769_v49 = vunpack.c.l.bf16 %v11176_v1  ;;  %v3147_v43 = vunpack.c.l.bf16 %v8148_v54  ;;  %v3152_v1 = vunpack.c.l.bf16 %v8153_v30 }
  0xbc   : > { %9387 = vmatprep.mubr.msk.bf16.mxu0 %vm653_vm2, %v10008_v45  ;;  %9353 = vmatprep.mubr.msk.bf16.mxu1 %vm653_vm2, %v13755_v42  ;;  %v3631_v42 = vunpack.c.l.bf16 %v8211_v37 }
  0xbd   : > { %v3665_v45 = vrot.slane %v13769_v49, 2  ;;  %v3253_v3 = vrot.slane %v3152_v1, 1  ;;  %v3675_v54 = vrot.slane %v3152_v1, 2  ;;  %v8159_v49 = vld [vmem:[%s10206_s24 + $0x50] sm:$0x1]  ;;  %v8623_v1 = vunpack.c.h.bf16 %v11456_v24 }
  0xc3   : > { %9388 = vmatmul.mubr.msk.bf16.vlgmr.msra.gmra.mxu0 %vm653_vm2, %v10009_v48  ;;  %9354 = vmatmul.mubr.msk.bf16.vlgmr.msra.gmra.mxu1 %vm653_vm2, %v13758_v36 }
  0xc4   : > { %9454 = vmatpush3.bf16.msra.mxu0 %v3841_v60  ;;  %9391 = vmatprep.mubr.msk.bf16.mxu0 %vm653_vm2, %v10010_v17  ;;  %v8618_v17 = vunpack.c.l.bf16 %v8765_v25  ;;  %v8619_v60 = vunpack.c.h.bf16 %v8765_v25 }
  0xc5   : > { %9420 = vmatpush3.bf16.msra.mxu1 %v3419_v20  ;;  %9357 = vmatprep.mubr.msk.bf16.mxu1 %vm653_vm2, %v13759_v27  ;;  %v10021_v27 = vld [vmem:[%s10206_s24 + $0xb4] sm:$0xff]  }
  0xc6   : > { %v3250_v59 = vrot.slane %v8618_v17, 1 }
  0xcb   : > { %9392 = vmatmul.mubr.msk.bf16.gmra.mxu0 %vm653_vm2, %v10011_v29  ;;  %9358 = vmatmul.mubr.msk.bf16.gmra.mxu1 %vm653_vm2, %v13760_v56  ;;  %v13771_v29 = vld [vmem:[#allocation9_spill] sm:$0xff] }
  0xcc   : > { %9395 = vmatprep.mubr.msk.bf16.mxu0 %vm653_vm2, %v10012_v35  ;;  %9361 = vmatprep.mubr.msk.bf16.mxu1 %vm653_vm2, %v13761_v32  ;;  %v11437_v35 = vsel %vm1127_vm3, %v3662_v52, %v13771_v29  ;;  %v11441_v56 = vsel %vm1127_vm3, %v13771_v29, %v3665_v45  ;;  %v3245_v32 = vrot.slane %v3147_v43, 1 }
  0xcd   : > { %v3774_v37 = vpack.c.bf16 %v11441_v56, %v11437_v35  ;;  %v3158_v56 = vunpack.c.l.bf16 %v8159_v49 }
  0xd3   : > { %9396 = vmatmul.mubr.msk.bf16.gmra.mxu0 %vm653_vm2, %v10013_v57  ;;  %9362 = vmatmul.mubr.msk.bf16.gmra.mxu1 %vm653_vm2, %v13762_v44  ;;  %v3246_v57 = vrot.slane %v3148_v46, 1  ;;  %v8156_v44 = vld [vmem:[%s10206_s24 + $0x44] sm:$0x1] }
  0xd4   : > { %9399 = vmatprep.mubr.msk.bf16.mxu0 %vm653_vm2, %v10014_v34  ;;  %9365 = vmatprep.mubr.msk.bf16.mxu1 %vm653_vm2, %v13763_v41  ;;  %v8154_v34 = vld [vmem:[%s10206_s24 + $0x3c] sm:$0xff]   ;;  %v3248_v41 = vrot.slane %v3149_v5, 1  ;;  %v3155_v30 = vunpack.c.l.bf16 %v8156_v44 }
  0xd5   : > { %v3154_v25 = vunpack.c.h.bf16 %v8154_v34  ;;  %v11467_v45 = vsel %vm522_vm1, %v3245_v32, %v3246_v57  ;;  %v8160_v32 = vld [vmem:[%s10206_s24 + $0x54] sm:$0xff]  }
  0xd6   : > { %v11470_v43 = vsel %vm522_vm1, %v3246_v57, %v3248_v41  ;;  %v13776_v57 = vpack.c.bf16 %v11196_v38, %v11205_v2  ;;  %v3160_v49 = vunpack.c.h.bf16 %v8160_v32 }
  0xd7   : > { %v3256_v44 = vrot.slane %v3154_v25, 1 }
  0xdb   : > { %9400 = vmatmul.mubr.msk.bf16.gmra.mxu0 %vm653_vm2, %v10015_v22  ;;  %9366 = vmatmul.mubr.msk.bf16.gmra.mxu1 %vm653_vm2, %v13764_v28  ;;  %v3667_v22 = vrot.slane %v3631_v42, 2  ;;  %v3670_v28 = vrot.slane %v3149_v5, 2 }
  0xdc   : > { %9403 = vmatprep.mubr.msk.bf16.mxu0 %vm653_vm2, %v10016_v11  ;;  %9369 = vmatprep.mubr.msk.bf16.mxu1 %vm653_vm2, %v13765_v0  ;;  %v3668_v11 = vrot.slane %v3148_v46, 2  ;;  %v8213_v0 = vld [vmem:[%s10206_s24 + $0x3c] sm:$0xe] }
  0xdd   : > { %v3633_v52 = vunpack.c.l.bf16 %v8213_v0  ;;  %v13778_v0 = vpack.c.bf16 %v11211_v21, %v11221_v7 }
  0xde   : > { %v11381_v58 = vpop.f32.mrf.mxu0  ;;  %v11473_v46 = vsel %vm1127_vm3, %v3667_v22, %v3668_v11  ;;  %v11476_v8 = vsel %vm1127_vm3, %v3668_v11, %v3670_v28  ;;  %v3678_v22 = vrot.slane %v3154_v25, 2  ;;  %v8162_v11 = vld [vmem:[%s10206_s24 + $0x5c] sm:$0x1]  ;;  %v3263_v25 = vrot.slane %v3158_v56, 1 }
  0xdf   : > { %v3677_v41 = vrot.slane %v3633_v52, 2  ;;  %v3159_v52 = vunpack.c.l.bf16 %v8160_v32 }
  0xe0   : > { %v11383_v6 = vpop.f32.mrf.mxu1  ;;  %v11386_v23 = vpop.f32.mrf.mxu0 }
  0xe2   : > { %v11389_v40 = vpop.f32.mrf.mxu1  ;;  %v11392_v12 = vpop.f32.mrf.mxu0 }
  0xe3   : > { %9404 = vmatmul.mubr.msk.bf16.gmra.mxu0 %vm653_vm2, %v10017_v62  ;;  %9370 = vmatmul.mubr.msk.bf16.gmra.mxu1 %vm653_vm2, %v13766_v18  ;;  %v3251_v18 = vrot.slane %v8619_v60, 1 }
  0xe4   : > { %9407 = vmatprep.mubr.msk.bf16.mxu0 %vm653_vm2, %v10018_v14  ;;  %v11398_v61 = vpop.f32.mrf.mxu1  ;;  %v11400_v47 = vpop.f32.mrf.mxu0  ;;  %9373 = vmatprep.mubr.msk.bf16.mxu1 %vm653_vm2, %v13767_v50  ;;  %v10022_v14 = vld [vmem:[%s10206_s24 + $0xc0] sm:$0xff]   ;;  %v3672_v50 = vrot.slane %v3632_v19, 2  ;;  %v8214_v19 = vld [vmem:[%s10206_s24 + $0x48] sm:$0xe] }
  0xe5   : > { %v11482_v42 = vsel %vm522_vm1, %v3250_v59, %v3251_v18  ;;  %v11485_v17 = vsel %vm522_vm1, %v3251_v18, %v3253_v3  ;;  %v3680_v59 = vrot.slane %v3155_v30, 2  ;;  %v3634_v18 = vunpack.c.l.bf16 %v8214_v19  ;;  %v8215_v3 = vld [vmem:[%s10206_s24 + $0x54] sm:$0xe]  ;;  %v8165_v19 = vld [vmem:[%s10206_s24 + $0x68] sm:$0x1] }
  0xe6   : > { %v11408_v10 = vpop.f32.mrf.mxu1  ;;  %v3164_v2 = vunpack.c.l.bf16 %v8165_v19 }
  0xe7   : > { %13768 = vst [vmem:[#allocation5_spill] sm:$0xff] %v11408_v10  ;;  %v11413_v15 = vpop.f32.mrf.mxu0  ;;  %v11545_v32 = vsel %vm1127_vm3, %v3678_v22, %v3680_v59  ;;  %v3266_v59 = vrot.slane %v3160_v49, 1 }
  0xe9   : > { %v11421_v55 = vpop.f32.mrf.mxu0  ;;  %v11423_v48 = vpop.f32.mrf.mxu1 }
  0xeb   : > { %9408 = vmatmul.mubr.msk.bf16.gmra.mxu0 %vm653_vm2, %v10019_v51  ;;  %v11426_v20 = vpop.f32.mrf.mxu0  ;;  %9374 = vmatmul.mubr.msk.bf16.gmra.mxu1 %vm653_vm2, %v13770_v26  ;;  %v11432_v36 = vpop.f32.mrf.mxu1  ;;  %v3673_v51 = vrot.slane %v8619_v60, 2  ;;  %v8622_v60 = vunpack.c.l.bf16 %v11456_v24 }
  0xec   : > { %9411 = vmatprep.mubr.msk.bf16.mxu0 %vm653_vm2, %v10020_v53  ;;  %9377 = vmatprep.mubr.msk.bf16.mxu1 %vm653_vm2, %v13772_v31  ;;  %v3153_v53 = vunpack.c.l.bf16 %v8154_v34  ;;  %v3258_v31 = vrot.slane %v3155_v30, 1  ;;  %v3161_v30 = vunpack.c.l.bf16 %v8162_v11 }
  0xed   : > { %v11445_v33 = vpop.f32.mrf.mxu0  ;;  %v11452_v62 = vpop.f32.mrf.mxu1  ;;  %v11496_v29 = vsel %vm1127_vm3, %v3673_v51, %v3675_v54  ;;  %v3260_v7 = vrot.slane %v8622_v60, 1  ;;  %v3261_v54 = vrot.slane %v8623_v1, 1  ;;  %v3635_v60 = vunpack.c.l.bf16 %v8215_v3 }
  0xee   : > { %13773 = vst [vmem:[#allocation4_spill] sm:$0xff] %v11452_v62  ;;  %v3255_v35 = vrot.slane %v3153_v53, 1  ;;  %v11525_v53 = vld [vmem:[%s10206_s24 + $0x60] sm:$0xff]   ;;  %v3685_v3 = vrot.slane %v3158_v56, 2 }
  0xef   : > { %v11458_v4 = vpop.f32.mrf.mxu1  ;;  %v8626_v11 = vunpack.c.l.bf16 %v11525_v53  ;;  %v3687_v56 = vrot.slane %v3635_v60, 2 }
  0xf0   : > { %13774 = vst [vmem:[#allocation3_spill] sm:$0xff] %v11458_v4  ;;  %v11460_v16 = vpop.f32.mrf.mxu0 }
  0xf2   : > { %v11478_v5 = vpop.f32.mrf.mxu0  ;;  %v11490_v26 = vpop.f32.mrf.mxu1 }
  0xf3   : > { %9412 = vmatmul.mubr.msk.bf16.gmra.mxu0 %vm653_vm2, %v10021_v27  ;;  %13775 = vst [vmem:[#allocation7_spill] sm:$0xff] %v11490_v26  ;;  %v11493_v27 = vsel %vm1127_vm3, %v3672_v50, %v3673_v51  ;;  %9378 = vmatmul.mubr.msk.bf16.gmra.mxu1 %vm653_vm2, %v13776_v57  ;;  %v11531_v57 = vsel %vm522_vm1, %v3255_v35, %v3256_v44  ;;  %v3682_v35 = vrot.slane %v3634_v18, 2  ;;  %v3268_v18 = vrot.slane %v3161_v30, 1 }
  0xf4   : > { %9415 = vmatprep.mubr.msk.bf16.mxu0 %vm653_vm2, %v10022_v14  ;;  %v11503_v34 = vpop.f32.mrf.mxu0  ;;  %v11506_v28 = vpop.f32.mrf.mxu1  ;;  %9381 = vmatprep.mubr.msk.bf16.mxu1 %vm653_vm2, %v13778_v0  ;;  %v10023_v14 = vld [vmem:[%s10206_s24 + $0xcc] sm:$0xff]   ;;  %v11534_v0 = vsel %vm522_vm1, %v3256_v44, %v3258_v31  ;;  %v11537_v51 = vsel %vm1127_vm3, %v3677_v41, %v3678_v22  ;;  %v8627_v44 = vunpack.c.h.bf16 %v11525_v53  ;;  %v11551_v31 = vsel %vm522_vm1, %v3260_v7, %v3261_v54 }
  0xf5   : > { %13777 = vst [vmem:[#allocation6_spill] sm:$0xff] %v11506_v28  ;;  %v3683_v41 = vrot.slane %v8623_v1, 2  ;;  %v3265_v22 = vrot.slane %v3159_v52, 1  ;;  %v8166_v53 = vld [vmem:[%s10206_s24 + $0x6c] sm:$0xff]   ;;  %v3688_v7 = vrot.slane %v3160_v49, 2  ;;  %v13783_v52 = vpack.c.bf16 %v11251_v39, %v10746_v9 }
  0xf6   : > { %v11518_v50 = vpop.f32.mrf.mxu0  ;;  %v11527_v24 = vpop.f32.mrf.mxu1  ;;  %v3165_v60 = vunpack.c.l.bf16 %v8166_v53  ;;  %v3166_v9 = vunpack.c.h.bf16 %v8166_v53  ;;  %v11594_v19 = vsel %vm522_vm1, %v3266_v59, %v3268_v18 }
  0xf7   : > { %13779 = vst [vmem:[#allocation8_spill] sm:$0xff] %v11527_v24  ;;  %v8217_v24 = vld [vmem:[%s10206_s24 + $0x6c] sm:$0xe]  ;;  %v11602_v53 = vsel %vm1127_vm3, %v3687_v56, %v3688_v7  ;;  %v3695_v56 = vrot.slane %v3164_v2, 2 }
  0xf8   : > { %v11539_v38 = vpop.f32.mrf.mxu1  ;;  %v3637_v26 = vunpack.c.l.bf16 %v8217_v24 }
  0xf9   : > { %13780 = vst [vmem:[#allocation10_spill] sm:$0xff] %v11539_v38  ;;  %v11541_v21 = vpop.f32.mrf.mxu0  ;;  %v8216_v38 = vld [vmem:[%s10206_s24 + $0x60] sm:$0xe] }
  0xfb   : > { %9416 = vmatmul.mubr.msk.bf16.gmra.mxu0 %vm653_vm2, %v10023_v14  ;;  %v11554_v4 = vpop.f32.mrf.mxu0  ;;  %v11557_v14 = vsel %vm522_vm1, %v3261_v54, %v3263_v25  ;;  %v11560_v10 = vpop.f32.mrf.mxu1  ;;  %v3690_v54 = vrot.slane %v3161_v30, 2  ;;  %v3273_v30 = vrot.slane %v3164_v2, 1  ;;  %v13790_v2 = vpack.c.bf16 %v11485_v17, %v11482_v42 }
  0xfc   : > { %9455 = vmatprep.mubr.msk.bf16.mxu0 %vm653_vm2, %v3774_v37  ;;  %13781 = vst [vmem:[#allocation11_spill] sm:$0xff] %v11560_v10  ;;  %v13782_v37 = vpack.c.bf16 %v11229_v63, %v11237_v13  ;;  %v3270_v63 = vrot.slane %v8626_v11, 1  ;;  %v3271_v13 = vrot.slane %v8627_v44, 1  ;;  %v8168_v10 = vld [vmem:[%s10206_s24 + $0x74] sm:$0x1]  ;;  %v11588_v11 = vsel %vm1127_vm3, %v3683_v41, %v3685_v3 }
  0xfd   : > { %v11568_v25 = vpop.f32.mrf.mxu0  ;;  %v11578_v1 = vpop.f32.mrf.mxu1  ;;  %v11605_v28 = vsel %vm1127_vm3, %v3688_v7, %v3690_v54 }
  0xfe   : > { %9382 = vmatmul.mubr.msk.bf16.gmra.mxu1 %vm653_vm2, %v13782_v37  ;;  %v3636_v37 = vunpack.c.l.bf16 %v8216_v38  ;;  %13784 = vst [vmem:[#allocation13_spill] sm:$0xff] %v11578_v1  ;;  %v11591_v38 = vsel %vm522_vm1, %v3265_v22, %v3266_v59  ;;  %v11597_v1 = vld [vmem:[%s10206_s24 + $0x78] sm:$0xff]   ;;  %v13786_v22 = vpack.c.bf16 %v11476_v8, %v11473_v46  ;;  %v11613_v59 = vsel %vm522_vm1, %v3270_v63, %v3271_v13 }
  0xff   : > { %9421 = vmatprep.mubr.msk.bf16.mxu1 %vm653_vm2, %v13783_v52  ;;  %v11582_v39 = vpop.f32.mrf.mxu0  ;;  %v11585_v52 = vsel %vm1127_vm3, %v3682_v35, %v3683_v41  ;;  %v11599_v49 = vpop.f32.mrf.mxu1  ;;  %v3167_v35 = vunpack.c.l.bf16 %v8168_v10  ;;  %v8171_v41 = vld [vmem:[%s10206_s24 + $0x80] sm:$0x1]  ;;  %v13788_v10 = vpack.c.bf16 %v11496_v29, %v11493_v27  ;;  %v11622_v24 = vsel %vm522_vm1, %v3271_v13, %v3273_v30  ;;  %v8218_v29 = vld [vmem:[%s10206_s24 + $0x78] sm:$0xe] }
 0x100   : > { %13785 = vst [vmem:[#allocation12_spill] sm:$0xff] %v11599_v49  ;;  %v3692_v18 = vrot.slane %v3636_v37, 2  ;;  %v3693_v49 = vrot.slane %v8627_v44, 2  ;;  %v3275_v46 = vrot.slane %v3165_v60, 1  ;;  %v3276_v8 = vrot.slane %v3166_v9, 1 }
 0x101   : > { %v9253_v3 = vpop.f32.mrf.mxu0  ;;  %v11615_v62 = vpop.f32.mrf.mxu1  ;;  %v8630_v7 = vunpack.c.l.bf16 %v11597_v1  ;;  %v3778_v63 = vpack.c.bf16 %v11588_v11, %v11585_v52  ;;  %v8631_v44 = vunpack.c.h.bf16 %v11597_v1  ;;  %v3170_v27 = vunpack.c.l.bf16 %v8171_v41  ;;  %v8174_v41 = vld [vmem:[%s10206_s24 + $0x8c] sm:$0x1] }
 0x102   : > { %13787 = vst [vmem:[#allocation9_spill] sm:$0xff] %v11615_v62  ;;  %v13789_v13 = vpack.c.bf16 %v11470_v43, %v11467_v45  ;;  %v3278_v30 = vrot.slane %v3167_v35, 1  ;;  %v3697_v60 = vrot.slane %v3637_v26, 2  ;;  %v11645_v43 = vsel %vm1127_vm3, %v3692_v18, %v3693_v49  ;;  %v8172_v26 = vld [vmem:[%s10206_s24 + $0x84] sm:$0xff]  }
 0x103   : > { %9456 = vmatmul.mubr.msk.bf16.vlgmr.msra.gmra.mxu0 %vm653_vm2, %v13786_v22  ;;  %v1343_v54 = vpop.f32.mrf.mxu0  ;;  %v9219_v37 = vpop.f32.mrf.mxu1  ;;  %v3698_v22 = vrot.slane %v3166_v9, 2  ;;  %v3280_v42 = vrot.slane %v8630_v7, 1  ;;  %v3638_v17 = vunpack.c.l.bf16 %v8218_v29  ;;  %v3281_v45 = vrot.slane %v8631_v44, 1 }
 0x104   : > { %9459 = vmatprep.mubr.msk.bf16.mxu0 %vm653_vm2, %v13788_v10  ;;  %v3700_v10 = vrot.slane %v3167_v35, 2  ;;  %v961_v52 = vadd.f32 %v9219_v37, %v11381_v58  ;;  %v11649_v35 = vsel %vm1127_vm3, %v3693_v49, %v3695_v56  ;;  %v11652_v58 = vsel %vm522_vm1, %v3275_v46, %v3276_v8 }
 0x105   : > { %v9254_v11 = vpop.f32.mrf.mxu0  ;;  %v952_v9 = vpop.f32.mrf.mxu1  ;;  %v3283_v18 = vrot.slane %v3170_v27, 1  ;;  %v11659_v62 = vsel %vm522_vm1, %v3276_v8, %v3278_v30  ;;  %v11662_v49 = vsel %vm1127_vm3, %v3697_v60, %v3698_v22  ;;  %v3171_v46 = vunpack.c.l.bf16 %v8172_v26  ;;  %v8219_v60 = vld [vmem:[%s10206_s24 + $0x84] sm:$0xe] }
 0x106   : > { %9422 = vmatmul.mubr.msk.bf16.vlgmr.msra.gmra.mxu1 %vm653_vm2, %v13789_v13  ;;  %v953_v37 = vadd.f32 %v952_v9, %v11386_v23  ;;  %v11665_v56 = vsel %vm1127_vm3, %v3698_v22, %v3700_v10  ;;  %v13791_v23 = vpack.c.bf16 %v11545_v32, %v11537_v51  ;;  %v3172_v8 = vunpack.c.h.bf16 %v8172_v26 }
 0x107   : > { %9425 = vmatprep.mubr.msk.bf16.mxu1 %vm653_vm2, %v13790_v2  ;;  %v11655_v2 = vadd.f32 %v9253_v3, %v961_v52  ;;  %v1346_v13 = vpop.f32.mrf.mxu0  ;;  %v9220_v1 = vpop.f32.mrf.mxu1  ;;  %v3173_v30 = vunpack.c.l.bf16 %v8174_v41  ;;  %v3702_v22 = vrot.slane %v3638_v17, 2  ;;  %v3705_v10 = vrot.slane %v3170_v27, 2  ;;  %v11688_v41 = vld [vmem:[%s10206_s24 + $0x90] sm:$0xff]  }
 0x108   : > { %v11667_v7 = vadd.f32 %v1343_v54, %v953_v37  ;;  %v964_v3 = vadd.f32 %v9220_v1, %v11392_v12  ;;  %v3780_v54 = vpack.c.bf16 %v11649_v35, %v11645_v43  ;;  %v3703_v12 = vrot.slane %v8631_v44, 2  ;;  %v8220_v37 = vld [vmem:[%s10206_s24 + $0x90] sm:$0xe] }
 0x109   : > { %v9257_v29 = vpop.f32.mrf.mxu0  ;;  %v955_v52 = vpop.f32.mrf.mxu1  ;;  %v11682_v9 = vsel %vm522_vm1, %v3280_v42, %v3281_v45  ;;  %v11685_v26 = vsel %vm522_vm1, %v3281_v45, %v3283_v18  ;;  %v13792_v44 = vpack.c.bf16 %v11534_v0, %v11531_v57  ;;  %v3781_v27 = vpack.c.bf16 %v11665_v56, %v11662_v49 }
 0x10a   : > { %v11678_v1 = vadd.f32 %v9254_v11, %v964_v3  ;;  %v956_v51 = vadd.f32 %v955_v52, %v11400_v47  ;;  %v3359_v47 = vpack.c.bf16 %v11659_v62, %v11652_v58  ;;  %v3285_v11 = vrot.slane %v3171_v46, 1 }
 0x10b   : > { %9460 = vmatmul.mubr.msk.bf16.gmra.mxu0 %vm653_vm2, %v13791_v23  ;;  %v1359_v32 = vpop.f32.mrf.mxu0  ;;  %v9223_v43 = vpop.f32.mrf.mxu1  ;;  %v3639_v45 = vunpack.c.l.bf16 %v8219_v60  ;;  %v13793_v18 = vpack.c.bf16 %v11557_v14, %v11551_v31  ;;  %v3286_v57 = vrot.slane %v3172_v8, 1  ;;  %v3288_v0 = vrot.slane %v3173_v30, 1 }
 0x10c   : > { %9463 = vmatprep.mubr.msk.bf16.mxu0 %vm653_vm2, %v3778_v63  ;;  %v11691_v63 = vld [vmem:[%s10206_s24 + $0x98] sm:$0x1]  ;;  %v11702_v35 = vadd.f32 %v1346_v13, %v956_v51  ;;  %v977_v42 = vadd.f32 %v9223_v43, %v11413_v15  ;;  %v8635_v46 = vunpack.c.h.bf16 %v11688_v41  ;;  %v3640_v60 = vunpack.c.l.bf16 %v8220_v37  ;;  %v8178_v37 = vld [vmem:[%s10206_s24 + $0x9c] sm:$0xff]  }
 0x10d   : > { %v9258_v17 = vpop.f32.mrf.mxu0  ;;  %v968_v3 = vpop.f32.mrf.mxu1  ;;  %v3176_v13 = vunpack.c.l.bf16 %v11691_v63  ;;  %v11717_v14 = vsel %vm1127_vm3, %v3702_v22, %v3703_v12  ;;  %v11720_v51 = vsel %vm1127_vm3, %v3703_v12, %v3705_v10  ;;  %v3710_v23 = vrot.slane %v3173_v30, 2  ;;  %v8221_v30 = vld [vmem:[%s10206_s24 + $0x9c] sm:$0xe] }
 0x10e   : > { %9426 = vmatmul.mubr.msk.bf16.gmra.mxu1 %vm653_vm2, %v13792_v44  ;;  %v11713_v52 = vadd.f32 %v9257_v29, %v977_v42  ;;  %v969_v15 = vadd.f32 %v968_v3, %v11421_v55  ;;  %v3707_v44 = vrot.slane %v3639_v45, 2  ;;  %v8634_v63 = vunpack.c.l.bf16 %v11688_v41 }
 0x10f   : > { %9429 = vmatprep.mubr.msk.bf16.mxu1 %vm653_vm2, %v13793_v18  ;;  %v1362_v31 = vpop.f32.mrf.mxu0  ;;  %v9224_v43 = vpop.f32.mrf.mxu1  ;;  %v3708_v18 = vrot.slane %v3172_v8, 2  ;;  %v13794_v3 = vpack.c.bf16 %v11605_v28, %v11602_v53  ;;  %v11732_v22 = vsel %vm522_vm1, %v3285_v11, %v3286_v57  ;;  %v11735_v12 = vsel %vm522_vm1, %v3286_v57, %v3288_v0  ;;  %v8180_v8 = vld [vmem:[%s10206_s24 + $0xa4] sm:$0x1] }
 0x110   : > { %v11724_v29 = vadd.f32 %v1359_v32, %v969_v15  ;;  %v980_v55 = vadd.f32 %v9224_v43, %v11426_v20  ;;  %v3782_v20 = vpack.c.bf16 %v11720_v51, %v11717_v14  ;;  %v3712_v32 = vrot.slane %v3640_v60, 2 }
 0x111   : > { %v9261_v42 = vpop.f32.mrf.mxu0  ;;  %v971_v10 = vpop.f32.mrf.mxu1  ;;  %v3713_v41 = vrot.slane %v8635_v46, 2  ;;  %v3715_v45 = vrot.slane %v3176_v13, 2  ;;  %v3177_v15 = vunpack.c.l.bf16 %v8178_v37  ;;  %v3178_v43 = vunpack.c.h.bf16 %v8178_v37 }
 0x112   : > { %v11742_v28 = vadd.f32 %v9258_v17, %v980_v55  ;;  %v972_v53 = vadd.f32 %v971_v10, %v11445_v33  ;;  %v13795_v0 = vpack.c.bf16 %v11594_v19, %v11591_v38  ;;  %v11752_v60 = vsel %vm1127_vm3, %v3707_v44, %v3708_v18 }
 0x113   : > { %9464 = vmatmul.mubr.msk.bf16.gmra.mxu0 %vm653_vm2, %v13794_v3  ;;  %v1375_v11 = vpop.f32.mrf.mxu0  ;;  %v9227_v57 = vpop.f32.mrf.mxu1  ;;  %v3179_v17 = vunpack.c.l.bf16 %v8180_v8  ;;  %v3641_v14 = vunpack.c.l.bf16 %v8221_v30  ;;  %v13796_v19 = vpack.c.bf16 %v11622_v24, %v11613_v59  ;;  %v11762_v38 = vsel %vm1127_vm3, %v3708_v18, %v3710_v23  ;;  %v8770_v30 = vld [vmem:[%s10206_s24 + $0xa8] sm:$0xff]   ;;  %v8183_v23 = vld [vmem:[%s10206_s24 + $0xb0] sm:$0x1] }
 0x114   : > { %9467 = vmatprep.mubr.msk.bf16.mxu0 %vm653_vm2, %v3780_v54  ;;  %v3361_v54 = vpack.c.bf16 %v11735_v12, %v11732_v22  ;;  %v11754_v51 = vadd.f32 %v1362_v31, %v972_v53  ;;  %v993_v33 = vadd.f32 %v9227_v57, %v11460_v16  ;;  %v3290_v55 = vrot.slane %v8634_v63, 1  ;;  %v8222_v18 = vld [vmem:[%s10206_s24 + $0xa8] sm:$0xe] }
 0x115   : > { %v9262_v37 = vpop.f32.mrf.mxu0  ;;  %v984_v44 = vpop.f32.mrf.mxu1  ;;  %v3291_v3 = vrot.slane %v8635_v46, 1  ;;  %v3293_v8 = vrot.slane %v3176_v13, 1  ;;  %v11765_v31 = vsel %vm1127_vm3, %v3712_v32, %v3713_v41  ;;  %v11768_v16 = vsel %vm1127_vm3, %v3713_v41, %v3715_v45 }
 0x116   : > { %9430 = vmatmul.mubr.msk.bf16.gmra.mxu1 %vm653_vm2, %v13795_v0  ;;  %v11771_v10 = vadd.f32 %v9261_v42, %v993_v33  ;;  %v985_v59 = vadd.f32 %v984_v44, %v11478_v5  ;;  %v3295_v53 = vrot.slane %v3177_v15, 1  ;;  %v3296_v57 = vrot.slane %v3178_v43, 1 }
 0x117   : > { %9433 = vmatprep.mubr.msk.bf16.mxu1 %vm653_vm2, %v13796_v19  ;;  %v1378_v24 = vpop.f32.mrf.mxu0  ;;  %v9228_v63 = vpop.f32.mrf.mxu1  ;;  %v3298_v0 = vrot.slane %v3179_v17, 1  ;;  %v3717_v46 = vrot.slane %v3641_v14, 2  ;;  %v3718_v13 = vrot.slane %v3178_v43, 2  ;;  %v3720_v19 = vrot.slane %v3179_v17, 2 }
 0x118   : > { %v11776_v32 = vadd.f32 %v1375_v11, %v985_v59  ;;  %v996_v41 = vadd.f32 %v9228_v63, %v11503_v34  ;;  %v8638_v5 = vunpack.c.l.bf16 %v8770_v30  ;;  %v8639_v42 = vunpack.c.h.bf16 %v8770_v30  ;;  %v8224_v63 = vld [vmem:[%s10206_s24 + $0xc0] sm:$0xe] }
 0x119   : > { %v9265_v45 = vpop.f32.mrf.mxu0  ;;  %v987_v15 = vpop.f32.mrf.mxu1  ;;  %v3783_v43 = vpack.c.bf16 %v11762_v38, %v11752_v60  ;;  %v11787_v11 = vsel %vm522_vm1, %v3290_v55, %v3291_v3  ;;  %v3182_v17 = vunpack.c.l.bf16 %v8183_v23  ;;  %v3642_v34 = vunpack.c.l.bf16 %v8222_v18  ;;  %v8184_v55 = vld [vmem:[%s10206_s24 + $0xb4] sm:$0xff]  }
 0x11a   : > { %v11789_v14 = vadd.f32 %v9262_v37, %v996_v41  ;;  %v988_v49 = vadd.f32 %v987_v15, %v11518_v50  ;;  %v11802_v60 = vsel %vm522_vm1, %v3295_v53, %v3296_v57  ;;  %v11805_v50 = vsel %vm522_vm1, %v3296_v57, %v3298_v0 }
 0x11b   : > { %9468 = vmatmul.mubr.msk.bf16.gmra.mxu0 %vm653_vm2, %v3781_v27  ;;  %v1391_v56 = vpop.f32.mrf.mxu0  ;;  %v11793_v27 = vsel %vm522_vm1, %v3291_v3, %v3293_v8  ;;  %v9231_v33 = vpop.f32.mrf.mxu1  ;;  %v11808_v37 = vsel %vm1127_vm3, %v3717_v46, %v3718_v13  ;;  %v11811_v38 = vsel %vm1127_vm3, %v3718_v13, %v3720_v19  ;;  %v13797_v58 = vpack.c.bf16 %v11685_v26, %v11682_v9 }
 0x11c   : > { %9471 = vmatprep.mubr.msk.bf16.mxu0 %vm653_vm2, %v3782_v20  ;;  %v3784_v20 = vpack.c.bf16 %v11768_v16, %v11765_v31  ;;  %v11814_v44 = vadd.f32 %v1378_v24, %v988_v49  ;;  %v1009_v3 = vadd.f32 %v9231_v33, %v11541_v21  ;;  %v3301_v8 = vrot.slane %v8639_v42, 1  ;;  %v11822_v31 = vld [vmem:[%s10206_s24 + $0xbc] sm:$0x1]  ;;  %v8223_v16 = vld [vmem:[%s10206_s24 + $0xb4] sm:$0xe] }
 0x11d   : > { %v9266_v62 = vpop.f32.mrf.mxu0  ;;  %v1000_v30 = vpop.f32.mrf.mxu1  ;;  %v3303_v59 = vrot.slane %v3182_v17, 1  ;;  %v3722_v24 = vrot.slane %v3642_v34, 2  ;;  %v3723_v53 = vrot.slane %v8639_v42, 2  ;;  %v3725_v57 = vrot.slane %v3182_v17, 2  ;;  %v10024_v34 = vld [vmem:[%s13610_s4 + $0x78] sm:$0xff]  }
 0x11e   : > { %9434 = vmatmul.mubr.msk.bf16.gmra.mxu1 %vm653_vm2, %v3359_v47  ;;  %v3300_v47 = vrot.slane %v8638_v5, 1  ;;  %v11825_v21 = vadd.f32 %v9265_v45, %v1009_v3  ;;  %v1001_v23 = vadd.f32 %v1000_v30, %v11554_v4  ;;  %v3362_v26 = vpack.c.bf16 %v11793_v27, %v11787_v11  ;;  %v8771_v45 = vld [vmem:[%s10206_s24 + $0xc0] sm:$0xff]   ;;  %v8189_v5 = vld [vmem:[%s10206_s24 + $0xc8] sm:$0x1]  ;;  %9487 = vmatprep.subr.bf16.mxu1 %v10024_v34 }
 0x11f   : > { %9437 = vmatprep.mubr.msk.bf16.mxu1 %vm653_vm2, %v13797_v58  ;;  %v1394_v9 = vpop.f32.mrf.mxu0  ;;  %v3363_v18 = vpack.c.bf16 %v11805_v50, %v11802_v60  ;;  %v9232_v0 = vpop.f32.mrf.mxu1  ;;  %v3785_v46 = vpack.c.bf16 %v11811_v38, %v11808_v37  ;;  %v3184_v13 = vunpack.c.h.bf16 %v8184_v55  ;;  %v3185_v19 = vunpack.c.l.bf16 %v11822_v31  ;;  %9488 = vmatpush3.bf16.msra.mxu1 %v10024_v34 }
 0x120   : > { %v3643_v41 = vunpack.c.l.bf16 %v8223_v16  ;;  %v11838_v42 = vadd.f32 %v1391_v56, %v1001_v23  ;;  %v1012_v4 = vadd.f32 %v9232_v0, %v11568_v25  ;;  %v11843_v11 = vsel %vm522_vm1, %v3300_v47, %v3301_v8  ;;  %v8192_v0 = vld [vmem:[%s10206_s24 + $0xd4] sm:$0x1] }
 0x121   : > { %v9269_v15 = vpop.f32.mrf.mxu0  ;;  %v3183_v17 = vunpack.c.l.bf16 %v8184_v55  ;;  %v1003_v49 = vpop.f32.mrf.mxu1  ;;  %v11850_v27 = vsel %vm522_vm1, %v3301_v8, %v3303_v59  ;;  %v3724_v56 = vsel %vm1127_vm3, %v3722_v24, %v3723_v53  ;;  %v3726_v25 = vsel %vm1127_vm3, %v3723_v53, %v3725_v57  ;;  %v8190_v57 = vld [vmem:[%s10206_s24 + $0xcc] sm:$0xff]  }
 0x122   : > { %v3644_v33 = vunpack.c.l.bf16 %v8224_v63  ;;  %v1004_v37 = vadd.f32 %v1003_v49, %v11582_v39  ;;  %v8643_v55 = vunpack.c.h.bf16 %v8771_v45  ;;  %v3188_v3 = vunpack.c.l.bf16 %v8189_v5 }
 0x123   : > { %9472 = vmatmul.mubr.msk.bf16.gmra.mxu0 %vm653_vm2, %v3783_v43  ;;  %v11854_v43 = vadd.f32 %v9266_v62, %v1012_v4  ;;  %v1407_v38 = vpop.f32.mrf.mxu0  ;;  %v9235_v58 = vpop.f32.mrf.mxu1  ;;  %v3727_v47 = vrot.slane %v3643_v41, 2  ;;  %v3728_v62 = vrot.slane %v3184_v13, 2  ;;  %v3730_v8 = vrot.slane %v3185_v19, 2  ;;  %v8225_v41 = vld [vmem:[%s10206_s24 + $0xcc] sm:$0xe] }
 0x124   : > { %9475 = vmatprep.mubr.msk.bf16.mxu0 %vm653_vm2, %v3784_v20  ;;  %v10025_v20 = vld [vmem:[%s13610_s4 + $0x38] sm:$0xff]   ;;  %v8642_v31 = vunpack.c.l.bf16 %v8771_v45  ;;  %v11864_v39 = vadd.f32 %v1394_v9, %v1004_v37  ;;  %v1025_v16 = vadd.f32 %v9235_v58, %v11383_v6  ;;  %v3364_v59 = vpack.c.bf16 %v11850_v27, %v11843_v11  ;;  %v10026_v27 = vld [vmem:[%s13610_s4 + $0x70] sm:$0xff]  }
 0x125   : > { %v9270_v30 = vpop.f32.mrf.mxu0  ;;  %v1016_v22 = vpop.f32.mrf.mxu1  ;;  %v3786_v12 = vpack.c.bf16 %v3726_v25, %v3724_v56  ;;  %v3306_v24 = vrot.slane %v3184_v13, 1  ;;  %v3732_v53 = vrot.slane %v3644_v33, 2  ;;  %9535 = vmatprep.subr.bf16.mxu0 %v10025_v20  ;;  %v3733_v63 = vrot.slane %v8643_v55, 2  ;;  %9489 = vmatprep.subr.bf16.mxu1 %v10026_v27 }
 0x126   : > { %9438 = vmatmul.mubr.msk.bf16.gmra.mxu1 %vm653_vm2, %v3361_v54  ;;  %v3305_v54 = vrot.slane %v3183_v17, 1  ;;  %v11871_v23 = vadd.f32 %v9269_v15, %v1025_v16  ;;  %v1017_v6 = vadd.f32 %v1016_v22, %v11389_v40  ;;  %9536 = vmatpush3.bf16.msra.mxu0 %v10025_v20  ;;  %v3308_v5 = vrot.slane %v3185_v19, 1 }
 0x127   : > { %9441 = vmatprep.mubr.msk.bf16.mxu1 %vm653_vm2, %v3362_v26  ;;  %v11874_v9 = vpop.f32.mrf.mxu0  ;;  %v3735_v26 = vrot.slane %v3188_v3, 2  ;;  %v9236_v45 = vpop.f32.mrf.mxu1  ;;  %v3729_v4 = vsel %vm1127_vm3, %v3727_v47, %v3728_v62  ;;  %v3731_v13 = vsel %vm1127_vm3, %v3728_v62, %v3730_v8  ;;  %v3310_v11 = vrot.slane %v8642_v31, 1  ;;  %9490 = vmatpush3.bf16.msra.mxu1 %v10026_v27 }
 0x128   : > { %v11880_v17 = vadd.f32 %v1407_v38, %v1017_v6  ;;  %v1028_v15 = vadd.f32 %v9236_v45, %v11398_v61  ;;  %v3311_v40 = vrot.slane %v8643_v55, 1  ;;  %v3313_v49 = vrot.slane %v3188_v3, 1  ;;  %v10027_v55 = vld [vmem:[%s13610_s4 + $0x30] sm:$0xff]  }
 0x129   : > { %v9273_v34 = vpop.f32.mrf.mxu0  ;;  %v11887_v56 = vpop.f32.mrf.mxu1  ;;  %v3190_v19 = vunpack.c.h.bf16 %v8190_v57  ;;  %v3191_v25 = vunpack.c.l.bf16 %v8192_v0  ;;  %v3645_v33 = vunpack.c.l.bf16 %v8225_v41  ;;  %v3734_v61 = vsel %vm1127_vm3, %v3732_v53, %v3733_v63  ;;  %9537 = vmatprep.subr.bf16.mxu0 %v10027_v55 }
 0x12a   : > { %v11890_v37 = vadd.f32 %v9270_v30, %v1028_v15  ;;  %v3307_v20 = vsel %vm522_vm1, %v3305_v54, %v3306_v24  ;;  %v3309_v58 = vsel %vm522_vm1, %v3306_v24, %v3308_v5  ;;  %v3787_v47 = vpack.c.bf16 %v3731_v13, %v3729_v4  ;;  %9538 = vmatpush3.bf16.msra.mxu0 %v10027_v55 }
 0x12b   : > { %9476 = vmatmul.mubr.msk.bf16.gmra.mxu0 %vm653_vm2, %v3785_v46  ;;  %v1423_v38 = vpop.f32.mrf.mxu0  ;;  %v3736_v46 = vsel %vm1127_vm3, %v3733_v63, %v3735_v26  ;;  %v9239_v3 = vpop.f32.mrf.mxu1  ;;  %v3189_v62 = vunpack.c.l.bf16 %v8190_v57  ;;  %v3312_v16 = vsel %vm522_vm1, %v3310_v11, %v3311_v40  ;;  %v3314_v30 = vsel %vm522_vm1, %v3311_v40, %v3313_v49  ;;  %v13798_v26 = vld [vmem:[#allocation4_spill] sm:$0xff]  ;;  %v10029_v40 = vld [vmem:[%s13610_s4 + $0x28] sm:$0xff]  }
 0x12c   : > { %9479 = vmatprep.mubr.msk.bf16.mxu0 %vm653_vm2, %v3786_v12  ;;  %v1041_v8 = vadd.f32 %v9239_v3, %v11423_v48  ;;  %v3788_v60 = vpack.c.bf16 %v3736_v46, %v3734_v61  ;;  %v3737_v50 = vrot.slane %v3645_v33, 2  ;;  %v3740_v12 = vrot.slane %v3191_v25, 2  ;;  %9539 = vmatprep.subr.bf16.mxu0 %v10029_v40  ;;  %v13800_v3 = vld [vmem:[#allocation6_spill] sm:$0xff] }
 0x12d   : > { %v9274_v31 = vpop.f32.mrf.mxu0  ;;  %v1032_v22 = vpop.f32.mrf.mxu1  ;;  %v3315_v57 = vrot.slane %v3189_v62, 1  ;;  %v3316_v6 = vrot.slane %v3190_v19, 1  ;;  %v3366_v45 = vpack.c.bf16 %v3314_v30, %v3312_v16  ;;  %v3318_v5 = vrot.slane %v3191_v25, 1 }
 0x12e   : > { %9442 = vmatmul.mubr.msk.bf16.gmra.mxu1 %vm653_vm2, %v3363_v18  ;;  %v3738_v18 = vrot.slane %v3190_v19, 2  ;;  %v11907_v54 = vadd.f32 %v9273_v34, %v1041_v8  ;;  %v1033_v24 = vadd.f32 %v1032_v22, %v11432_v36  ;;  %v10028_v36 = vld [vmem:[%s13610_s4 + $0x68] sm:$0xff]   ;;  %v13799_v19 = vld [vmem:[#allocation7_spill] sm:$0xff]  ;;  %9540 = vmatpush3.bf16.msra.mxu0 %v10029_v40  ;;  %v10030_v22 = vld [vmem:[%s13610_s4 + $0x60] sm:$0xff]  }
 0x12f   : > { %9445 = vmatprep.mubr.msk.bf16.mxu1 %vm653_vm2, %v3364_v59  ;;  %v11910_v53 = vpop.f32.mrf.mxu0  ;;  %v9240_v48 = vpop.f32.mrf.mxu1  ;;  %v3365_v59 = vpack.c.bf16 %v3309_v58, %v3307_v20  ;;  %9491 = vmatprep.subr.bf16.mxu1 %v10028_v36  ;;  %v3317_v27 = vsel %vm522_vm1, %v3315_v57, %v3316_v6  ;;  %v10032_v40 = vld [vmem:[%s13610_s4 + $0x58] sm:$0xff]  }
 0x130   : > { %v11912_v63 = vadd.f32 %v1423_v38, %v1033_v24  ;;  %v1044_v0 = vadd.f32 %v9240_v48, %v13798_v26  ;;  %v3739_v13 = vsel %vm1127_vm3, %v3737_v50, %v3738_v18  ;;  %v3741_v11 = vsel %vm1127_vm3, %v3738_v18, %v3740_v12  ;;  %9492 = vmatpush3.bf16.msra.mxu1 %v10028_v36  ;;  %v10031_v12 = vld [vmem:[%s13610_s4 + $0x20] sm:$0xff]   ;;  %v13802_v48 = vld [vmem:[#allocation11_spill] sm:$0xff] }
 0x131   : > { %v9277_v41 = vpop.f32.mrf.mxu0  ;;  %v11919_v4 = vpop.f32.mrf.mxu1  ;;  %v3319_v38 = vsel %vm522_vm1, %v3316_v6, %v3318_v5  ;;  %v3789_v61 = vpack.c.bf16 %v3741_v11, %v3739_v13  ;;  %9493 = vmatprep.subr.bf16.mxu1 %v10030_v22  ;;  %9541 = vmatprep.subr.bf16.mxu0 %v10031_v12  ;;  %v13804_v13 = vld [vmem:[#allocation12_spill] sm:$0xff] }
 0x132   : > { %v11924_v15 = vadd.f32 %v9274_v31, %v1044_v0  ;;  %v3367_v62 = vpack.c.bf16 %v3319_v38, %v3317_v27  ;;  %v13801_v31 = vld [vmem:[#allocation8_spill] sm:$0xff]  ;;  %9542 = vmatpush3.bf16.msra.mxu0 %v10031_v12  ;;  %v13803_v0 = vld [vmem:[#allocation13_spill] sm:$0xff] }
 0x133   : > { %9480 = vmatmul.mubr.msk.bf16.gmra.mxu0 %vm653_vm2, %v3787_v47  ;;  %v1439_v34 = vpop.f32.mrf.mxu0  ;;  %v9243_v49 = vpop.f32.mrf.mxu1 }
 0x134   : > { %9483 = vmatprep.mubr.msk.bf16.mxu0 %vm653_vm2, %v3788_v60  ;;  %v1057_v25 = vadd.f32 %v9243_v49, %v13799_v19  ;;  %9494 = vmatpush3.bf16.msra.mxu1 %v10030_v22 }
 0x135   : > { %v9278_v33 = vpop.f32.mrf.mxu0  ;;  %v1048_v46 = vpop.f32.mrf.mxu1  ;;  %9495 = vmatprep.subr.bf16.mxu1 %v10032_v40 }
 0x136   : > { %9446 = vmatmul.mubr.msk.bf16.gmra.mxu1 %vm653_vm2, %v3365_v59  ;;  %v11934_v55 = vadd.f32 %v9277_v41, %v1057_v25  ;;  %v1049_v20 = vadd.f32 %v1048_v46, %v13800_v3  ;;  %v10033_v25 = vld [vmem:[%s13610_s4 + $0x18] sm:$0xff]  }
 0x137   : > { %9449 = vmatprep.mubr.msk.bf16.mxu1 %vm653_vm2, %v3366_v45  ;;  %v11937_v58 = vpop.f32.mrf.mxu0  ;;  %v9244_v47 = vpop.f32.mrf.mxu1  ;;  %9543 = vmatprep.subr.bf16.mxu0 %v10033_v25 }
 0x138   : > { %v11939_v8 = vadd.f32 %v1439_v34, %v1049_v20  ;;  %v1060_v16 = vadd.f32 %v9244_v47, %v13801_v31  ;;  %9496 = vmatpush3.bf16.msra.mxu1 %v10032_v40  ;;  %9544 = vmatpush3.bf16.msra.mxu0 %v10033_v25 }
 0x139   : > { %v9281_v30 = vpop.f32.mrf.mxu0  ;;  %v11946_v60 = vpop.f32.mrf.mxu1 }
 0x13a   : > { %v11948_v50 = vadd.f32 %v9278_v33, %v1060_v16 }
 0x13b   : > { %9484 = vmatmul.mubr.msk.bf16.gmra.mxu0 %vm653_vm2, %v3789_v61  ;;  %v1455_v18 = vpop.f32.mrf.mxu0  ;;  %v9247_v24 = vpop.f32.mrf.mxu1 }
 0x13c   : > { %v1073_v59 = vadd.f32 %v9247_v24, %v13802_v48  ;;  %v10121_v24 = vmov 0.0  }
 0x13d   : > { %v9282_v57 = vpop.f32.mrf.mxu0  ;;  %v1064_v6 = vpop.f32.mrf.mxu1  ;;  %4152 = vst [vmem:[#allocation2 + $0x30] sm:$0xff] %v10121_v24  ;;  %4153 = vst [vmem:[#allocation2 + $0x38] sm:$0xff] %v10121_v24 }
 0x13e   : > { %9450 = vmatmul.mubr.msk.bf16.gmra.mxu1 %vm653_vm2, %v3367_v62  ;;  %v11955_v26 = vadd.f32 %v9281_v30, %v1073_v59  ;;  %v1065_v41 = vadd.f32 %v1064_v6, %v13803_v0  ;;  %4146 = vst [vmem:[#allocation2] sm:$0xff] %v10121_v24  ;;  %4147 = vst [vmem:[#allocation2 + $0x8] sm:$0xff] %v10121_v24 }
 0x13f   : > { %v11958_v45 = vpop.f32.mrf.mxu0  ;;  %v9248_v5 = vpop.f32.mrf.mxu1  ;;  %4148 = vst [vmem:[#allocation2 + $0x10] sm:$0x3] %v10121_v24  ;;  %4149 = vst [vmem:[#allocation2 + $0x18] sm:$0xff] %v10121_v24 }
 0x140   : > { %v11960_v36 = vadd.f32 %v1455_v18, %v1065_v41  ;;  %v1076_v11 = vadd.f32 %v9248_v5, %v13804_v13  ;;  %4150 = vst [vmem:[#allocation2 + $0x20] sm:$0xff] %v10121_v24  ;;  %4151 = vst [vmem:[#allocation2 + $0x28] sm:$0x3] %v10121_v24 }
 0x141   : > { %v9321_v34 = vpop.f32.mrf.mxu0  ;;  %v11966_v49 = vpop.f32.mrf.mxu1  ;;  %4154 = vst [vmem:[#allocation2 + $0x40] sm:$0x3] %v10121_v24  ;;  %4155 = vst [vmem:[#allocation2 + $0x48] sm:$0xff] %v10121_v24 }
 0x142   : > { %v11968_v27 = vadd.f32 %v9282_v57, %v1076_v11  ;;  %4156 = vst [vmem:[#allocation2 + $0x50] sm:$0xff] %v10121_v24  ;;  %4157 = vst [vmem:[#allocation2 + $0x58] sm:$0x3] %v10121_v24  ;;  %v10036_v57 = vld [vmem:[%s13610_s4 + $0x48] sm:$0xff]  }
 0x143   : > { %v2188_v19 = vpop.f32.mrf.mxu0  ;;  %v9287_v33 = vpop.f32.mrf.mxu1  ;;  %4158 = vst [vmem:[#allocation2 + $0x60] sm:$0xff] %v10121_v24  ;;  %4159 = vst [vmem:[#allocation2 + $0x68] sm:$0xff] %v10121_v24 }
 0x144   : > { %v1799_v38 = vadd.f32 %v9287_v33, %v11655_v2  ;;  %v10034_v2 = vld [vmem:[%s13610_s4 + $0x50] sm:$0xff]   ;;  %4160 = vst [vmem:[#allocation2 + $0x70] sm:$0x3] %v10121_v24  ;;  %4161 = vst [vmem:[#allocation2 + $0x78] sm:$0xff] %v10121_v24 }
 0x145   : > { %v9322_v61 = vpop.f32.mrf.mxu0  ;;  %v1670_v46 = vpop.f32.mrf.mxu1  ;;  %9497 = vmatprep.subr.bf16.mxu1 %v10034_v2  ;;  %4162 = vst [vmem:[#allocation2 + $0x80] sm:$0xff] %v10121_v24  ;;  %4163 = vst [vmem:[#allocation2 + $0x88] sm:$0x3] %v10121_v24 }
 0x146   : > { %v11974_v3 = vadd.f32 %v9321_v34, %v1799_v38  ;;  %v1797_v20 = vadd.f32 %v1670_v46, %v11667_v7  ;;  %4164 = vst [vmem:[#allocation2 + $0x90] sm:$0xff] %v10121_v24  ;;  %4165 = vst [vmem:[#allocation2 + $0x98] sm:$0xff] %v10121_v24  ;;  %9498 = vmatpush3.bf16.msra.mxu1 %v10034_v2  ;;  %v10035_v34 = vld [vmem:[%s13610_s4 + $0x10] sm:$0xff]  }
 0x147   : > { %v11977_v47 = vpop.f32.mrf.mxu0  ;;  %v9288_v62 = vpop.f32.mrf.mxu1  ;;  %4166 = vst [vmem:[#allocation2 + $0xa0] sm:$0x3] %v10121_v24  ;;  %4167 = vst [vmem:[#allocation2 + $0xa8] sm:$0xff] %v10121_v24  ;;  %9499 = vmatprep.subr.bf16.mxu1 %v10036_v57  ;;  %9545 = vmatprep.subr.bf16.mxu0 %v10035_v34  ;;  %v4298_v38 = vld [vmem:[#allocation2 + $0x9] sm:$0xff] }
 0x148   : > { %v11979_v31 = vadd.f32 %v2188_v19, %v1797_v20  ;;  %v1800_v16 = vadd.f32 %v9288_v62, %v11678_v1  ;;  %4168 = vst [vmem:[#allocation2 + $0xb0] sm:$0xff] %v10121_v24  ;;  %4169 = vst [vmem:[#allocation2 + $0xb8] sm:$0x3] %v10121_v24  ;;  %9546 = vmatpush3.bf16.msra.mxu0 %v10035_v34 }
 0x149   : > { %v11982_v30 = vpop.f32.mrf.mxu0  ;;  %v11987_v22 = vpop.f32.mrf.mxu1  ;;  %4170 = vst [vmem:[#allocation2 + $0xc0] sm:$0xff] %v10121_v24  ;;  %4171 = vst [vmem:[#allocation2 + $0xc8] sm:$0xff] %v10121_v24 }
 0x14a   : > { %v11989_v18 = vadd.f32 %v9322_v61, %v1800_v16  ;;  %4172 = vst [vmem:[#allocation2 + $0xd0] sm:$0x3] %v10121_v24  ;;  %4173 = vst [vmem:[#allocation2 + $0xd8] sm:$0xff] %v10121_v24  ;;  %9500 = vmatpush3.bf16.msra.mxu1 %v10036_v57  ;;  %v10037_v16 = vld [vmem:[%s13610_s4 + $0x8] sm:$0xff]  }
 0x14b   : > { %v11991_v12 = vpop.f32.mrf.mxu0  ;;  %v9291_v7 = vpop.f32.mrf.mxu1  ;;  %4174 = vst [vmem:[#allocation2 + $0xe0] sm:$0xff] %v10121_v24  ;;  %4175 = vst [vmem:[#allocation2 + $0xe8] sm:$0x3] %v10121_v24  ;;  %9547 = vmatprep.subr.bf16.mxu0 %v10037_v16 }
 0x14c   : > { %4176 = vst [vmem:[#allocation2 + $0xf0] sm:$0xff] %v10121_v24  ;;  %4177 = vst [vmem:[#allocation2 + $0xf8] sm:$0xff] %v10121_v24  ;;  %v1803_v1 = vadd.f32 %v9291_v7, %v11713_v52  ;;  %9548 = vmatpush3.bf16.msra.mxu0 %v10037_v16 }
 0x14d   : > { %4178 = vst [vmem:[#allocation2 + $0x100] sm:$0x3] %v10121_v24  ;;  %4179 = vst [vmem:[#allocation2 + $0x108] sm:$0xff] %v10121_v24  ;;  %v9326_v48 = vpop.f32.mrf.mxu0  ;;  %v1686_v59 = vpop.f32.mrf.mxu1 }
 0x14e   : > { %4180 = vst [vmem:[#allocation2 + $0x110] sm:$0xff] %v10121_v24  ;;  %4181 = vst [vmem:[#allocation2 + $0x118] sm:$0x3] %v10121_v24  ;;  %v11998_v6 = vadd.f32 %v11982_v30, %v1803_v1  ;;  %v1801_v0 = vadd.f32 %v1686_v59, %v11724_v29  ;;  %v10038_v29 = vld [vmem:[%s13610_s4 + $0x40] sm:$0xff]  }
 0x14f   : > { %4182 = vst [vmem:[#allocation2 + $0x120] sm:$0xff] %v10121_v24  ;;  %4183 = vst [vmem:[#allocation2 + $0x128] sm:$0xff] %v10121_v24  ;;  %v12001_v41 = vpop.f32.mrf.mxu0  ;;  %v9292_v5 = vpop.f32.mrf.mxu1  ;;  %9501 = vmatprep.subr.bf16.mxu1 %v10038_v29  ;;  %v10039_v59 = vld [vmem:[%s13610_s4] sm:$0xff]  }
 0x150   : > { %4184 = vst [vmem:[#allocation2 + $0x130] sm:$0x3] %v10121_v24  ;;  %4185 = vst [vmem:[#allocation2 + $0x138] sm:$0xff] %v10121_v24  ;;  %v12004_v13 = vadd.f32 %v11991_v12, %v1801_v0  ;;  %v1804_v52 = vadd.f32 %v9292_v5, %v11742_v28  ;;  %v4297_v28 = vld [vmem:[#allocation2 + $0x1] sm:$0xff]  ;;  %9502 = vmatpush3.bf16.msra.mxu1 %v10038_v29  ;;  %9549 = vmatprep.subr.bf16.mxu0 %v10039_v59 }
 0x151   : > { %4186 = vst [vmem:[#allocation2 + $0x140] sm:$0xff] %v10121_v24  ;;  %4187 = vst [vmem:[#allocation2 + $0x148] sm:$0x3] %v10121_v24  ;;  %v12010_v40 = vpop.f32.mrf.mxu1  ;;  %v4329_v20 = vpack.c.bf16 %v4298_v38, %v4297_v28  ;;  %9550 = vmatpush3.bf16.msra.mxu0 %v10039_v59 }
 0x152   : > { %4188 = vst [vmem:[#allocation2 + $0x150] sm:$0xff] %v10121_v24  ;;  %4189 = vst [vmem:[#allocation2 + $0x158] sm:$0xff] %v10121_v24  ;;  %v12015_v19 = vadd.f32 %v9326_v48, %v1804_v52 }
 0x153   : > { %4190 = vst [vmem:[#allocation2 + $0x160] sm:$0x3] %v10121_v24  ;;  %4191 = vst [vmem:[#allocation2 + $0x168] sm:$0xff] %v10121_v24  ;;  %v9329_v11 = vpop.f32.mrf.mxu0  ;;  %v9295_v33 = vpop.f32.mrf.mxu1  ;;  %9503 = vmatprep.mubr.bf16.mxu1 %v4329_v20 }
 0x154   : > { %4192 = vst [vmem:[#allocation2 + $0x170] sm:$0xff] %v10121_v24  ;;  %4193 = vst [vmem:[#allocation2 + $0x178] sm:$0x3] %v10121_v24  ;;  %v1807_v61 = vadd.f32 %v9295_v33, %v11771_v10 }
 0x155   : > { %4194 = vst [vmem:[#allocation2 + $0x180] sm:$0xff] %v10121_v24  ;;  %4195 = vst [vmem:[#allocation2 + $0x188] sm:$0xff] %v10121_v24  ;;  %v2220_v25 = vpop.f32.mrf.mxu0  ;;  %v1702_v62 = vpop.f32.mrf.mxu1 }
 0x156   : > { %4196 = vst [vmem:[#allocation2 + $0x190] sm:$0x3] %v10121_v24  ;;  %4197 = vst [vmem:[#allocation2 + $0x198] sm:$0xff] %v10121_v24  ;;  %v12021_v30 = vadd.f32 %v9329_v11, %v1807_v61  ;;  %v1805_v2 = vadd.f32 %v1702_v62, %v11776_v32 }
 0x157   : > { %4198 = vst [vmem:[#allocation2 + $0x1a0] sm:$0xff] %v10121_v24  ;;  %4199 = vst [vmem:[#allocation2 + $0x1a8] sm:$0x3] %v10121_v24  ;;  %v9330_v46 = vpop.f32.mrf.mxu0  ;;  %v9296_v7 = vpop.f32.mrf.mxu1 }
 0x158   : > { %v12026_v24 = vadd.f32 %v2220_v25, %v1805_v2  ;;  %v1808_v10 = vadd.f32 %v9296_v7, %v11789_v14  ;;  %v10122_v25 = vmov 0.0|0.0  }
 0x159   : > { %v12024_v12 = vpop.f32.mrf.mxu0  ;;  %v12029_v48 = vpop.f32.mrf.mxu1  ;;  %9551 = vmatprep.mubr.bf16.mxu0 %v10122_v25 }
 0x15a   : > { %v12034_v57 = vadd.f32 %v9330_v46, %v1808_v10 }
 0x15b   : > { %v9333_v1 = vpop.f32.mrf.mxu0  ;;  %v9299_v0 = vpop.f32.mrf.mxu1 }
 0x15c   : > { %13805 = vst [vmem:[#allocation4_spill] sm:$0xff] %v12034_v57  ;;  %v1811_v5 = vadd.f32 %v9299_v0, %v11825_v21  ;;  %v13868_v57 = vld [vmem:[#allocation10_spill] sm:$0xff] }
 0x15d   : > { %v2236_v32 = vpop.f32.mrf.mxu0  ;;  %v1718_v11 = vpop.f32.mrf.mxu1 }
 0x15e   : > { %v12037_v34 = vadd.f32 %v9333_v1, %v1811_v5  ;;  %v1809_v14 = vadd.f32 %v1718_v11, %v11838_v42  ;;  %v12061_v5 = vld [vmem:[%s13610_s4 + $0xb8] sm:$0xff]  }
 0x15f   : > { %v9334_v52 = vpop.f32.mrf.mxu0  ;;  %v9300_v33 = vpop.f32.mrf.mxu1  ;;  %13811 = vst [vmem:[#allocation12_spill] sm:$0xff] %v12061_v5  ;;  %9583 = vmatprep.subr.bf16.mxu1 %v12061_v5 }
 0x160   : > { %13806 = vst [vmem:[#allocation7_spill] sm:$0xff] %v12037_v34  ;;  %v12042_v28 = vadd.f32 %v2236_v32, %v1809_v14  ;;  %v1812_v38 = vadd.f32 %v9300_v33, %v11854_v43  ;;  %v12071_v14 = vld [vmem:[%s13610_s4 + $0xf8] sm:$0xff]  }
 0x161   : > { %v12040_v29 = vpop.f32.mrf.mxu0  ;;  %v12045_v46 = vpop.f32.mrf.mxu1  ;;  %13813 = vst [vmem:[#allocation15_spill] sm:$0xff] %v12071_v14  ;;  %9631 = vmatprep.subr.bf16.mxu0 %v12071_v14 }
 0x162   : > { %13807 = vst [vmem:[#allocation6_spill] sm:$0xff] %v12042_v28  ;;  %v12047_v21 = vadd.f32 %v9334_v52, %v1812_v38 }
 0x163   : > { %v9337_v61 = vpop.f32.mrf.mxu0  ;;  %v9303_v62 = vpop.f32.mrf.mxu1 }
 0x164   : > { %13808 = vst [vmem:[#allocation8_spill] sm:$0xff] %v12047_v21  ;;  %v1815_v16 = vadd.f32 %v9303_v62, %v11871_v23 }
 0x165   : > { %v2252_v20 = vpop.f32.mrf.mxu0  ;;  %v1734_v42 = vpop.f32.mrf.mxu1 }
 0x166   : > { %v12050_v7 = vadd.f32 %v9337_v61, %v1815_v16  ;;  %v1813_v10 = vadd.f32 %v1734_v42, %v11880_v17 }
 0x167   : > { %v9338_v2 = vpop.f32.mrf.mxu0  ;;  %v9304_v59 = vpop.f32.mrf.mxu1 }
 0x168   : > { %13809 = vst [vmem:[#allocation11_spill] sm:$0xff] %v12050_v7  ;;  %v12055_v32 = vadd.f32 %v2252_v20, %v1813_v10  ;;  %v1816_v43 = vadd.f32 %v9304_v59, %v11890_v37 }
 0x169   : > { %v12053_v1 = vpop.f32.mrf.mxu0  ;;  %v12063_v23 = vpop.f32.mrf.mxu1 }
 0x16a   : > { %13810 = vst [vmem:[#allocation13_spill] sm:$0xff] %v12055_v32  ;;  %v12065_v52 = vadd.f32 %v9338_v2, %v1816_v43 }
 0x16b   : > { %v9341_v0 = vpop.f32.mrf.mxu0  ;;  %v9307_v17 = vpop.f32.mrf.mxu1 }
 0x16c   : > { %13812 = vst [vmem:[#allocation14_spill] sm:$0xff] %v12065_v52  ;;  %v1819_v37 = vadd.f32 %v9307_v17, %v11907_v54 }
 0x16d   : > { %v2268_v11 = vpop.f32.mrf.mxu0  ;;  %v1750_v33 = vpop.f32.mrf.mxu1 }
 0x16e   : > { %v12075_v38 = vadd.f32 %v9341_v0, %v1819_v37  ;;  %v1817_v61 = vadd.f32 %v1750_v33, %v11912_v63 }
 0x16f   : > { %v9342_v25 = vpop.f32.mrf.mxu0  ;;  %v9308_v62 = vpop.f32.mrf.mxu1 }
 0x170   : > { %13814 = vst [vmem:[#allocation16_spill] sm:$0xff] %v12075_v38  ;;  %v12080_v16 = vadd.f32 %v2268_v11, %v1817_v61  ;;  %v1820_v2 = vadd.f32 %v9308_v62, %v11924_v15 }
 0x171   : > { %v12078_v20 = vpop.f32.mrf.mxu0  ;;  %v12083_v10 = vpop.f32.mrf.mxu1 }
 0x172   : > { %13815 = vst [vmem:[#allocation17_spill] sm:$0xff] %v12080_v16  ;;  %v12085_v59 = vadd.f32 %v9342_v25, %v1820_v2 }
 0x173   : > { %v9345_v42 = vpop.f32.mrf.mxu0  ;;  %v9311_v43 = vpop.f32.mrf.mxu1 }
 0x174   : > { %13816 = vst [vmem:[#allocation18_spill] sm:$0xff] %v12085_v59  ;;  %v1823_v17 = vadd.f32 %v9311_v43, %v11934_v55 }
 0x175   : > { %v2284_v54 = vpop.f32.mrf.mxu0  ;;  %v1766_v37 = vpop.f32.mrf.mxu1 }
 0x176   : > { %v12088_v14 = vadd.f32 %v9345_v42, %v1823_v17  ;;  %v1821_v63 = vadd.f32 %v1766_v37, %v11939_v8 }
 0x177   : > { %v9346_v0 = vpop.f32.mrf.mxu0  ;;  %v9312_v11 = vpop.f32.mrf.mxu1 }
 0x178   : > { %13817 = vst [vmem:[#allocation19_spill] sm:$0xff] %v12088_v14  ;;  %v12093_v61 = vadd.f32 %v2284_v54, %v1821_v63  ;;  %v1824_v15 = vadd.f32 %v9312_v11, %v11948_v50 }
 0x179   : > { %v12091_v33 = vpop.f32.mrf.mxu0  ;;  %v12096_v25 = vpop.f32.mrf.mxu1 }
 0x17a   : > { %13818 = vst [vmem:[#allocation20_spill] sm:$0xff] %v12093_v61  ;;  %v12098_v2 = vadd.f32 %v9346_v0, %v1824_v15 }
 0x17b   : > { %v9349_v62 = vpop.f32.mrf.mxu0  ;;  %v9315_v55 = vpop.f32.mrf.mxu1 }
 0x17c   : > { %13819 = vst [vmem:[#allocation21_spill] sm:$0xff] %v12098_v2  ;;  %v1827_v43 = vadd.f32 %v9315_v55, %v11955_v26 }
 0x17d   : > { %v2300_v59 = vpop.f32.mrf.mxu0  ;;  %v1782_v17 = vpop.f32.mrf.mxu1 }
 0x17e   : > { %v12101_v14 = vadd.f32 %v9349_v62, %v1827_v43  ;;  %v1825_v8 = vadd.f32 %v1782_v17, %v11960_v36 }
 0x17f   : > { %v9350_v42 = vpop.f32.mrf.mxu0  ;;  %v9316_v54 = vpop.f32.mrf.mxu1 }
 0x180   : > { %13820 = vst [vmem:[#allocation22_spill] sm:$0xff] %v12101_v14  ;;  %v12106_v63 = vadd.f32 %v2300_v59, %v1825_v8  ;;  %v1828_v50 = vadd.f32 %v9316_v54, %v11968_v27 }
 0x181   : > { %v12104_v37 = vpop.f32.mrf.mxu0  ;;  %v12111_v0 = vpop.f32.mrf.mxu1 }
 0x182   : > { %13821 = vst [vmem:[#allocation23_spill] sm:$0xff] %v12106_v63  ;;  %v12113_v15 = vadd.f32 %v9350_v42, %v1828_v50 }
 0x183   : > { %v12109_v11 = vpop.f32.mrf.mxu0  ;;  %v12117_v55 = vpop.f32.mrf.mxu1 }
 0x184   : > { %13822 = vst [vmem:[#allocation24_spill] sm:$0xff] %v12113_v15 }
 0x185   : > { %v12115_v26 = vpop.f32.mrf.mxu0  ;;  %v12121_v36 = vpop.f32.mrf.mxu1 }
 0x187   : > { %v12119_v62 = vpop.f32.mrf.mxu0  ;;  %v12125_v59 = vpop.f32.mrf.mxu1 }
 0x189   : > { %v12123_v43 = vpop.f32.mrf.mxu0  ;;  %v12129_v27 = vpop.f32.mrf.mxu1 }
 0x18b   : > { %v12127_v17 = vpop.f32.mrf.mxu0  ;;  %v12133_v42 = vpop.f32.mrf.mxu1 }
 0x18d   : > { %v12131_v8 = vpop.f32.mrf.mxu0  ;;  %v12137_v50 = vpop.f32.mrf.mxu1 }
 0x18f   : > { %v12135_v54 = vpop.f32.mrf.mxu0  ;;  %v12141_v63 = vpop.f32.mrf.mxu1 }
 0x190   : > { %13823 = vst [vmem:[#allocation25_spill] sm:$0xff] %v12135_v54 }
 0x191   : > { %v12139_v15 = vpop.f32.mrf.mxu0  ;;  %v12145_v2 = vpop.f32.mrf.mxu1 }
 0x192   : > { %13824 = vst [vmem:[#allocation26_spill] sm:$0xff] %v12139_v15 }
 0x193   : > { %v12143_v14 = vpop.f32.mrf.mxu0  ;;  %v12149_v16 = vpop.f32.mrf.mxu1 }
 0x194   : > { %13825 = vst [vmem:[#allocation27_spill] sm:$0xff] %v12143_v14 }
 0x195   : > { %v12147_v61 = vpop.f32.mrf.mxu0  ;;  %v12153_v52 = vpop.f32.mrf.mxu1 }
 0x196   : > { %13826 = vst [vmem:[#allocation28_spill] sm:$0xff] %v12147_v61 }
 0x197   : > { %v12151_v38 = vpop.f32.mrf.mxu0  ;;  %v12157_v32 = vpop.f32.mrf.mxu1 }
 0x198   : > { %13827 = vst [vmem:[#allocation29_spill] sm:$0xff] %v12151_v38  ;;  %13829 = vst [vmem:[#allocation31_spill] sm:$0xff] %v12157_v32 }
 0x199   : > { %v12155_v5 = vpop.f32.mrf.mxu0  ;;  %v12161_v21 = vpop.f32.mrf.mxu1 }
 0x19a   : > { %13828 = vst [vmem:[#allocation30_spill] sm:$0xff] %v12155_v5  ;;  %13831 = vst [vmem:[#allocation33_spill] sm:$0xff] %v12161_v21 }
 0x19b   : > { %v12159_v7 = vpop.f32.mrf.mxu0  ;;  %v12165_v34 = vpop.f32.mrf.mxu1 }
 0x19c   : > { %13830 = vst [vmem:[#allocation32_spill] sm:$0xff] %v12159_v7  ;;  %13833 = vst [vmem:[#allocation35_spill] sm:$0xff] %v12165_v34 }
 0x19d   : > { %v12163_v28 = vpop.f32.mrf.mxu0  ;;  %v12169_v61 = vpop.f32.mrf.mxu1 }
 0x19e   : > { %13832 = vst [vmem:[#allocation34_spill] sm:$0xff] %v12163_v28  ;;  %13835 = vst [vmem:[#allocation37_spill] sm:$0xff] %v12169_v61 }
 0x19f   : > { %v12167_v14 = vpop.f32.mrf.mxu0  ;;  %v12173_v38 = vpop.f32.mrf.mxu1 }
 0x1a0   : > { %13834 = vst [vmem:[#allocation36_spill] sm:$0xff] %v12167_v14  ;;  %13837 = vst [vmem:[#allocation39_spill] sm:$0xff] %v12173_v38 }
 0x1a1   : > { %v12171_v15 = vpop.f32.mrf.mxu0  ;;  %v12177_v5 = vpop.f32.mrf.mxu1 }
 0x1a2   : > { %13836 = vst [vmem:[#allocation38_spill] sm:$0xff] %v12171_v15  ;;  %13839 = vst [vmem:[#allocation41_spill] sm:$0xff] %v12177_v5 }
 0x1a3   : > { %v12175_v54 = vpop.f32.mrf.mxu0  ;;  %v12181_v7 = vpop.f32.mrf.mxu1 }
 0x1a4   : > { %13838 = vst [vmem:[#allocation40_spill] sm:$0xff] %v12175_v54  ;;  %13841 = vst [vmem:[#allocation43_spill] sm:$0xff] %v12181_v7 }
 0x1a5   : > { %v12179_v32 = vpop.f32.mrf.mxu0  ;;  %v12185_v28 = vpop.f32.mrf.mxu1 }
 0x1a6   : > { %13840 = vst [vmem:[#allocation42_spill] sm:$0xff] %v12179_v32  ;;  %13843 = vst [vmem:[#allocation45_spill] sm:$0xff] %v12185_v28 }
 0x1a7   : > { %v12183_v21 = vpop.f32.mrf.mxu0  ;;  %v12189_v14 = vpop.f32.mrf.mxu1 }
 0x1a8   : > { %13842 = vst [vmem:[#allocation44_spill] sm:$0xff] %v12183_v21  ;;  %13845 = vst [vmem:[#allocation47_spill] sm:$0xff] %v12189_v14 }
 0x1a9   : > { %v12187_v34 = vpop.f32.mrf.mxu0  ;;  %v12193_v15 = vpop.f32.mrf.mxu1 }
 0x1aa   : > { %13844 = vst [vmem:[#allocation46_spill] sm:$0xff] %v12187_v34  ;;  %13847 = vst [vmem:[#allocation49_spill] sm:$0xff] %v12193_v15 }
 0x1ab   : > { %v12191_v61 = vpop.f32.mrf.mxu0  ;;  %v12197_v54 = vpop.f32.mrf.mxu1 }
 0x1ac   : > { %13846 = vst [vmem:[#allocation48_spill] sm:$0xff] %v12191_v61  ;;  %13849 = vst [vmem:[#allocation51_spill] sm:$0xff] %v12197_v54 }
 0x1ad   : > { %v12195_v38 = vpop.f32.mrf.mxu0  ;;  %v12201_v32 = vpop.f32.mrf.mxu1 }
 0x1ae   : > { %13848 = vst [vmem:[#allocation50_spill] sm:$0xff] %v12195_v38  ;;  %13851 = vst [vmem:[#allocation53_spill] sm:$0xff] %v12201_v32 }
 0x1af   : > { %v12199_v5 = vpop.f32.mrf.mxu0  ;;  %v12205_v21 = vpop.f32.mrf.mxu1 }
 0x1b0   : > { %13850 = vst [vmem:[#allocation52_spill] sm:$0xff] %v12199_v5  ;;  %13853 = vst [vmem:[#allocation55_spill] sm:$0xff] %v12205_v21 }
 0x1b1   : > { %v12203_v7 = vpop.f32.mrf.mxu0  ;;  %v12209_v34 = vpop.f32.mrf.mxu1 }
 0x1b2   : > { %13852 = vst [vmem:[#allocation54_spill] sm:$0xff] %v12203_v7  ;;  %13855 = vst [vmem:[#allocation57_spill] sm:$0xff] %v12209_v34  ;;  %v13866_v34 = vld [vmem:[#allocation5_spill] sm:$0xff] }
 0x1b3   : > { %v12207_v28 = vpop.f32.mrf.mxu0  ;;  %v12213_v61 = vpop.f32.mrf.mxu1 }
 0x1b4   : > { %13854 = vst [vmem:[#allocation56_spill] sm:$0xff] %v12207_v28  ;;  %13857 = vst [vmem:[#allocation59_spill] sm:$0xff] %v12213_v61 }
 0x1b5   : > { %v12211_v14 = vpop.f32.mrf.mxu0  ;;  %v12217_v38 = vpop.f32.mrf.mxu1 }
 0x1b6   : > { %13856 = vst [vmem:[#allocation58_spill] sm:$0xff] %v12211_v14  ;;  %13859 = vst [vmem:[#allocation61_spill] sm:$0xff] %v12217_v38  ;;  %v1020_v14 = vadd.f32 %v11887_v56, %v13866_v34 }
 0x1b7   : > { %v12215_v15 = vpop.f32.mrf.mxu0  ;;  %v12221_v5 = vpop.f32.mrf.mxu1 }
 0x1b8   : > { %13858 = vst [vmem:[#allocation60_spill] sm:$0xff] %v12215_v15  ;;  %13861 = vst [vmem:[#allocation63_spill] sm:$0xff] %v12221_v5  ;;  %v13867_v15 = vld [vmem:[#allocation3_spill] sm:$0xff] }
 0x1b9   : > { %v12219_v54 = vpop.f32.mrf.mxu0  ;;  %v12225_v7 = vpop.f32.mrf.mxu1  ;;  %v1036_v38 = vadd.f32 %v11919_v4, %v13867_v15  ;;  %v1487_v4 = vadd.f32 %v11874_v9, %v1020_v14  ;;  %v1810_v9 = vadd.f32 %v12045_v46, %v11864_v39 }
 0x1ba   : > { %13860 = vst [vmem:[#allocation62_spill] sm:$0xff] %v12219_v54  ;;  %13863 = vst [vmem:[#allocation65_spill] sm:$0xff] %v12225_v7  ;;  %v1052_v54 = vadd.f32 %v11946_v60, %v13868_v57  ;;  %v13869_v7 = vld [vmem:[#allocation9_spill] sm:$0xff]  ;;  %v2737_v60 = vadd.f32 %v12121_v36, %v11979_v31  ;;  %v2741_v36 = vadd.f32 %v12137_v50, %v12004_v13 }
 0x1bb   : > { %v12223_v32 = vpop.f32.mrf.mxu0  ;;  %v1068_v56 = vadd.f32 %v11966_v49, %v13869_v7  ;;  %v1491_v15 = vadd.f32 %v11910_v53, %v1036_v38  ;;  %v2740_v53 = vadd.f32 %v12125_v59, %v11989_v18  ;;  %v2744_v13 = vadd.f32 %v12141_v63, %v12015_v19  ;;  %v13871_v19 = vld [vmem:[#allocation31_spill] sm:$0xff] }
 0x1bc   : > { %13862 = vst [vmem:[#allocation64_spill] sm:$0xff] %v12223_v32  ;;  %v1798_v32 = vadd.f32 %v11987_v22, %v11702_v35  ;;  %v1495_v35 = vadd.f32 %v11937_v58, %v1052_v54  ;;  %v1806_v22 = vadd.f32 %v12029_v48, %v11814_v44 }
 0x1bd   : > { %v12227_v21 = vpop.f32.mrf.mxu0  ;;  %v1499_v58 = vadd.f32 %v11958_v45, %v1068_v56  ;;  %v2743_v45 = vadd.f32 %v12133_v42, %v11998_v6 }
 0x1be   : > { %13864 = vst [vmem:[#allocation66_spill] sm:$0xff] %v12227_v21  ;;  %v12229_v28 = vpop.f32.mrf.mxu1  ;;  %v2739_v21 = vadd.f32 %v12117_v55, %v11974_v3  ;;  %v1802_v3 = vadd.f32 %v12010_v40, %v11754_v51  ;;  %v2316_v49 = vadd.f32 %v11977_v47, %v1798_v32  ;;  %v1814_v51 = vadd.f32 %v12063_v23, %v1487_v4  ;;  %v12282_v23 = vld [vmem:[%s13608_s2] ss:$0 sm:$0xff] }
 0x1bf   : > { %13865 = vst [vmem:[#allocation67_spill] sm:$0xff] %v12229_v28  ;;  %v12233_v61 = vpop.f32.mrf.mxu0  ;;  %v1818_v40 = vadd.f32 %v12083_v10, %v1491_v15  ;;  %v1822_v44 = vadd.f32 %v12096_v25, %v1495_v35  ;;  %v3064_v47 = vadd.f32 %v12115_v26, %v2737_v60  ;;  %v2324_v18 = vadd.f32 %v12024_v12, %v1806_v22 }
 0x1c0   : > { %v12239_v5 = vpop.f32.mrf.mxu1  ;;  %v3066_v31 = vadd.f32 %v12109_v11, %v2739_v21  ;;  %v2738_v32 = vadd.f32 %v12129_v27, %v2316_v49  ;;  %v2320_v21 = vadd.f32 %v12001_v41, %v1802_v3  ;;  %v1826_v14 = vadd.f32 %v12111_v0, %v1499_v58  ;;  %v13870_v3 = vld [vmem:[#allocation4_spill] sm:$0xff] }
 0x1c1   : > { %v12245_v28 = vpop.f32.mrf.mxu0  ;;  %v12285_v10 = vadd.f32 %v12040_v29, %v1810_v9  ;;  %v3067_v25 = vadd.f32 %v12119_v62, %v2740_v53  ;;  %v12289_v12 = vadd.f32 %v12053_v1, %v1814_v51  ;;  %v12292_v0 = vadd.f32 %v12078_v20, %v1818_v40  ;;  %v12302_v29 = vld [vmem:[%s13609_s3] ss:$0 sm:$0xff] }
 0x1c2   : > { %v12249_v34 = vpop.f32.mrf.mxu1  ;;  %v12295_v6 = vadd.f32 %v12091_v33, %v1822_v44  ;;  %v3065_v59 = vadd.f32 %v12123_v43, %v2738_v32  ;;  %v12307_v54 = vadd.f32 %v12104_v37, %v1826_v14  ;;  %v3070_v33 = vadd.f32 %v12127_v17, %v2743_v45  ;;  %v13874_v40 = vld [vmem:[#allocation33_spill] sm:$0xff] }
 0x1c3   : > { %v9457_v57 = vpop.f32.mrf.mxu0  ;;  %v2742_v50 = vadd.f32 %v12145_v2, %v2320_v21  ;;  %v3068_v35 = vadd.f32 %v12131_v8, %v2741_v36  ;;  %v2747_v37 = vadd.f32 %v12149_v16, %v12021_v30  ;;  %v2745_v17 = vadd.f32 %v12153_v52, %v12026_v24  ;;  %v13873_v8 = vld [vmem:[#allocation26_spill] sm:$0xff]  ;;  %v13876_v21 = vld [vmem:[#allocation28_spill] sm:$0xff]  ;;  %v13877_v45 = vld [vmem:[#allocation29_spill] sm:$0xff] }
 0x1c4   : > { %v12260_v55 = vpop.f32.mrf.mxu1  ;;  %v2748_v63 = vadd.f32 %v13871_v19, %v13870_v3  ;;  %v2746_v30 = vadd.f32 %v13874_v40, %v2324_v18  ;;  %v13885_v19 = vld [vmem:[#allocation41_spill] sm:$0xff]  ;;  %v13887_v40 = vld [vmem:[#allocation43_spill] sm:$0xff] }
 0x1c5   : > { %v3877_v7 = vpop.f32.mrf.mxu0  ;;  %v3069_v51 = vadd.f32 %v13873_v8, %v2742_v50  ;;  %v3072_v14 = vadd.f32 %v13876_v21, %v2745_v17  ;;  %v13882_v50 = vld [vmem:[#allocation37_spill] sm:$0xff]  ;;  %v13884_v17 = vld [vmem:[#allocation39_spill] sm:$0xff] }
 0x1c6   : > { %v9423_v48 = vpop.f32.mrf.mxu1 }
 0x1c7   : > { %v3584_v39 = vadd.f32 %v9423_v48, %v3066_v31  ;;  %v9458_v46 = vpop.f32.mrf.mxu0 }
 0x1c8   : > { %v3455_v38 = vpop.f32.mrf.mxu1 }
 0x1c9   : > { %v4006_v11 = vadd.f32 %v9457_v57, %v3584_v39  ;;  %v3582_v41 = vadd.f32 %v3455_v38, %v3064_v47  ;;  %v3880_v26 = vpop.f32.mrf.mxu0  ;;  %v13875_v39 = vld [vmem:[#allocation27_spill] sm:$0xff]  ;;  %v3075_v38 = vadd.f32 %v13877_v45, %v2748_v63  ;;  %v2750_v63 = vadd.f32 %v13885_v19, %v12285_v10 }
 0x1ca   : > { %v9424_v62 = vpop.f32.mrf.mxu1 }
 0x1cb   : > { %v4045_v1 = vmul.f32 %v12282_v23, %v4006_v11  ;;  %v4004_v27 = vadd.f32 %v3877_v7, %v3582_v41  ;;  %v3585_v42 = vadd.f32 %v9424_v62, %v3067_v25  ;;  %v9461_v20 = vpop.f32.mrf.mxu0  ;;  %v13872_v7 = vld [vmem:[#allocation25_spill] sm:$0xff] }
 0x1cc   : > { %v3458_v56 = vpop.f32.mrf.mxu1  ;;  %v3071_v58 = vadd.f32 %v13872_v7, %v2744_v13  ;;  %v13881_v13 = vld [vmem:[#allocation6_spill] sm:$0xff] }
 0x1cd   : > { %v4084_v4 = vadd.f32 %v12302_v29, %v4045_v1  ;;  %v4043_v43 = vmul.f32 %v12282_v23, %v4004_v27  ;;  %v4007_v60 = vadd.f32 %v9458_v46, %v3585_v42  ;;  %v3583_v57 = vadd.f32 %v3458_v56, %v3065_v59  ;;  %v3893_v15 = vpop.f32.mrf.mxu0  ;;  %v13878_v59 = vld [vmem:[#allocation30_spill] sm:$0xff]  ;;  %v13879_v27 = vld [vmem:[#allocation7_spill] sm:$0xff] }
 0x1ce   : > { %v9427_v2 = vpop.f32.mrf.mxu1  ;;  %v3074_v46 = vadd.f32 %v13875_v39, %v2747_v37  ;;  %v3073_v1 = vadd.f32 %v13878_v59, %v2746_v30  ;;  %v13880_v42 = vld [vmem:[#allocation35_spill] sm:$0xff]  ;;  %v2749_v56 = vadd.f32 %v13882_v50, %v13881_v13  ;;  %v13883_v37 = vld [vmem:[#allocation8_spill] sm:$0xff] }
 0x1cf   : > { %v4116_v22 = vmax.f32 %v4084_v4, 0.0  ;;  %v4082_v49 = vadd.f32 %v12302_v29, %v4043_v43  ;;  %v4046_v9 = vmul.f32 %v12282_v23, %v4007_v60  ;;  %v4005_v31 = vadd.f32 %v3880_v26, %v3583_v57  ;;  %v9462_v53 = vpop.f32.mrf.mxu0 }
 0x1d0   : > { %v3588_v16 = vadd.f32 %v9427_v2, %v3070_v33  ;;  %v3471_v44 = vpop.f32.mrf.mxu1  ;;  %v2751_v33 = vadd.f32 %v13880_v42, %v13879_v27  ;;  %v2752_v3 = vadd.f32 %v13884_v17, %v13883_v37 }
 0x1d1   : > { %4203 = vst [vmem:[#allocation2 + $0x31] sm:$0xff] %v4116_v22  ;;  %v4114_v24 = vmax.f32 %v4082_v49, 0.0  ;;  %v4085_v52 = vadd.f32 %v12302_v29, %v4046_v9  ;;  %v4044_v48 = vmul.f32 %v12282_v23, %v4005_v31  ;;  %v3586_v47 = vadd.f32 %v3471_v44, %v3068_v35  ;;  %v3896_v32 = vpop.f32.mrf.mxu0  ;;  %v13889_v44 = vld [vmem:[#allocation45_spill] sm:$0xff] }
 0x1d2   : > { %v4010_v25 = vadd.f32 %v9461_v20, %v3588_v16  ;;  %v9428_v11 = vpop.f32.mrf.mxu1  ;;  %v13888_v16 = vld [vmem:[#allocation13_spill] sm:$0xff] }
 0x1d3   : > { %4201 = vst [vmem:[#allocation2 + $0x19] sm:$0xff] %v4114_v24  ;;  %v4117_v18 = vmax.f32 %v4085_v52, 0.0  ;;  %v4083_v41 = vadd.f32 %v12302_v29, %v4044_v48  ;;  %v4008_v26 = vadd.f32 %v3893_v15, %v3586_v47  ;;  %v3589_v36 = vadd.f32 %v9428_v11, %v3071_v58  ;;  %v9465_v62 = vpop.f32.mrf.mxu0 }
 0x1d4   : > { %v4049_v4 = vmul.f32 %v12282_v23, %v4010_v25  ;;  %v3474_v43 = vpop.f32.mrf.mxu1  ;;  %v2753_v52 = vadd.f32 %v13889_v44, %v13888_v16  ;;  %v13890_v25 = vld [vmem:[#allocation32_spill] sm:$0xff] }
 0x1d5   : > { %4204 = vst [vmem:[#allocation2 + $0x39] sm:$0xff] %v4117_v18  ;;  %v4115_v20 = vmax.f32 %v4083_v41, 0.0  ;;  %v4047_v60 = vmul.f32 %v12282_v23, %v4008_v26  ;;  %v4011_v57 = vadd.f32 %v9462_v53, %v3589_v36  ;;  %v3587_v35 = vadd.f32 %v3474_v43, %v3069_v51  ;;  %v3909_v15 = vpop.f32.mrf.mxu0  ;;  %v13886_v51 = vld [vmem:[#allocation11_spill] sm:$0xff]  ;;  %v13892_v26 = vld [vmem:[#allocation36_spill] sm:$0xff] }
 0x1d6   : > { %v4088_v2 = vadd.f32 %v12302_v29, %v4049_v4  ;;  %v9431_v49 = vpop.f32.mrf.mxu1  ;;  %v4331_v9 = vpack.c.bf16 %v4117_v18, %v4116_v22  ;;  %v2755_v30 = vadd.f32 %v13887_v40, %v13886_v51  ;;  %v10042_v22 = vld [vmem:[%s13610_s4 + $0xb0] sm:$0xff]   ;;  %v3078_v11 = vadd.f32 %v13890_v25, %v2751_v33  ;;  %v13891_v18 = vld [vmem:[#allocation34_spill] sm:$0xff]  ;;  %v13893_v4 = vld [vmem:[#allocation12_spill] sm:$0xff] }
 0x1d7   : > { %4202 = vst [vmem:[#allocation2 + $0x21] sm:$0xff] %v4115_v20  ;;  %v12346_v31 = vadd.f32 %v12302_v29, %v4047_v60  ;;  %v4050_v7 = vmul.f32 %v12282_v23, %v4011_v57  ;;  %v4009_v58 = vadd.f32 %v3896_v32, %v3587_v35  ;;  %v3592_v53 = vadd.f32 %v9431_v49, %v3074_v46  ;;  %v9466_v8 = vpop.f32.mrf.mxu0  ;;  %v13894_v33 = vld [vmem:[#allocation38_spill] sm:$0xff]  ;;  %v13895_v43 = vld [vmem:[#allocation40_spill] sm:$0xff] }
 0x1d8   : > { %v4120_v10 = vmax.f32 %v4088_v2, 0.0  ;;  %v3487_v48 = vpop.f32.mrf.mxu1  ;;  %v4330_v47 = vpack.c.bf16 %v4115_v20, %v4114_v24  ;;  %v3076_v41 = vadd.f32 %v13891_v18, %v2749_v56  ;;  %v12362_v36 = vadd.f32 %v13892_v26, %v2752_v3  ;;  %v13897_v49 = vld [vmem:[#allocation14_spill] sm:$0xff]  ;;  %v13900_v26 = vld [vmem:[#allocation44_spill] sm:$0xff] }
 0x1d9   : > { %v4118_v39 = vmax.f32 %v12346_v31, 0.0  ;;  %v4089_v21 = vadd.f32 %v12302_v29, %v4050_v7  ;;  %v4048_v32 = vmul.f32 %v12282_v23, %v4009_v58  ;;  %v4014_v46 = vadd.f32 %v9465_v62, %v3592_v53  ;;  %v3912_v45 = vpop.f32.mrf.mxu0 }
 0x1da   : > { %4207 = vst [vmem:[#allocation2 + $0x61] sm:$0xff] %v4120_v10  ;;  %v3590_v24 = vadd.f32 %v3487_v48, %v3072_v14  ;;  %v9432_v59 = vpop.f32.mrf.mxu1  ;;  %9504 = vmatmul.mubr.bf16.vlgmr.msra.gmra.mxu1 %v4330_v47  ;;  %v12368_v56 = vadd.f32 %v13894_v33, %v2750_v63  ;;  %v12371_v20 = vadd.f32 %v13895_v43, %v2755_v30  ;;  %v13896_v14 = vld [vmem:[#allocation42_spill] sm:$0xff]  ;;  %v4235_v44 = vld [vmem:[#allocation2 + $0x18] sm:$0xff]  ;;  %v4237_v48 = vld [vmem:[#allocation2 + $0x30] sm:$0xff] }
 0x1db   : > { %4205 = vst [vmem:[#allocation2 + $0x49] sm:$0xff] %v4118_v39  ;;  %v4121_v27 = vmax.f32 %v4089_v21, 0.0  ;;  %v4087_v42 = vadd.f32 %v12302_v29, %v4048_v32  ;;  %v4053_v13 = vmul.f32 %v12282_v23, %v4014_v46  ;;  %v3593_v50 = vadd.f32 %v9432_v59, %v3075_v38  ;;  %v9469_v62 = vpop.f32.mrf.mxu0  ;;  %9584 = vmatpush3.bf16.msra.mxu1 %v13893_v4  ;;  %v12379_v38 = vld [vmem:[%s13610_s4 + $0xa8] sm:$0xff]   ;;  %v10043_v46 = vld [vmem:[%s13610_s4 + $0xf0] sm:$0xff]  }
 0x1dc   : > { %9507 = vmatprep.mubr.bf16.mxu1 %v4331_v9  ;;  %v12374_v60 = vadd.f32 %v13896_v14, %v2753_v52  ;;  %v4012_v57 = vadd.f32 %v3909_v15, %v3590_v24  ;;  %v3490_v35 = vpop.f32.mrf.mxu1  ;;  %9585 = vmatprep.subr.bf16.mxu1 %v10042_v22  ;;  %v4238_v2 = vld [vmem:[#allocation2 + $0x38] sm:$0xff]  ;;  %v13898_v9 = vld [vmem:[#allocation47_spill] sm:$0xff]  ;;  %v13899_v15 = vld [vmem:[#allocation49_spill] sm:$0xff] }
 0x1dd   : > { %4208 = vst [vmem:[#allocation2 + $0x69] sm:$0xff] %v4121_v27  ;;  %v4119_v37 = vmax.f32 %v4087_v42, 0.0  ;;  %v12382_v17 = vadd.f32 %v12302_v29, %v4053_v13  ;;  %v4015_v3 = vadd.f32 %v9466_v8, %v3593_v50  ;;  %v3591_v19 = vadd.f32 %v3490_v35, %v3073_v1  ;;  %v3925_v63 = vpop.f32.mrf.mxu0  ;;  %v13901_v59 = vld [vmem:[#allocation46_spill] sm:$0xff]  ;;  %v13903_v42 = vld [vmem:[#allocation51_spill] sm:$0xff] }
 0x1de   : > { %v2756_v31 = vadd.f32 %v13898_v9, %v13897_v49  ;;  %v2754_v7 = vadd.f32 %v13899_v15, %v12289_v12  ;;  %v4051_v58 = vmul.f32 %v12282_v23, %v4012_v57  ;;  %v9435_v53 = vpop.f32.mrf.mxu1  ;;  %v4236_v51 = vld [vmem:[#allocation2 + $0x20] sm:$0xff]  ;;  %v4333_v40 = vpack.c.bf16 %v4121_v27, %v4120_v10  ;;  %v13904_v57 = vld [vmem:[#allocation15_spill] sm:$0xff] }
 0x1df   : > { %4206 = vst [vmem:[#allocation2 + $0x51] sm:$0xff] %v4119_v37  ;;  %v4124_v30 = vmax.f32 %v12382_v17, 0.0  ;;  %v4054_v16 = vmul.f32 %v12282_v23, %v4015_v3  ;;  %v4013_v8 = vadd.f32 %v3912_v45, %v3591_v19  ;;  %v3596_v1 = vadd.f32 %v9435_v53, %v3078_v11  ;;  %v9470_v52 = vpop.f32.mrf.mxu0  ;;  %9586 = vmatpush3.bf16.msra.mxu1 %v10042_v22  ;;  %v13906_v17 = vld [vmem:[#allocation53_spill] sm:$0xff]  ;;  %v13907_v19 = vld [vmem:[#allocation18_spill] sm:$0xff] }
 0x1e0   : > { %v12392_v47 = vadd.f32 %v12302_v29, %v4051_v58  ;;  %v3503_v12 = vpop.f32.mrf.mxu1  ;;  %v12394_v21 = vpack.c.bf16 %v4236_v51, %v4235_v44  ;;  %v12396_v32 = vpack.c.bf16 %v4238_v2, %v4237_v48  ;;  %v4332_v10 = vpack.c.bf16 %v4119_v37, %v4118_v39  ;;  %9587 = vmatprep.subr.bf16.mxu1 %v12379_v38  ;;  %v13902_v39 = vld [vmem:[#allocation16_spill] sm:$0xff]  ;;  %v13905_v37 = vld [vmem:[#allocation17_spill] sm:$0xff]  ;;  %v13908_v2 = vld [vmem:[#allocation55_spill] sm:$0xff] }
 0x1e1   : > { %4211 = vst [vmem:[#allocation2 + $0x91] sm:$0xff] %v4124_v30  ;;  %v4093_v45 = vadd.f32 %v12302_v29, %v4054_v16  ;;  %v4052_v22 = vmul.f32 %v12282_v23, %v4013_v8  ;;  %v4018_v25 = vadd.f32 %v9469_v62, %v3596_v1  ;;  %v3594_v11 = vadd.f32 %v3503_v12, %v3076_v41  ;;  %v3928_v18 = vpop.f32.mrf.mxu0  ;;  %v10046_v41 = vld [vmem:[%s13610_s4 + $0xa0] sm:$0xff]   ;;  %v13910_v8 = vld [vmem:[#allocation19_spill] sm:$0xff] }
 0x1e2   : > { %v12405_v24 = vadd.f32 %v13900_v26, %v2756_v31  ;;  %v12408_v27 = vadd.f32 %v13901_v59, %v2754_v7  ;;  %v2759_v13 = vadd.f32 %v13903_v42, %v13902_v39  ;;  %v4122_v50 = vmax.f32 %v12392_v47, 0.0  ;;  %9552 = vmatmul.mubr.bf16.vlgmr.msra.gmra.mxu0 %v12394_v21  ;;  %v9436_v4 = vpop.f32.mrf.mxu1  ;;  %9508 = vmatmul.mubr.bf16.gmra.mxu1 %v4332_v10  ;;  %v13911_v1 = vld [vmem:[#allocation59_spill] sm:$0xff] }
 0x1e3   : > { %v4125_v62 = vmax.f32 %v4093_v45, 0.0  ;;  %v4091_v33 = vadd.f32 %v12302_v29, %v4052_v22  ;;  %v4057_v43 = vmul.f32 %v12282_v23, %v4018_v25  ;;  %v4016_v14 = vadd.f32 %v3925_v63, %v3594_v11  ;;  %9555 = vmatprep.mubr.bf16.mxu0 %v12396_v32  ;;  %9632 = vmatpush3.bf16.msra.mxu0 %v13904_v57  ;;  %v9473_v35 = vpop.f32.mrf.mxu0  ;;  %v10045_v63 = vld [vmem:[%s13610_s4 + $0xe8] sm:$0xff]  }
 0x1e4   : > { %v2757_v3 = vadd.f32 %v13906_v17, %v13905_v37  ;;  %v2760_v49 = vadd.f32 %v13908_v2, %v13907_v19  ;;  %4209 = vst [vmem:[#allocation2 + $0x79] sm:$0xff] %v4122_v50  ;;  %v3597_v9 = vadd.f32 %v9436_v4, %v12362_v36  ;;  %v3506_v31 = vpop.f32.mrf.mxu1  ;;  %9511 = vmatprep.mubr.bf16.mxu1 %v4333_v40  ;;  %v4242_v16 = vld [vmem:[#allocation2 + $0x68] sm:$0xff]  ;;  %v13909_v36 = vld [vmem:[#allocation57_spill] sm:$0xff] }
 0x1e5   : > { %9633 = vmatprep.subr.bf16.mxu0 %v10043_v46  ;;  %4212 = vst [vmem:[#allocation2 + $0x99] sm:$0xff] %v4125_v62  ;;  %v4123_v15 = vmax.f32 %v4091_v33, 0.0  ;;  %v12430_v7 = vadd.f32 %v12302_v29, %v4057_v43  ;;  %v4055_v58 = vmul.f32 %v12282_v23, %v4016_v14  ;;  %v3595_v53 = vadd.f32 %v3506_v31, %v12368_v56  ;;  %v3941_v51 = vpop.f32.mrf.mxu0  ;;  %v4239_v25 = vld [vmem:[#allocation2 + $0x48] sm:$0xff]  ;;  %v10048_v33 = vld [vmem:[%s13610_s4 + $0x98] sm:$0xff]  }
 0x1e6   : > { %9588 = vmatpush3.bf16.msra.mxu1 %v12379_v38  ;;  %v2758_v40 = vadd.f32 %v13909_v36, %v12292_v0  ;;  %v2763_v44 = vadd.f32 %v13911_v1, %v13910_v8  ;;  %v4019_v48 = vadd.f32 %v9470_v52, %v3597_v9  ;;  %v9439_v47 = vpop.f32.mrf.mxu1  ;;  %v4240_v12 = vld [vmem:[#allocation2 + $0x50] sm:$0xff]  ;;  %v4335_v10 = vpack.c.bf16 %v4125_v62, %v4124_v30  ;;  %v4241_v0 = vld [vmem:[#allocation2 + $0x60] sm:$0xff]  ;;  %v13913_v14 = vld [vmem:[#allocation50_spill] sm:$0xff] }
 0x1e7   : > { %9589 = vmatprep.subr.bf16.mxu1 %v10046_v41  ;;  %4210 = vst [vmem:[#allocation2 + $0x81] sm:$0xff] %v4123_v15  ;;  %v4128_v45 = vmax.f32 %v12430_v7, 0.0  ;;  %v12441_v56 = vadd.f32 %v12302_v29, %v4055_v58  ;;  %v4017_v22 = vadd.f32 %v3928_v18, %v3595_v53  ;;  %v3600_v38 = vadd.f32 %v9439_v47, %v12371_v20  ;;  %v9474_v11 = vpop.f32.mrf.mxu0  ;;  %v13915_v31 = vld [vmem:[#allocation54_spill] sm:$0xff]  ;;  %v13916_v7 = vld [vmem:[#allocation56_spill] sm:$0xff] }
 0x1e8   : > { %9634 = vmatpush3.bf16.msra.mxu0 %v10043_v46  ;;  %v4058_v26 = vmul.f32 %v12282_v23, %v4019_v48  ;;  %v3519_v52 = vpop.f32.mrf.mxu1  ;;  %v12445_v59 = vpack.c.bf16 %v4240_v12, %v4239_v25  ;;  %v12447_v30 = vpack.c.bf16 %v4242_v16, %v4241_v0  ;;  %v4334_v39 = vpack.c.bf16 %v4123_v15, %v4122_v50  ;;  %v10047_v46 = vld [vmem:[%s13610_s4 + $0xe0] sm:$0xff]   ;;  %v13912_v50 = vld [vmem:[#allocation48_spill] sm:$0xff] }
 0x1e9   : > { %9635 = vmatprep.subr.bf16.mxu0 %v10045_v63  ;;  %4215 = vst [vmem:[#allocation2 + $0xc1] sm:$0xff] %v4128_v45  ;;  %v4126_v42 = vmax.f32 %v12441_v56, 0.0  ;;  %v4056_v18 = vmul.f32 %v12282_v23, %v4017_v22  ;;  %v4022_v4 = vadd.f32 %v9473_v35, %v3600_v38  ;;  %v3598_v20 = vadd.f32 %v3519_v52, %v12374_v60  ;;  %v3944_v62 = vpop.f32.mrf.mxu0  ;;  %v13919_v12 = vld [vmem:[#allocation21_spill] sm:$0xff] }
 0x1ea   : > { %9590 = vmatpush3.bf16.msra.mxu1 %v10046_v41  ;;  %v3086_v43 = vadd.f32 %v13912_v50, %v2759_v13  ;;  %v3084_v57 = vadd.f32 %v13913_v14, %v2757_v3  ;;  %v4097_v37 = vadd.f32 %v12302_v29, %v4058_v26  ;;  %9556 = vmatmul.mubr.bf16.gmra.mxu0 %v12445_v59  ;;  %v9440_v35 = vpop.f32.mrf.mxu1  ;;  %v12469_v13 = vld [vmem:[%s13610_s4 + $0x90] sm:$0xff]   ;;  %v13914_v3 = vld [vmem:[#allocation52_spill] sm:$0xff] }
 0x1eb   : > { %9512 = vmatmul.mubr.bf16.gmra.mxu1 %v4334_v39  ;;  %4213 = vst [vmem:[#allocation2 + $0xa9] sm:$0xff] %v4126_v42  ;;  %v4095_v60 = vadd.f32 %v12302_v29, %v4056_v18  ;;  %v4061_v41 = vmul.f32 %v12282_v23, %v4022_v4  ;;  %v4020_v17 = vadd.f32 %v3941_v51, %v3598_v20  ;;  %v9477_v2 = vpop.f32.mrf.mxu0  ;;  %v4243_v39 = vld [vmem:[#allocation2 + $0x78] sm:$0xff]  ;;  %v4245_v4 = vld [vmem:[#allocation2 + $0x90] sm:$0xff] }
 0x1ec   : > { %v3601_v19 = vadd.f32 %v9440_v35, %v12405_v24  ;;  %9559 = vmatprep.mubr.bf16.mxu0 %v12447_v30  ;;  %v3087_v9 = vadd.f32 %v13914_v3, %v2760_v49  ;;  %v12473_v15 = vadd.f32 %v13915_v31, %v2758_v40  ;;  %v12476_v58 = vadd.f32 %v13916_v7, %v2763_v44  ;;  %v3522_v51 = vpop.f32.mrf.mxu1  ;;  %v4246_v48 = vld [vmem:[#allocation2 + $0x98] sm:$0xff]  ;;  %v13918_v44 = vld [vmem:[#allocation61_spill] sm:$0xff] }
 0x1ed   : > { %v4129_v53 = vmax.f32 %v4097_v37, 0.0  ;;  %9515 = vmatprep.mubr.bf16.mxu1 %v4335_v10  ;;  %9636 = vmatpush3.bf16.msra.mxu0 %v10045_v63  ;;  %v4127_v24 = vmax.f32 %v4095_v60, 0.0  ;;  %v12479_v16 = vadd.f32 %v12302_v29, %v4061_v41  ;;  %v4059_v36 = vmul.f32 %v12282_v23, %v4020_v17  ;;  %v3957_v1 = vpop.f32.mrf.mxu0  ;;  %v10049_v49 = vld [vmem:[%s13610_s4 + $0xd8] sm:$0xff]   ;;  %v13920_v63 = vld [vmem:[#allocation63_spill] sm:$0xff]  ;;  %v13921_v41 = vld [vmem:[#allocation58_spill] sm:$0xff] }
 0x1ee   : > { %v4023_v8 = vadd.f32 %v9474_v11, %v3601_v19  ;;  %9637 = vmatprep.subr.bf16.mxu0 %v10047_v46  ;;  %9591 = vmatprep.subr.bf16.mxu1 %v10048_v33  ;;  %v13917_v40 = vld [vmem:[#allocation20_spill] sm:$0xff]  ;;  %v2764_v10 = vadd.f32 %v13920_v63, %v13919_v12  ;;  %v3599_v56 = vadd.f32 %v3522_v51, %v12408_v27  ;;  %v9443_v22 = vpop.f32.mrf.mxu1  ;;  %v4244_v38 = vld [vmem:[#allocation2 + $0x80] sm:$0xff] }
 0x1ef   : > { %v2761_v47 = vadd.f32 %v13918_v44, %v13917_v40  ;;  %4216 = vst [vmem:[#allocation2 + $0xc9] sm:$0xff] %v4129_v53  ;;  %v4337_v25 = vpack.c.bf16 %v4129_v53, %v4128_v45  ;;  %9592 = vmatpush3.bf16.msra.mxu1 %v10048_v33  ;;  %4214 = vst [vmem:[#allocation2 + $0xb1] sm:$0xff] %v4127_v24  ;;  %v4132_v11 = vmax.f32 %v12479_v16, 0.0  ;;  %v9478_v18 = vpop.f32.mrf.mxu0  ;;  %v13922_v19 = vld [vmem:[#allocation60_spill] sm:$0xff] }
 0x1f0   : > { %v12492_v0 = vadd.f32 %v12302_v29, %v4059_v36  ;;  %v4062_v26 = vmul.f32 %v12282_v23, %v4023_v8  ;;  %v3604_v52 = vadd.f32 %v9443_v22, %v3086_v43  ;;  %9593 = vmatprep.subr.bf16.mxu1 %v12469_v13  ;;  %v4021_v20 = vadd.f32 %v3944_v62, %v3599_v56  ;;  %v3535_v27 = vpop.f32.mrf.mxu1  ;;  %v10051_v62 = vld [vmem:[%s13610_s4 + $0xd0] sm:$0xff]   ;;  %v13924_v36 = vld [vmem:[#allocation22_spill] sm:$0xff] }
 0x1f1   : > { %v12496_v50 = vpack.c.bf16 %v4244_v38, %v4243_v39  ;;  %v12498_v45 = vpack.c.bf16 %v4246_v48, %v4245_v4  ;;  %v4336_v33 = vpack.c.bf16 %v4127_v24, %v4126_v42  ;;  %9638 = vmatpush3.bf16.msra.mxu0 %v10047_v46  ;;  %4219 = vst [vmem:[#allocation2 + $0xf1] sm:$0xff] %v4132_v11  ;;  %v3960_v60 = vpop.f32.mrf.mxu0  ;;  %v13923_v24 = vld [vmem:[#allocation65_spill] sm:$0xff]  ;;  %v13925_v8 = vld [vmem:[#allocation67_spill] sm:$0xff] }
 0x1f2   : > { %v4130_v14 = vmax.f32 %v12492_v0, 0.0  ;;  %v4101_v37 = vadd.f32 %v12302_v29, %v4062_v26  ;;  %v4026_v35 = vadd.f32 %v9477_v2, %v3604_v52  ;;  %v3602_v43 = vadd.f32 %v3535_v27, %v3084_v57  ;;  %9639 = vmatprep.subr.bf16.mxu0 %v10049_v49  ;;  %v9444_v46 = vpop.f32.mrf.mxu1  ;;  %v10052_v57 = vld [vmem:[%s13610_s4 + $0x88] sm:$0xff]  }
 0x1f3   : > { %v3088_v17 = vadd.f32 %v13921_v41, %v2761_v47  ;;  %v12507_v3 = vadd.f32 %v13922_v19, %v2764_v10  ;;  %v4060_v42 = vmul.f32 %v12282_v23, %v4021_v20  ;;  %9560 = vmatmul.mubr.bf16.gmra.mxu0 %v12496_v50  ;;  %9516 = vmatmul.mubr.bf16.gmra.mxu1 %v4336_v33  ;;  %v9481_v51 = vpop.f32.mrf.mxu0  ;;  %v4249_v10 = vld [vmem:[#allocation2 + $0xc0] sm:$0xff]  ;;  %v4247_v20 = vld [vmem:[#allocation2 + $0xa8] sm:$0xff] }
 0x1f4   : > { %4217 = vst [vmem:[#allocation2 + $0xd9] sm:$0xff] %v4130_v14  ;;  %v4133_v2 = vmax.f32 %v4101_v37, 0.0  ;;  %v4065_v31 = vmul.f32 %v12282_v23, %v4026_v35  ;;  %v4024_v7 = vadd.f32 %v3957_v1, %v3602_v43  ;;  %v3605_v53 = vadd.f32 %v9444_v46, %v3087_v9  ;;  %9563 = vmatprep.mubr.bf16.mxu0 %v12498_v45  ;;  %v3538_v44 = vpop.f32.mrf.mxu1  ;;  %v10053_v9 = vld [vmem:[%s13610_s4 + $0xc8] sm:$0xff]   ;;  %v13928_v46 = vld [vmem:[#allocation24_spill] sm:$0xff] }
 0x1f5   : > { %9519 = vmatprep.mubr.bf16.mxu1 %v4337_v25  ;;  %v2762_v16 = vadd.f32 %v13923_v24, %v12295_v6  ;;  %v2767_v48 = vadd.f32 %v13925_v8, %v13924_v36  ;;  %v4099_v40 = vadd.f32 %v12302_v29, %v4060_v42  ;;  %9640 = vmatpush3.bf16.msra.mxu0 %v10049_v49  ;;  %v3973_v63 = vpop.f32.mrf.mxu0  ;;  %v13926_v49 = vld [vmem:[#allocation23_spill] sm:$0xff] }
 0x1f6   : > { %9594 = vmatpush3.bf16.msra.mxu1 %v12469_v13  ;;  %4220 = vst [vmem:[#allocation2 + $0xf9] sm:$0xff] %v4133_v2  ;;  %v12526_v1 = vadd.f32 %v12302_v29, %v4065_v31  ;;  %v4063_v47 = vmul.f32 %v12282_v23, %v4024_v7  ;;  %v4027_v6 = vadd.f32 %v9478_v18, %v3605_v53  ;;  %v4250_v56 = vld [vmem:[#allocation2 + $0xc8] sm:$0xff]  ;;  %v10054_v13 = vld [vmem:[%s13610_s4 + $0x80] sm:$0xff]   ;;  %v9447_v25 = vpop.f32.mrf.mxu1  ;;  %v4248_v0 = vld [vmem:[#allocation2 + $0xb0] sm:$0xff] }
 0x1f7   : > { %v3603_v12 = vadd.f32 %v3538_v44, %v12473_v15  ;;  %9641 = vmatprep.subr.bf16.mxu0 %v10051_v62  ;;  %v2765_v22 = vadd.f32 %v12239_v5, %v13926_v49  ;;  %v4131_v38 = vmax.f32 %v4099_v40, 0.0  ;;  %v12535_v26 = vpack.c.bf16 %v4250_v56, %v4249_v10  ;;  %9595 = vmatprep.subr.bf16.mxu1 %v10052_v57  ;;  %v9482_v27 = vpop.f32.mrf.mxu0  ;;  %v13930_v40 = vld [vmem:[#allocation66_spill] sm:$0xff] }
 0x1f8   : > { %v4339_v52 = vpack.c.bf16 %v4133_v2, %v4132_v11  ;;  %v4136_v15 = vmax.f32 %v12526_v1, 0.0  ;;  %v12539_v39 = vadd.f32 %v12302_v29, %v4063_v47  ;;  %v4066_v18 = vmul.f32 %v12282_v23, %v4027_v6  ;;  %v3551_v33 = vpop.f32.mrf.mxu1 }
 0x1f9   : > { %v4025_v4 = vadd.f32 %v3960_v60, %v3603_v12  ;;  %4218 = vst [vmem:[#allocation2 + $0xe1] sm:$0xff] %v4131_v38  ;;  %v3608_v5 = vadd.f32 %v9447_v25, %v12476_v58  ;;  %v12543_v37 = vpack.c.bf16 %v4248_v0, %v4247_v20  ;;  %v4338_v35 = vpack.c.bf16 %v4131_v38, %v4130_v14  ;;  %v3976_v60 = vpop.f32.mrf.mxu0  ;;  %v10055_v58 = vld [vmem:[%s13610_s4 + $0xc0] sm:$0xff]   ;;  %v12554_v14 = vld [vmem:[%s13610_s4 + $0x138] sm:$0xff]  }
 0x1fa   : > { %9642 = vmatpush3.bf16.msra.mxu0 %v10051_v62  ;;  %9596 = vmatpush3.bf16.msra.mxu1 %v10052_v57  ;;  %4223 = vst [vmem:[#allocation2 + $0x121] sm:$0xff] %v4136_v15  ;;  %v4134_v11 = vmax.f32 %v12539_v39, 0.0  ;;  %v4105_v43 = vadd.f32 %v12302_v29, %v4066_v18  ;;  %v3606_v19 = vadd.f32 %v3551_v33, %v3088_v17  ;;  %v13927_v62 = vld [vmem:[#allocation62_spill] sm:$0xff]  ;;  %v9448_v17 = vpop.f32.mrf.mxu1  ;;  %v4253_v18 = vld [vmem:[#allocation2 + $0xf0] sm:$0xff] }
 0x1fb   : > { %v4064_v41 = vmul.f32 %v12282_v23, %v4025_v4  ;;  %9643 = vmatprep.subr.bf16.mxu0 %v10053_v9  ;;  %9597 = vmatprep.subr.bf16.mxu1 %v10054_v13  ;;  %v3089_v42 = vadd.f32 %v13927_v62, %v2762_v16  ;;  %v2768_v57 = vadd.f32 %v12249_v34, %v13928_v46  ;;  %v9485_v36 = vpop.f32.mrf.mxu0  ;;  %v13929_v16 = vld [vmem:[#allocation64_spill] sm:$0xff] }
 0x1fc   : > { %v4030_v2 = vadd.f32 %v9481_v51, %v3608_v5  ;;  %9564 = vmatmul.mubr.bf16.gmra.mxu0 %v12543_v37  ;;  %9520 = vmatmul.mubr.bf16.gmra.mxu1 %v4338_v35  ;;  %4221 = vst [vmem:[#allocation2 + $0x109] sm:$0xff] %v4134_v11  ;;  %v4137_v31 = vmax.f32 %v4105_v43, 0.0  ;;  %v4028_v53 = vadd.f32 %v3973_v63, %v3606_v19  ;;  %v3554_v44 = vpop.f32.mrf.mxu1 }
 0x1fd   : > { %v4103_v7 = vadd.f32 %v12302_v29, %v4064_v41  ;;  %v3609_v24 = vadd.f32 %v9448_v17, %v12507_v3  ;;  %9567 = vmatprep.mubr.bf16.mxu0 %v12535_v26  ;;  %9523 = vmatprep.mubr.bf16.mxu1 %v4339_v52  ;;  %v3094_v8 = vadd.f32 %v13929_v16, %v2767_v48  ;;  %v4254_v3 = vld [vmem:[#allocation2 + $0xf8] sm:$0xff] }
 0x1fe   : > { %v3092_v34 = vadd.f32 %v13930_v40, %v2765_v22  ;;  %v4069_v51 = vmul.f32 %v12282_v23, %v4030_v2  ;;  %9644 = vmatpush3.bf16.msra.mxu0 %v10053_v9  ;;  %9598 = vmatpush3.bf16.msra.mxu1 %v10054_v13  ;;  %4224 = vst [vmem:[#allocation2 + $0x129] sm:$0xff] %v4137_v31  ;;  %v12571_v48 = vld [vmem:[%s13610_s4 + $0x178] sm:$0xff]   ;;  %v9451_v56 = vpop.f32.mrf.mxu1  ;;  %v3989_v13 = vpop.f32.mrf.mxu0 }
 0x1ff   : > { %v4135_v1 = vmax.f32 %v4103_v7, 0.0  ;;  %v4067_v47 = vmul.f32 %v12282_v23, %v4028_v53  ;;  %v4031_v6 = vadd.f32 %v9482_v27, %v3609_v24  ;;  %v3607_v12 = vadd.f32 %v3554_v44, %v3089_v42  ;;  %9645 = vmatprep.subr.bf16.mxu0 %v10055_v58  ;;  %9679 = vmatprep.subr.bf16.mxu1 %v12554_v14  ;;  %v4251_v52 = vld [vmem:[#allocation2 + $0xd8] sm:$0xff] }
 0x200   : > { %v3095_v63 = vadd.f32 %v12233_v61, %v2768_v57  ;;  %v2766_v9 = vadd.f32 %v12260_v55, %v12307_v54  ;;  %v4108_v10 = vadd.f32 %v12302_v29, %v4069_v51  ;;  %v4341_v49 = vpack.c.bf16 %v4137_v31, %v4136_v15  ;;  %v4252_v39 = vld [vmem:[#allocation2 + $0xe0] sm:$0xff]  ;;  %v3567_v61 = vpop.f32.mrf.mxu1  ;;  %v9486_v19 = vpop.f32.mrf.mxu0 }
 0x201   : > { %4222 = vst [vmem:[#allocation2 + $0x111] sm:$0xff] %v4135_v1  ;;  %v4106_v22 = vadd.f32 %v12302_v29, %v4067_v47  ;;  %v4070_v38 = vmul.f32 %v12282_v23, %v4031_v6  ;;  %v4029_v25 = vadd.f32 %v3976_v60, %v3607_v12  ;;  %v3612_v0 = vadd.f32 %v9451_v56, %v3094_v8  ;;  %v4780_v56 = vld [vmem:[#allocation2 + $0x2] sm:$0xff] }
 0x202   : > { %v4140_v4 = vmax.f32 %v4108_v10, 0.0  ;;  %v12579_v20 = vpack.c.bf16 %v4252_v39, %v4251_v52  ;;  %v12581_v55 = vpack.c.bf16 %v4254_v3, %v4253_v18  ;;  %v4340_v54 = vpack.c.bf16 %v4135_v1, %v4134_v11  ;;  %9646 = vmatpush3.bf16.msra.mxu0 %v10055_v58  ;;  %v9452_v41 = vpop.f32.mrf.mxu1  ;;  %v3992_v7 = vpop.f32.mrf.mxu0  ;;  %v4257_v1 = vld [vmem:[#allocation2 + $0x120] sm:$0xff] }
 0x203   : > { %v4138_v27 = vmax.f32 %v4106_v22, 0.0  ;;  %v4109_v15 = vadd.f32 %v12302_v29, %v4070_v38  ;;  %v4068_v5 = vmul.f32 %v12282_v23, %v4029_v25  ;;  %v4034_v33 = vadd.f32 %v9485_v36, %v3612_v0  ;;  %9727 = vmatprep.subr.bf16.mxu0 %v12571_v48  ;;  %v4255_v53 = vld [vmem:[#allocation2 + $0x108] sm:$0xff]  ;;  %v4782_v18 = vld [vmem:[#allocation2 + $0x1a] sm:$0xff] }
 0x204   : > { %v3093_v35 = vadd.f32 %v12245_v28, %v2766_v9  ;;  %4227 = vst [vmem:[#allocation2 + $0x151] sm:$0xff] %v4140_v4  ;;  %v3610_v43 = vadd.f32 %v3567_v61, %v3092_v34  ;;  %9568 = vmatmul.mubr.bf16.gmra.mxu0 %v12579_v20  ;;  %9524 = vmatmul.mubr.bf16.gmra.mxu1 %v4340_v54  ;;  %v3570_v46 = vpop.f32.mrf.mxu1 }
 0x205   : > { %4225 = vst [vmem:[#allocation2 + $0x139] sm:$0xff] %v4138_v27  ;;  %v4141_v11 = vmax.f32 %v4109_v15, 0.0  ;;  %v4107_v60 = vadd.f32 %v12302_v29, %v4068_v5  ;;  %v4073_v58 = vmul.f32 %v12282_v23, %v4034_v33  ;;  %v3613_v62 = vadd.f32 %v9452_v41, %v3095_v63  ;;  %9571 = vmatprep.mubr.bf16.mxu0 %v12581_v55  ;;  %v4258_v36 = vld [vmem:[#allocation2 + $0x128] sm:$0xff]  ;;  %v4784_v15 = vld [vmem:[#allocation2 + $0x32] sm:$0xff]  ;;  %v4785_v5 = vld [vmem:[#allocation2 + $0x3a] sm:$0xff] }
 0x206   : > { %9527 = vmatprep.mubr.bf16.mxu1 %v4341_v49  ;;  %v4032_v42 = vadd.f32 %v3989_v13, %v3610_v43  ;;  %v3611_v17 = vadd.f32 %v3570_v46, %v3093_v35  ;;  %v12605_v3 = vpack.c.bf16 %v4258_v36, %v4257_v1  ;;  %v4781_v13 = vld [vmem:[#allocation2 + $0xa] sm:$0xff]  ;;  %v12631_v43 = vpack.c.bf16 %v4785_v5, %v4784_v15  ;;  %v4795_v36 = vld [vmem:[#allocation2 + $0xb2] sm:$0xff]  ;;  %v10070_v1 = vld [vmem:[%s13610_s4 + $0x100] sm:$0xff]  }
 0x207   : > { %4228 = vst [vmem:[#allocation2 + $0x159] sm:$0xff] %v4141_v11  ;;  %v12591_v28 = vmax.f32 %v4107_v60, 0.0  ;;  %v4112_v57 = vadd.f32 %v12302_v29, %v4073_v58  ;;  %v4035_v2 = vadd.f32 %v9486_v19, %v3613_v62  ;;  %v4343_v16 = vpack.c.bf16 %v4141_v11, %v4140_v4  ;;  %v4783_v4 = vld [vmem:[#allocation2 + $0x22] sm:$0xff]  ;;  %v10058_v35 = vld [vmem:[%s13610_s4 + $0x130] sm:$0xff]  }
 0x208   : > { %v4071_v31 = vmul.f32 %v12282_v23, %v4032_v42  ;;  %v4256_v24 = vld [vmem:[#allocation2 + $0x110] sm:$0xff]  ;;  %v4033_v34 = vadd.f32 %v3992_v7, %v3611_v17  ;;  %v4812_v52 = vpack.c.bf16 %v4781_v13, %v4780_v56  ;;  %v12624_v33 = vpack.c.bf16 %v4783_v4, %v4782_v18  ;;  %v10060_v41 = vld [vmem:[%s13610_s4 + $0x128] sm:$0xff]   ;;  %v10062_v42 = vld [vmem:[%s13610_s4 + $0x120] sm:$0xff]  }
 0x209   : > { %4226 = vst [vmem:[#allocation2 + $0x141] sm:$0xff] %v12591_v28  ;;  %v4144_v8 = vmax.f32 %v4112_v57, 0.0  ;;  %v4074_v40 = vmul.f32 %v12282_v23, %v4035_v2  ;;  %v12597_v51 = vpack.c.bf16 %v4256_v24, %v4255_v53  ;;  %v4342_v47 = vpack.c.bf16 %v12591_v28, %v4138_v27  ;;  %v4786_v19 = vld [vmem:[#allocation2 + $0x4a] sm:$0xff]  ;;  %v4787_v11 = vld [vmem:[#allocation2 + $0x52] sm:$0xff]  ;;  %v4788_v60 = vld [vmem:[#allocation2 + $0x62] sm:$0xff] }
 0x20a   : > { %v4110_v44 = vadd.f32 %v12302_v29, %v4071_v31  ;;  %v4072_v12 = vmul.f32 %v12282_v23, %v4033_v34  ;;  %v4789_v58 = vld [vmem:[#allocation2 + $0x6a] sm:$0xff]  ;;  %v12639_v62 = vpack.c.bf16 %v4787_v11, %v4786_v19  ;;  %v4791_v57 = vld [vmem:[#allocation2 + $0x82] sm:$0xff]  ;;  %v4792_v2 = vld [vmem:[#allocation2 + $0x92] sm:$0xff] }
 0x20b   : > { %4231 = vst [vmem:[#allocation2 + $0x181] sm:$0xff] %v4144_v8  ;;  %v12602_v6 = vadd.f32 %v12302_v29, %v4074_v40  ;;  %v10061_v46 = vld [vmem:[%s13610_s4 + $0x168] sm:$0xff]   ;;  %v4793_v17 = vld [vmem:[#allocation2 + $0x9a] sm:$0xff]  ;;  %v10066_v53 = vld [vmem:[%s13610_s4 + $0x110] sm:$0xff]  }
 0x20c   : > { %v4142_v63 = vmax.f32 %v4110_v44, 0.0  ;;  %9572 = vmatmul.mubr.bf16.gmra.mxu0 %v12597_v51  ;;  %9528 = vmatmul.mubr.bf16.gmra.mxu1 %v4342_v47  ;;  %v4111_v10 = vadd.f32 %v12302_v29, %v4072_v12  ;;  %v4259_v49 = vld [vmem:[#allocation2 + $0x138] sm:$0xff]  ;;  %v4261_v29 = vld [vmem:[#allocation2 + $0x150] sm:$0xff]  ;;  %v10063_v7 = vld [vmem:[%s13610_s4 + $0x160] sm:$0xff]  }
 0x20d   : > { %v4145_v9 = vmax.f32 %v12602_v6, 0.0  ;;  %9575 = vmatprep.mubr.bf16.mxu0 %v12605_v3  ;;  %9531 = vmatprep.mubr.bf16.mxu1 %v4343_v16  ;;  %v4794_v24 = vld [vmem:[#allocation2 + $0xaa] sm:$0xff]  ;;  %v4796_v16 = vld [vmem:[#allocation2 + $0xc2] sm:$0xff]  ;;  %v4798_v47 = vld [vmem:[#allocation2 + $0xda] sm:$0xff] }
 0x20e   : > { %4229 = vst [vmem:[#allocation2 + $0x169] sm:$0xff] %v4142_v63  ;;  %v4143_v23 = vmax.f32 %v4111_v10, 0.0  ;;  %v4262_v38 = vld [vmem:[#allocation2 + $0x158] sm:$0xff]  ;;  %v4797_v8 = vld [vmem:[#allocation2 + $0xca] sm:$0xff]  ;;  %v12677_v40 = vpack.c.bf16 %v4795_v36, %v4794_v24  ;;  %v4799_v12 = vld [vmem:[#allocation2 + $0xe2] sm:$0xff] }
 0x20f   : > { %4232 = vst [vmem:[#allocation2 + $0x189] sm:$0xff] %v4145_v9  ;;  %v12617_v39 = vpack.c.bf16 %v4262_v38, %v4261_v29  ;;  %v12682_v34 = vpack.c.bf16 %v4797_v8, %v4796_v16  ;;  %v10067_v44 = vld [vmem:[%s13610_s4 + $0x150] sm:$0xff]   ;;  %v4801_v10 = vld [vmem:[#allocation2 + $0xfa] sm:$0xff]  ;;  %v12697_v56 = vpack.c.bf16 %v4799_v12, %v4798_v47 }
 0x210   : > { %v4260_v22 = vld [vmem:[#allocation2 + $0x140] sm:$0xff]  ;;  %4230 = vst [vmem:[#allocation2 + $0x171] sm:$0xff] %v4143_v23  ;;  %v12615_v0 = vpack.c.bf16 %v4143_v23, %v4142_v63  ;;  %v4800_v63 = vld [vmem:[#allocation2 + $0xf2] sm:$0xff]  ;;  %v4805_v29 = vld [vmem:[#allocation2 + $0x12a] sm:$0xff] }
 0x211   : > { %v12613_v25 = vpack.c.bf16 %v4260_v22, %v4259_v49  ;;  %v12702_v13 = vpack.c.bf16 %v4801_v10, %v4800_v63  ;;  %v10071_v23 = vld [vmem:[%s13610_s4 + $0x140] sm:$0xff]   ;;  %v4802_v49 = vld [vmem:[#allocation2 + $0x10a] sm:$0xff]  ;;  %v4803_v22 = vld [vmem:[#allocation2 + $0x112] sm:$0xff] }
 0x212   : > { %v10073_v38 = vld [vmem:[%s13610_s4 + $0x1f8] sm:$0xff]   ;;  %v12714_v18 = vpack.c.bf16 %v4803_v22, %v4802_v49  ;;  %v4807_v4 = vld [vmem:[#allocation2 + $0x142] sm:$0xff]  ;;  %v10082_v12 = vld [vmem:[%s13610_s4 + $0x190] sm:$0xff]  }
 0x213   : > { %v5392_v19 = vld [vmem:[#allocation2 + $0x19] sm:$0xff]  ;;  %v5402_v8 = vld [vmem:[#allocation2 + $0x91] sm:$0xff]  ;;  %v5406_v10 = vld [vmem:[#allocation2 + $0xc1] sm:$0xff] }
 0x214   : > { %9576 = vmatmul.mubr.bf16.gmra.mxu0 %v12613_v25  ;;  %9532 = vmatmul.mubr.bf16.gmra.mxu1 %v12615_v0  ;;  %v10078_v36 = vld [vmem:[%s13610_s4 + $0x1a0] sm:$0xff]   ;;  %v10081_v63 = vld [vmem:[%s13610_s4 + $0x1d8] sm:$0xff]   ;;  %v10083_v22 = vld [vmem:[%s13610_s4 + $0x1d0] sm:$0xff]  }
 0x215   : > { %9579 = vmatprep.mubr.bf16.mxu0 %v12617_v39  ;;  %9599 = vmatprep.mubr.bf16.mxu1 %v4812_v52  ;;  %v4263_v61 = vld [vmem:[#allocation2 + $0x168] sm:$0xff]  ;;  %v5403_v16 = vld [vmem:[#allocation2 + $0x99] sm:$0xff]  ;;  %v10089_v6 = vld [vmem:[%s13610_s4 + $0x230] sm:$0xff]  }
 0x216   : > { %v4804_v52 = vld [vmem:[#allocation2 + $0x122] sm:$0xff] }
 0x217   : > { %v4264_v54 = vld [vmem:[#allocation2 + $0x170] sm:$0xff]  ;;  %v10079_v47 = vld [vmem:[%s13610_s4 + $0x1e0] sm:$0xff]  }
 0x218   : > { %v12622_v27 = vpack.c.bf16 %v4264_v54, %v4263_v61  ;;  %v4808_v61 = vld [vmem:[#allocation2 + $0x152] sm:$0xff]  ;;  %v4809_v54 = vld [vmem:[#allocation2 + $0x15a] sm:$0xff] }
 0x219   : > { %v12724_v5 = vpack.c.bf16 %v4809_v54, %v4808_v61  ;;  %v5412_v61 = vld [vmem:[#allocation2 + $0x109] sm:$0xff] }
 0x21c   : > { %9580 = vmatmul.mubr.bf16.gmra.mxu0 %v12622_v27  ;;  %9600 = vmatmul.mubr.bf16.vlgmr.msra.gmra.mxu1 %v12624_v33 }
 0x21d   : > { %9647 = vmatprep.mubr.bf16.mxu0 %v12394_v21  ;;  %9680 = vmatpush3.bf16.msra.mxu1 %v12554_v14  ;;  %v10059_v21 = vld [vmem:[%s13610_s4 + $0x170] sm:$0xff]   ;;  %v12646_v14 = vpack.c.bf16 %v4789_v58, %v4788_v60  ;;  %v5395_v60 = vld [vmem:[#allocation2 + $0x39] sm:$0xff] }
 0x21e   : > { %9603 = vmatprep.mubr.bf16.mxu1 %v12631_v43  ;;  %9681 = vmatprep.subr.bf16.mxu1 %v10058_v35  ;;  %v5116_v58 = vld [vmem:[#allocation2 + $0x180] sm:$0xff] }
 0x221   : > { %9682 = vmatpush3.bf16.msra.mxu1 %v10058_v35  ;;  %v5393_v35 = vld [vmem:[#allocation2 + $0x21] sm:$0xff] }
 0x222   : > { %9683 = vmatprep.subr.bf16.mxu1 %v10060_v41  ;;  %v5424_v11 = vpack.c.bf16 %v5393_v35, %v5392_v19  ;;  %v12822_v35 = vld [vmem:[#allocation2 + $0x139] sm:$0xff] }
 0x223   : > { %v7273_v19 = vld [vmem:[%s13613_s7] sm:$0x3] }
 0x224   : > { %9648 = vmatmul.mubr.bf16.vlgmr.msra.gmra.mxu0 %v12396_v32  ;;  %9604 = vmatmul.mubr.bf16.gmra.mxu1 %v12639_v62  ;;  %v4790_v32 = vld [vmem:[#allocation2 + $0x7a] sm:$0xff] }
 0x225   : > { %9651 = vmatprep.mubr.bf16.mxu0 %v12445_v59  ;;  %9728 = vmatpush3.bf16.msra.mxu0 %v12571_v48  ;;  %v12657_v31 = vpack.c.bf16 %v4791_v57, %v4790_v32  ;;  %v10064_v59 = vld [vmem:[%s13610_s4 + $0x118] sm:$0xff]   ;;  %v12662_v48 = vpack.c.bf16 %v4793_v17, %v4792_v2  ;;  %v10074_v32 = vld [vmem:[%s13610_s4 + $0x1b0] sm:$0xff]   ;;  %v5398_v17 = vld [vmem:[#allocation2 + $0x61] sm:$0xff] }
 0x226   : > { %9607 = vmatprep.mubr.bf16.mxu1 %v12646_v14  ;;  %9729 = vmatprep.subr.bf16.mxu0 %v10059_v21  ;;  %v5396_v57 = vld [vmem:[#allocation2 + $0x49] sm:$0xff] }
 0x227   : > { %9684 = vmatpush3.bf16.msra.mxu1 %v10060_v41  ;;  %v5399_v2 = vld [vmem:[#allocation2 + $0x69] sm:$0xff] }
 0x228   : > { %9685 = vmatprep.subr.bf16.mxu1 %v10062_v42 }
 0x229   : > { %9730 = vmatpush3.bf16.msra.mxu0 %v10059_v21  ;;  %v5397_v21 = vld [vmem:[#allocation2 + $0x51] sm:$0xff] }
 0x22a   : > { %9731 = vmatprep.subr.bf16.mxu0 %v10061_v46 }
 0x22b   : > { %9686 = vmatpush3.bf16.msra.mxu1 %v10062_v42 }
 0x22c   : > { %9652 = vmatmul.mubr.bf16.gmra.mxu0 %v12447_v30  ;;  %9608 = vmatmul.mubr.bf16.gmra.mxu1 %v12657_v31  ;;  %v10065_v30 = vld [vmem:[%s13610_s4 + $0x158] sm:$0xff]  }
 0x22d   : > { %9655 = vmatprep.mubr.bf16.mxu0 %v12496_v50  ;;  %9611 = vmatprep.mubr.bf16.mxu1 %v12662_v48  ;;  %v10068_v50 = vld [vmem:[%s13610_s4 + $0x108] sm:$0xff]  }
 0x22e   : > { %9732 = vmatpush3.bf16.msra.mxu0 %v10061_v46  ;;  %9687 = vmatprep.subr.bf16.mxu1 %v10064_v59 }
 0x22f   : > { %9733 = vmatprep.subr.bf16.mxu0 %v10063_v7  ;;  %9688 = vmatpush3.bf16.msra.mxu1 %v10064_v59  ;;  %v5401_v59 = vld [vmem:[#allocation2 + $0x81] sm:$0xff] }
 0x230   : > { %9689 = vmatprep.subr.bf16.mxu1 %v10066_v53 }
 0x232   : > { %9734 = vmatpush3.bf16.msra.mxu0 %v10063_v7  ;;  %v12751_v7 = vpack.c.bf16 %v5399_v2, %v5398_v17 }
 0x233   : > { %9735 = vmatprep.subr.bf16.mxu0 %v10065_v30  ;;  %9690 = vmatpush3.bf16.msra.mxu1 %v10066_v53  ;;  %v10075_v53 = vld [vmem:[%s13610_s4 + $0x1f0] sm:$0xff]  }
 0x234   : > { %9656 = vmatmul.mubr.bf16.gmra.mxu0 %v12498_v45  ;;  %9612 = vmatmul.mubr.bf16.gmra.mxu1 %v12677_v40  ;;  %v10069_v45 = vld [vmem:[%s13610_s4 + $0x148] sm:$0xff]  }
 0x235   : > { %9659 = vmatprep.mubr.bf16.mxu0 %v12543_v37  ;;  %9615 = vmatprep.mubr.bf16.mxu1 %v12682_v34  ;;  %v10072_v37 = vld [vmem:[%s13610_s4 + $0x1b8] sm:$0xff]  }
 0x236   : > { %9736 = vmatpush3.bf16.msra.mxu0 %v10065_v30  ;;  %9691 = vmatprep.subr.bf16.mxu1 %v10068_v50  ;;  %v10077_v30 = vld [vmem:[%s13610_s4 + $0x1e8] sm:$0xff]  }
 0x237   : > { %9737 = vmatprep.subr.bf16.mxu0 %v10067_v44  ;;  %9692 = vmatpush3.bf16.msra.mxu1 %v10068_v50  ;;  %v12768_v50 = vpack.c.bf16 %v5403_v16, %v5402_v8  ;;  %v7323_v16 = vsel %vm702_vm0, %v7273_v19, 0 }
 0x238   : > { %9693 = vmatprep.subr.bf16.mxu1 %v10070_v1 }
 0x23a   : > { %9738 = vmatpush3.bf16.msra.mxu0 %v10067_v44  ;;  %v5404_v44 = vld [vmem:[#allocation2 + $0xa9] sm:$0xff] }
 0x23b   : > { %9739 = vmatprep.subr.bf16.mxu0 %v10069_v45  ;;  %9694 = vmatpush3.bf16.msra.mxu1 %v10070_v1 }
 0x23c   : > { %9660 = vmatmul.mubr.bf16.gmra.mxu0 %v12535_v26  ;;  %9616 = vmatmul.mubr.bf16.gmra.mxu1 %v12697_v56  ;;  %v12716_v26 = vpack.c.bf16 %v4805_v29, %v4804_v52  ;;  %v5411_v52 = vld [vmem:[#allocation2 + $0xf9] sm:$0xff]  ;;  %v10085_v29 = vld [vmem:[%s13610_s4 + $0x1c8] sm:$0xff]  }
 0x23d   : > { %9663 = vmatprep.mubr.bf16.mxu0 %v12579_v20  ;;  %9619 = vmatprep.mubr.bf16.mxu1 %v12702_v13  ;;  %v4806_v20 = vld [vmem:[#allocation2 + $0x13a] sm:$0xff] }
 0x23e   : > { %9740 = vmatpush3.bf16.msra.mxu0 %v10069_v45  ;;  %9775 = vmatprep.subr.bf16.mxu1 %v10072_v37  ;;  %v12722_v15 = vpack.c.bf16 %v4807_v4, %v4806_v20  ;;  %v5407_v45 = vld [vmem:[#allocation2 + $0xc9] sm:$0xff]  ;;  %v5410_v20 = vld [vmem:[#allocation2 + $0xf1] sm:$0xff] }
 0x23f   : > { %9741 = vmatprep.subr.bf16.mxu0 %v10071_v23  ;;  %v12808_v4 = vpack.c.bf16 %v5411_v52, %v5410_v20 }
 0x242   : > { %9742 = vmatpush3.bf16.msra.mxu0 %v10071_v23  ;;  %v5408_v23 = vld [vmem:[#allocation2 + $0xd9] sm:$0xff] }
 0x243   : > { %9823 = vmatprep.subr.bf16.mxu0 %v10073_v38 }
 0x244   : > { %9664 = vmatmul.mubr.bf16.gmra.mxu0 %v12581_v55  ;;  %9620 = vmatmul.mubr.bf16.gmra.mxu1 %v12714_v18  ;;  %v4810_v55 = vld [vmem:[#allocation2 + $0x16a] sm:$0xff] }
 0x245   : > { %9667 = vmatprep.mubr.bf16.mxu0 %v12597_v51  ;;  %9623 = vmatprep.mubr.bf16.mxu1 %v12716_v26  ;;  %v4811_v51 = vld [vmem:[#allocation2 + $0x172] sm:$0xff] }
 0x246   : > { %v12730_v41 = vpack.c.bf16 %v4811_v51, %v4810_v55  ;;  %v10087_v55 = vld [vmem:[%s13610_s4 + $0x1c0] sm:$0xff]   ;;  %v5415_v51 = vld [vmem:[#allocation2 + $0x129] sm:$0xff] }
 0x24c   : > { %9668 = vmatmul.mubr.bf16.gmra.mxu0 %v12605_v3  ;;  %9624 = vmatmul.mubr.bf16.gmra.mxu1 %v12722_v15  ;;  %v5117_v3 = vld [vmem:[#allocation2 + $0x188] sm:$0xff] }
 0x24d   : > { %9671 = vmatprep.mubr.bf16.mxu0 %v12613_v25  ;;  %9627 = vmatprep.mubr.bf16.mxu1 %v12724_v5  ;;  %v5394_v25 = vld [vmem:[#allocation2 + $0x31] sm:$0xff]  ;;  %v12735_v42 = vpack.c.bf16 %v5117_v3, %v5116_v58 }
 0x24e   : > { %v12737_v46 = vpack.c.bf16 %v5395_v60, %v5394_v25  ;;  %v5418_v60 = vld [vmem:[#allocation2 + $0x151] sm:$0xff] }
 0x24f   : > { %v6005_v25 = vld [vmem:[#allocation2 + $0x30] sm:$0xff] }
 0x254   : > { %9672 = vmatmul.mubr.bf16.gmra.mxu0 %v12617_v39  ;;  %9628 = vmatmul.mubr.bf16.gmra.mxu1 %v12730_v41  ;;  %v12744_v39 = vpack.c.bf16 %v5397_v21, %v5396_v57  ;;  %v6007_v57 = vld [vmem:[#allocation2 + $0x48] sm:$0xff] }
 0x255   : > { %9675 = vmatprep.mubr.bf16.mxu0 %v12622_v27  ;;  %9695 = vmatprep.mubr.bf16.mxu1 %v5424_v11  ;;  %v10076_v27 = vld [vmem:[%s13610_s4 + $0x1a8] sm:$0xff]  }
 0x256   : > { %v5414_v11 = vld [vmem:[#allocation2 + $0x121] sm:$0xff] }
 0x257   : > { %v12827_v3 = vpack.c.bf16 %v5415_v51, %v5414_v11  ;;  %v10093_v51 = vld [vmem:[%s13610_s4 + $0x210] sm:$0xff]  }
 0x25c   : > { %9676 = vmatmul.mubr.bf16.gmra.mxu0 %v12735_v42  ;;  %9696 = vmatmul.mubr.bf16.vlgmr.msra.gmra.mxu1 %v12737_v46 }
 0x25d   : > { %9743 = vmatprep.mubr.bf16.mxu0 %v12624_v33  ;;  %9776 = vmatpush3.bf16.msra.mxu1 %v10072_v37  ;;  %v5400_v33 = vld [vmem:[#allocation2 + $0x79] sm:$0xff]  ;;  %v12788_v37 = vpack.c.bf16 %v5407_v45, %v5406_v10 }
 0x25e   : > { %9699 = vmatprep.mubr.bf16.mxu1 %v12744_v39  ;;  %9777 = vmatprep.subr.bf16.mxu1 %v10074_v32  ;;  %v12758_v24 = vpack.c.bf16 %v5401_v59, %v5400_v33  ;;  %v10090_v59 = vld [vmem:[%s13610_s4 + $0x228] sm:$0xff]  }
 0x261   : > { %9778 = vmatpush3.bf16.msra.mxu1 %v10074_v32  ;;  %v5729_v32 = vld [vmem:[#allocation2 + $0x18a] sm:$0xff] }
 0x262   : > { %9779 = vmatprep.subr.bf16.mxu1 %v10076_v27 }
 0x264   : > { %9744 = vmatmul.mubr.bf16.vlgmr.msra.gmra.mxu0 %v12631_v43  ;;  %9700 = vmatmul.mubr.bf16.gmra.mxu1 %v12751_v7  ;;  %v5405_v43 = vld [vmem:[#allocation2 + $0xb1] sm:$0xff] }
 0x265   : > { %9747 = vmatprep.mubr.bf16.mxu0 %v12639_v62  ;;  %9824 = vmatpush3.bf16.msra.mxu0 %v10073_v38  ;;  %v10080_v62 = vld [vmem:[%s13610_s4 + $0x198] sm:$0xff]   ;;  %v12773_v1 = vpack.c.bf16 %v5405_v43, %v5404_v44  ;;  %v10086_v38 = vld [vmem:[%s13610_s4 + $0x180] sm:$0xff]   ;;  %v6013_v44 = vld [vmem:[#allocation2 + $0x90] sm:$0xff] }
 0x266   : > { %9703 = vmatprep.mubr.bf16.mxu1 %v12758_v24  ;;  %9825 = vmatprep.subr.bf16.mxu0 %v10075_v53 }
 0x267   : > { %9780 = vmatpush3.bf16.msra.mxu1 %v10076_v27 }
 0x268   : > { %9781 = vmatprep.subr.bf16.mxu1 %v10078_v36 }
 0x269   : > { %9826 = vmatpush3.bf16.msra.mxu0 %v10075_v53  ;;  %v6012_v53 = vld [vmem:[#allocation2 + $0x80] sm:$0xff] }
 0x26a   : > { %9827 = vmatprep.subr.bf16.mxu0 %v10077_v30 }
 0x26b   : > { %9782 = vmatpush3.bf16.msra.mxu1 %v10078_v36  ;;  %v6011_v36 = vld [vmem:[#allocation2 + $0x78] sm:$0xff] }
 0x26c   : > { %9748 = vmatmul.mubr.bf16.gmra.mxu0 %v12646_v14  ;;  %9704 = vmatmul.mubr.bf16.gmra.mxu1 %v12768_v50  ;;  %v5409_v14 = vld [vmem:[#allocation2 + $0xe1] sm:$0xff]  ;;  %v6040_v8 = vpack.c.bf16 %v6012_v53, %v6011_v36  ;;  %v6024_v36 = vld [vmem:[#allocation2 + $0x110] sm:$0xff] }
 0x26d   : > { %9751 = vmatprep.mubr.bf16.mxu0 %v12657_v31  ;;  %9707 = vmatprep.mubr.bf16.mxu1 %v12773_v1  ;;  %v10084_v31 = vld [vmem:[%s13610_s4 + $0x188] sm:$0xff]   ;;  %v12793_v49 = vpack.c.bf16 %v5409_v14, %v5408_v23  ;;  %v6016_v23 = vld [vmem:[#allocation2 + $0xb0] sm:$0xff] }
 0x26e   : > { %9828 = vmatpush3.bf16.msra.mxu0 %v10077_v30  ;;  %9783 = vmatprep.subr.bf16.mxu1 %v10080_v62  ;;  %v6014_v30 = vld [vmem:[#allocation2 + $0x98] sm:$0xff] }
 0x26f   : > { %9829 = vmatprep.subr.bf16.mxu0 %v10079_v47  ;;  %9784 = vmatpush3.bf16.msra.mxu1 %v10080_v62 }
 0x270   : > { %9785 = vmatprep.subr.bf16.mxu1 %v10082_v12 }
 0x272   : > { %9830 = vmatpush3.bf16.msra.mxu0 %v10079_v47 }
 0x273   : > { %9831 = vmatprep.subr.bf16.mxu0 %v10081_v63  ;;  %9786 = vmatpush3.bf16.msra.mxu1 %v10082_v12  ;;  %v6041_v12 = vpack.c.bf16 %v6014_v30, %v6013_v44 }
 0x274   : > { %9752 = vmatmul.mubr.bf16.gmra.mxu0 %v12662_v48  ;;  %9708 = vmatmul.mubr.bf16.gmra.mxu1 %v12788_v37  ;;  %v5413_v48 = vld [vmem:[#allocation2 + $0x111] sm:$0xff] }
 0x275   : > { %9755 = vmatprep.mubr.bf16.mxu0 %v12677_v40  ;;  %9711 = vmatprep.mubr.bf16.mxu1 %v12793_v49  ;;  %v10088_v40 = vld [vmem:[%s13610_s4 + $0x238] sm:$0xff]   ;;  %v12813_v54 = vpack.c.bf16 %v5413_v48, %v5412_v61  ;;  %v6017_v61 = vld [vmem:[#allocation2 + $0xc0] sm:$0xff] }
 0x276   : > { %9832 = vmatpush3.bf16.msra.mxu0 %v10081_v63  ;;  %9787 = vmatprep.subr.bf16.mxu1 %v10084_v31 }
 0x277   : > { %9833 = vmatprep.subr.bf16.mxu0 %v10083_v22  ;;  %9788 = vmatpush3.bf16.msra.mxu1 %v10084_v31 }
 0x278   : > { %9789 = vmatprep.subr.bf16.mxu1 %v10086_v38 }
 0x27a   : > { %9834 = vmatpush3.bf16.msra.mxu0 %v10083_v22 }
 0x27b   : > { %9835 = vmatprep.subr.bf16.mxu0 %v10085_v29  ;;  %9790 = vmatpush3.bf16.msra.mxu1 %v10086_v38  ;;  %v6018_v38 = vld [vmem:[#allocation2 + $0xc8] sm:$0xff] }
 0x27c   : > { %9756 = vmatmul.mubr.bf16.gmra.mxu0 %v12682_v34  ;;  %9712 = vmatmul.mubr.bf16.gmra.mxu1 %v12808_v4  ;;  %v5436_v34 = vpack.c.bf16 %v12591_v28, %v12822_v35  ;;  %v12841_v28 = vld [vmem:[#allocation2 + $0x181] sm:$0xff] }
 0x27d   : > { %9759 = vmatprep.mubr.bf16.mxu0 %v12697_v56  ;;  %9715 = vmatprep.mubr.bf16.mxu1 %v12813_v54  ;;  %v5419_v56 = vld [vmem:[#allocation2 + $0x159] sm:$0xff] }
 0x27e   : > { %9836 = vmatpush3.bf16.msra.mxu0 %v10085_v29  ;;  %9871 = vmatprep.subr.bf16.mxu1 %v10088_v40  ;;  %v12835_v58 = vpack.c.bf16 %v5419_v56, %v5418_v60  ;;  %v6015_v29 = vld [vmem:[#allocation2 + $0xa8] sm:$0xff] }
 0x27f   : > { %9837 = vmatprep.subr.bf16.mxu0 %v10087_v55  ;;  %v6042_v20 = vpack.c.bf16 %v6016_v23, %v6015_v29 }
 0x282   : > { %9838 = vmatpush3.bf16.msra.mxu0 %v10087_v55  ;;  %v6043_v55 = vpack.c.bf16 %v6018_v38, %v6017_v61  ;;  %v6028_v38 = vld [vmem:[#allocation2 + $0x140] sm:$0xff]  ;;  %v6027_v61 = vld [vmem:[#allocation2 + $0x138] sm:$0xff] }
 0x283   : > { %9965 = vmatprep.subr.msk.bf16.mxu0 %vm702_vm0, %v7273_v19 }
 0x284   : > { %9760 = vmatmul.mubr.bf16.gmra.mxu0 %v12702_v13  ;;  %9716 = vmatmul.mubr.bf16.gmra.mxu1 %v12827_v3  ;;  %v6006_v13 = vld [vmem:[#allocation2 + $0x38] sm:$0xff] }
 0x285   : > { %9763 = vmatprep.mubr.bf16.mxu0 %v12714_v18  ;;  %9719 = vmatprep.mubr.bf16.mxu1 %v5436_v34  ;;  %v5439_v18 = vpack.c.bf16 %v4145_v9, %v12841_v28  ;;  %v6037_v21 = vpack.c.bf16 %v6006_v13, %v6005_v25  ;;  %v6009_v9 = vld [vmem:[#allocation2 + $0x60] sm:$0xff]  ;;  %v10094_v25 = vld [vmem:[%s13610_s4 + $0x208] sm:$0xff]  }
 0x28c   : > { %9764 = vmatmul.mubr.bf16.gmra.mxu0 %v12716_v26  ;;  %9720 = vmatmul.mubr.bf16.gmra.mxu1 %v12835_v58  ;;  %v5728_v26 = vld [vmem:[#allocation2 + $0x182] sm:$0xff] }
 0x28d   : > { %9767 = vmatprep.mubr.bf16.mxu0 %v12722_v15  ;;  %9723 = vmatprep.mubr.bf16.mxu1 %v12615_v0  ;;  %v6008_v15 = vld [vmem:[#allocation2 + $0x50] sm:$0xff]  ;;  %v6010_v0 = vld [vmem:[#allocation2 + $0x68] sm:$0xff]  ;;  %v5745_v27 = vpack.c.bf16 %v5729_v32, %v5728_v26  ;;  %v6022_v26 = vld [vmem:[#allocation2 + $0xf8] sm:$0xff] }
 0x28e   : > { %v6038_v2 = vpack.c.bf16 %v6008_v15, %v6007_v57  ;;  %v6019_v15 = vld [vmem:[#allocation2 + $0xd8] sm:$0xff] }
 0x294   : > { %9768 = vmatmul.mubr.bf16.gmra.mxu0 %v12724_v5  ;;  %9724 = vmatmul.mubr.bf16.gmra.mxu1 %v5439_v18  ;;  %v6039_v5 = vpack.c.bf16 %v6010_v0, %v6009_v9  ;;  %v6020_v18 = vld [vmem:[#allocation2 + $0xe0] sm:$0xff] }
 0x295   : > { %9771 = vmatprep.mubr.bf16.mxu0 %v12730_v41  ;;  %9791 = vmatprep.mubr.bf16.mxu1 %v6037_v21  ;;  %v6044_v0 = vpack.c.bf16 %v6020_v18, %v6019_v15  ;;  %v10095_v9 = vld [vmem:[%s13610_s4 + $0x200] sm:$0xff]   ;;  %v6032_v15 = vld [vmem:[#allocation2 + $0x170] sm:$0xff] }
 0x29a   : > { %v9505_v17 = vpop.f32.mrf.mxu1 }
 0x29c   : > { %9772 = vmatmul.mubr.bf16.gmra.mxu0 %v5745_v27  ;;  %9792 = vmatmul.mubr.bf16.vlgmr.msra.gmra.mxu1 %v6038_v2  ;;  %v4444_v41 = vpop.f32.mrf.mxu1  ;;  %v6021_v27 = vld [vmem:[#allocation2 + $0xf0] sm:$0xff] }
 0x29d   : > { %9839 = vmatprep.mubr.bf16.mxu0 %v12737_v46  ;;  %9872 = vmatpush3.bf16.msra.mxu1 %v10088_v40  ;;  %v10091_v46 = vld [vmem:[%s13610_s4 + $0x220] sm:$0xff]  }
 0x29e   : > { %9795 = vmatprep.mubr.bf16.mxu1 %v6039_v5  ;;  %9873 = vmatprep.subr.bf16.mxu1 %v10089_v6  ;;  %v9506_v33 = vpop.f32.mrf.mxu1 }
 0x2a0   : > { %v4447_v43 = vpop.f32.mrf.mxu1 }
 0x2a1   : > { %9874 = vmatpush3.bf16.msra.mxu1 %v10089_v6  ;;  %v6045_v6 = vpack.c.bf16 %v6022_v26, %v6021_v27  ;;  %v6334_v26 = vld [vmem:[#allocation2 + $0x141] sm:$0xff] }
 0x2a2   : > { %9875 = vmatprep.subr.bf16.mxu1 %v10090_v59  ;;  %v9553_v62 = vpop.f32.mrf.mxu0  ;;  %v9509_v47 = vpop.f32.mrf.mxu1 }
 0x2a3   : > { %v12860_v45 = vadd.f32 %v9553_v62, %v9505_v17 }
 0x2a4   : > { %9840 = vmatmul.mubr.bf16.vlgmr.msra.gmra.mxu0 %v12744_v39  ;;  %9796 = vmatmul.mubr.bf16.gmra.mxu1 %v6040_v8  ;;  %v4653_v63 = vpop.f32.mrf.mxu0  ;;  %v4460_v14 = vpop.f32.mrf.mxu1  ;;  %v10092_v39 = vld [vmem:[%s13610_s4 + $0x218] sm:$0xff]  }
 0x2a5   : > { %9843 = vmatprep.mubr.bf16.mxu0 %v12751_v7  ;;  %9920 = vmatpush3.bf16.msra.mxu0 %v7323_v16  ;;  %v12863_v10 = vadd.f32 %v4653_v63, %v4444_v41 }
 0x2a6   : > { %9799 = vmatprep.mubr.bf16.mxu1 %v6041_v12  ;;  %9876 = vmatpush3.bf16.msra.mxu1 %v10090_v59  ;;  %v9554_v31 = vpop.f32.mrf.mxu0  ;;  %v9510_v22 = vpop.f32.mrf.mxu1 }
 0x2a7   : > { %9877 = vmatprep.subr.bf16.mxu1 %v10091_v46  ;;  %v12868_v52 = vadd.f32 %v9554_v31, %v9506_v33 }
 0x2a8   : > { %v4656_v7 = vpop.f32.mrf.mxu0  ;;  %v4463_v48 = vpop.f32.mrf.mxu1 }
 0x2a9   : > { %v12870_v40 = vadd.f32 %v4656_v7, %v4447_v43  ;;  %v6026_v43 = vld [vmem:[#allocation2 + $0x128] sm:$0xff] }
 0x2aa   : > { %9878 = vmatpush3.bf16.msra.mxu1 %v10091_v46  ;;  %v9557_v19 = vpop.f32.mrf.mxu0 }
 0x2ab   : > { %9879 = vmatprep.subr.bf16.mxu1 %v10092_v39  ;;  %v9513_v11 = vpop.f32.mrf.mxu1  ;;  %v12876_v34 = vadd.f32 %v9557_v19, %v9509_v47  ;;  %v6025_v47 = vld [vmem:[#allocation2 + $0x120] sm:$0xff]  ;;  %v6029_v19 = vld [vmem:[#allocation2 + $0x150] sm:$0xff] }
 0x2ac   : > { %9844 = vmatmul.mubr.bf16.gmra.mxu0 %v12758_v24  ;;  %9800 = vmatmul.mubr.bf16.gmra.mxu1 %v6042_v20  ;;  %v4669_v56 = vpop.f32.mrf.mxu0  ;;  %v6047_v12 = vpack.c.bf16 %v6026_v43, %v6025_v47 }
 0x2ad   : > { %9847 = vmatprep.mubr.bf16.mxu0 %v12768_v50  ;;  %9803 = vmatprep.mubr.bf16.mxu1 %v6043_v55  ;;  %v4476_v60 = vpop.f32.mrf.mxu1  ;;  %v12879_v13 = vadd.f32 %v4669_v56, %v4460_v14 }
 0x2ae   : > { %9880 = vmatpush3.bf16.msra.mxu1 %v10092_v39  ;;  %v9558_v21 = vpop.f32.mrf.mxu0 }
 0x2af   : > { %9881 = vmatprep.subr.bf16.mxu1 %v10093_v51  ;;  %v9514_v24 = vpop.f32.mrf.mxu1  ;;  %v12884_v32 = vadd.f32 %v9558_v21, %v9510_v22 }
 0x2b0   : > { %v4672_v57 = vpop.f32.mrf.mxu0 }
 0x2b1   : > { %v4479_v50 = vpop.f32.mrf.mxu1  ;;  %v12886_v2 = vadd.f32 %v4672_v57, %v4463_v48  ;;  %v6030_v48 = vld [vmem:[#allocation2 + $0x158] sm:$0xff] }
 0x2b2   : > { %9882 = vmatpush3.bf16.msra.mxu1 %v10093_v51  ;;  %v6048_v51 = vpack.c.bf16 %v6028_v38, %v6027_v61  ;;  %v6049_v56 = vpack.c.bf16 %v6030_v48, %v6029_v19  ;;  %v6337_v38 = vld [vmem:[#allocation2 + $0x169] sm:$0xff]  ;;  %v8772_v48 = vld [vmem:[%s10206_s24 + $0x18] sm:$0xff]   ;;  %v8452_v19 = vld [vmem:[%s10206_s24 + $0x20] sm:$0x1] }
 0x2b3   : > { %9883 = vmatprep.subr.bf16.mxu1 %v10094_v25  ;;  %v9561_v17 = vpop.f32.mrf.mxu0  ;;  %v9517_v5 = vpop.f32.mrf.mxu1 }
 0x2b4   : > { %9848 = vmatmul.mubr.bf16.gmra.mxu0 %v12773_v1  ;;  %9804 = vmatmul.mubr.bf16.gmra.mxu1 %v6044_v0  ;;  %v12892_v41 = vadd.f32 %v9561_v17, %v9513_v11  ;;  %v6023_v1 = vld [vmem:[#allocation2 + $0x108] sm:$0xff] }
 0x2b5   : > { %9851 = vmatprep.mubr.bf16.mxu0 %v12788_v37  ;;  %9807 = vmatprep.mubr.bf16.mxu1 %v6045_v6  ;;  %v4685_v59 = vpop.f32.mrf.mxu0  ;;  %v4492_v53 = vpop.f32.mrf.mxu1  ;;  %v6046_v62 = vpack.c.bf16 %v6024_v36, %v6023_v1  ;;  %v6354_v6 = vpack.c.bf16 %v6334_v26, %v12822_v35 }
 0x2b6   : > { %9884 = vmatpush3.bf16.msra.mxu1 %v10094_v25  ;;  %v12895_v33 = vadd.f32 %v4685_v59, %v4476_v60  ;;  %v8449_v59 = vld [vmem:[%s10206_s24 + $0x14] sm:$0x1] }
 0x2b7   : > { %9885 = vmatprep.subr.bf16.mxu1 %v10095_v9  ;;  %v9562_v30 = vpop.f32.mrf.mxu0  ;;  %v9518_v16 = vpop.f32.mrf.mxu1 }
 0x2b8   : > { %v12897_v8 = vadd.f32 %v9562_v30, %v9514_v24 }
 0x2b9   : > { %v4688_v44 = vpop.f32.mrf.mxu0  ;;  %v4495_v46 = vpop.f32.mrf.mxu1 }
 0x2ba   : > { %9886 = vmatpush3.bf16.msra.mxu1 %v10095_v9  ;;  %v12899_v37 = vadd.f32 %v4688_v44, %v4479_v50  ;;  %v7051_v44 = vunpack.c.l.bf16 %v8449_v59 }
 0x2bc   : > { %v9565_v63 = vpop.f32.mrf.mxu0  ;;  %9852 = vmatmul.mubr.bf16.gmra.mxu0 %v12793_v49  ;;  %v9521_v14 = vpop.f32.mrf.mxu1  ;;  %9808 = vmatmul.mubr.bf16.gmra.mxu1 %v6046_v62  ;;  %v6338_v62 = vld [vmem:[#allocation2 + $0x171] sm:$0xff] }
 0x2bd   : > { %v12902_v23 = vadd.f32 %v9565_v63, %v9517_v5  ;;  %9855 = vmatprep.mubr.bf16.mxu0 %v12808_v4  ;;  %9811 = vmatprep.mubr.bf16.mxu1 %v6047_v12  ;;  %v8447_v5 = vld [vmem:[%s10206_s24 + $0xc] sm:$0xff]  }
 0x2be   : > { %v4701_v39 = vpop.f32.mrf.mxu0  ;;  %v4508_v31 = vpop.f32.mrf.mxu1  ;;  %v7050_v43 = vunpack.c.h.bf16 %v8447_v5  ;;  %v6340_v12 = vld [vmem:[#allocation2 + $0x189] sm:$0xff] }
 0x2bf   : > { %v12905_v22 = vadd.f32 %v4701_v39, %v4492_v53 }
 0x2c0   : > { %v9566_v29 = vpop.f32.mrf.mxu0  ;;  %v9522_v7 = vpop.f32.mrf.mxu1 }
 0x2c1   : > { %v12907_v20 = vadd.f32 %v9566_v29, %v9518_v16  ;;  %v7049_v16 = vunpack.c.l.bf16 %v8447_v5 }
 0x2c2   : > { %v4704_v55 = vpop.f32.mrf.mxu0  ;;  %v4511_v49 = vpop.f32.mrf.mxu1 }
 0x2c3   : > { %v12909_v11 = vadd.f32 %v4704_v55, %v4495_v46  ;;  %v7145_v29 = vrot.slane %v7049_v16, 1  ;;  %v6356_v55 = vpack.c.bf16 %v6338_v62, %v6337_v38  ;;  %v6620_v16 = vld [vmem:[#allocation2 + $0x52] sm:$0xff]  ;;  %v6622_v38 = vld [vmem:[#allocation2 + $0x6a] sm:$0xff] }
 0x2c4   : > { %v9569_v4 = vpop.f32.mrf.mxu0  ;;  %9856 = vmatmul.mubr.bf16.gmra.mxu0 %v12813_v54  ;;  %v9525_v60 = vpop.f32.mrf.mxu1  ;;  %9812 = vmatmul.mubr.bf16.gmra.mxu1 %v6048_v51  ;;  %v6031_v54 = vld [vmem:[#allocation2 + $0x168] sm:$0xff]  ;;  %v7148_v51 = vrot.slane %v7051_v44, 1  ;;  %v8773_v62 = vld [vmem:[%s10206_s24 + $0x30] sm:$0xff]  }
 0x2c5   : > { %v12912_v18 = vadd.f32 %v9569_v4, %v9521_v14  ;;  %9859 = vmatprep.mubr.bf16.mxu0 %v12827_v3  ;;  %9815 = vmatprep.mubr.bf16.mxu1 %v6049_v56  ;;  %v6050_v17 = vpack.c.bf16 %v6032_v15, %v6031_v54  ;;  %v10112_v14 = vld [vmem:[#allocation2] sm:$0xff]  ;;  %v6357_v4 = vpack.c.bf16 %v6340_v12, %v12841_v28 }
 0x2c6   : > { %v4717_v25 = vpop.f32.mrf.mxu0  ;;  %v4524_v21 = vpop.f32.mrf.mxu1  ;;  %v6052_v39 = vpack.c.bf16 %v10112_v14, %v10112_v14 }
 0x2c7   : > { %v12915_v24 = vadd.f32 %v4717_v25, %v4508_v31  ;;  %v6617_v31 = vld [vmem:[#allocation2 + $0x32] sm:$0xff]  ;;  %v8453_v25 = vld [vmem:[%s10206_s24 + $0x24] sm:$0xff]  }
 0x2c8   : > { %v9570_v57 = vpop.f32.mrf.mxu0  ;;  %v9526_v50 = vpop.f32.mrf.mxu1 }
 0x2c9   : > { %v12917_v0 = vadd.f32 %v9570_v57, %v9522_v7  ;;  %v7146_v7 = vrot.slane %v7050_v43, 1  ;;  %v8646_v57 = vunpack.c.l.bf16 %v8772_v48  ;;  %v7055_v43 = vunpack.c.l.bf16 %v8453_v25 }
 0x2ca   : > { %v4720_v27 = vpop.f32.mrf.mxu0  ;;  %v4527_v9 = vpop.f32.mrf.mxu1 }
 0x2cb   : > { %v12921_v3 = vadd.f32 %v4720_v27, %v4511_v49  ;;  %v6341_v27 = vld [vmem:[#allocation2 + $0x199] sm:$0xff]  ;;  %v7149_v59 = vsel %vm522_vm1, %v7146_v7, %v7148_v51 }
 0x2cc   : > { %v9573_v53 = vpop.f32.mrf.mxu0  ;;  %9860 = vmatmul.mubr.bf16.gmra.mxu0 %v6354_v6  ;;  %v9529_v36 = vpop.f32.mrf.mxu1  ;;  %9816 = vmatmul.mubr.bf16.gmra.mxu1 %v6050_v17  ;;  %v6342_v6 = vld [vmem:[#allocation2 + $0x1a1] sm:$0xff]  ;;  %v7054_v17 = vunpack.c.l.bf16 %v8452_v19 }
 0x2cd   : > { %v12924_v30 = vadd.f32 %v9573_v53, %v9525_v60  ;;  %9863 = vmatprep.mubr.bf16.mxu0 %v12835_v58  ;;  %9819 = vmatprep.mubr.bf16.mxu1 %v12735_v42  ;;  %v6618_v58 = vld [vmem:[#allocation2 + $0x3a] sm:$0xff]  ;;  %v6619_v53 = vld [vmem:[#allocation2 + $0x4a] sm:$0xff]  ;;  %v6358_v12 = vpack.c.bf16 %v6342_v6, %v6341_v27 }
 0x2ce   : > { %v4733_v1 = vpop.f32.mrf.mxu0  ;;  %v4540_v35 = vpop.f32.mrf.mxu1  ;;  %v6649_v60 = vpack.c.bf16 %v6618_v58, %v6617_v31  ;;  %v6621_v58 = vld [vmem:[#allocation2 + $0x62] sm:$0xff] }
 0x2cf   : > { %v12928_v46 = vadd.f32 %v4733_v1, %v4524_v21  ;;  %v8455_v21 = vld [vmem:[%s10206_s24 + $0x2c] sm:$0x1]  ;;  %v7056_v1 = vunpack.c.h.bf16 %v8453_v25  ;;  %v8459_v51 = vld [vmem:[%s10206_s24 + $0x3c] sm:$0xff]  }
 0x2d0   : > { %v9574_v47 = vpop.f32.mrf.mxu0  ;;  %v9530_v63 = vpop.f32.mrf.mxu1 }
 0x2d1   : > { %v12930_v42 = vadd.f32 %v9574_v47, %v9526_v50  ;;  %v8647_v50 = vunpack.c.h.bf16 %v8772_v48 }
 0x2d2   : > { %v4736_v61 = vpop.f32.mrf.mxu0  ;;  %v4543_v49 = vpop.f32.mrf.mxu1 }
 0x2d3   : > { %v12934_v56 = vadd.f32 %v4736_v61, %v4527_v9  ;;  %v7147_v9 = vsel %vm522_vm1, %v7145_v29, %v7146_v7  ;;  %v7151_v31 = vrot.slane %v8647_v50, 1  ;;  %v8458_v29 = vld [vmem:[%s10206_s24 + $0x38] sm:$0x1]  ;;  %v6650_v61 = vpack.c.bf16 %v6620_v16, %v6619_v53 }
 0x2d4   : > { %v9577_v26 = vpop.f32.mrf.mxu0  ;;  %9864 = vmatmul.mubr.bf16.gmra.mxu0 %v6356_v55  ;;  %v9533_v15 = vpop.f32.mrf.mxu1  ;;  %9820 = vmatmul.mubr.bf16.gmra.mxu1 %v6052_v39  ;;  %v7150_v39 = vrot.slane %v8646_v57, 1  ;;  %v7257_v7 = vpack.c.bf16 %v7149_v59, %v7147_v9  ;;  %v7153_v55 = vrot.slane %v7054_v17, 1  ;;  %v6651_v57 = vpack.c.bf16 %v6622_v38, %v6621_v58  ;;  %v6624_v38 = vld [vmem:[#allocation2 + $0x82] sm:$0xff] }
 0x2d5   : > { %v12939_v54 = vadd.f32 %v9577_v26, %v9529_v36  ;;  %9867 = vmatprep.mubr.bf16.mxu0 %v6357_v4  ;;  %9887 = vmatprep.mubr.bf16.mxu1 %v6649_v60  ;;  %v7057_v36 = vunpack.c.l.bf16 %v8455_v21  ;;  %v7156_v60 = vrot.slane %v7056_v1, 1  ;;  %v8650_v21 = vunpack.c.l.bf16 %v8773_v62  ;;  %v8461_v26 = vld [vmem:[%s10206_s24 + $0x44] sm:$0x1] }
 0x2d6   : > { %v4749_v28 = vpop.f32.mrf.mxu0  ;;  %v4556_v5 = vpop.f32.mrf.mxu1  ;;  %v8651_v50 = vunpack.c.h.bf16 %v8773_v62  ;;  %v7060_v6 = vunpack.c.l.bf16 %v8458_v29  ;;  %v7152_v9 = vsel %vm522_vm1, %v7150_v39, %v7151_v31  ;;  %v7061_v17 = vunpack.c.l.bf16 %v8459_v51 }
 0x2d7   : > { %v12943_v44 = vadd.f32 %v4749_v28, %v4540_v35  ;;  %v7155_v35 = vrot.slane %v7055_v43, 1  ;;  %v7158_v25 = vrot.slane %v7057_v36, 1  ;;  %v7062_v59 = vunpack.c.h.bf16 %v8459_v51 }
 0x2d8   : > { %v9578_v47 = vpop.f32.mrf.mxu0  ;;  %v9534_v14 = vpop.f32.mrf.mxu1  ;;  %v7063_v43 = vunpack.c.l.bf16 %v8461_v26  ;;  %v7160_v39 = vrot.slane %v8650_v21, 1  ;;  %v7163_v29 = vrot.slane %v7060_v6, 1  ;;  %v8464_v26 = vld [vmem:[%s10206_s24 + $0x50] sm:$0x1] }
 0x2d9   : > { %v12947_v48 = vadd.f32 %v9578_v47, %v9530_v63  ;;  %v7157_v62 = vsel %vm522_vm1, %v7155_v35, %v7156_v60  ;;  %v7159_v47 = vsel %vm522_vm1, %v7156_v60, %v7158_v25  ;;  %v7166_v35 = vrot.slane %v7062_v59, 1  ;;  %v8467_v59 = vld [vmem:[%s10206_s24 + $0x5c] sm:$0x1] }
 0x2da   : > { %v4752_v19 = vpop.f32.mrf.mxu0  ;;  %v4559_v4 = vpop.f32.mrf.mxu1  ;;  %v7259_v25 = vpack.c.bf16 %v7159_v47, %v7157_v62  ;;  %v7168_v21 = vrot.slane %v7063_v43, 1  ;;  %v6628_v62 = vld [vmem:[#allocation2 + $0xb2] sm:$0xff] }
 0x2db   : > { %v12951_v27 = vadd.f32 %v4752_v19, %v4543_v49  ;;  %v7154_v49 = vsel %vm522_vm1, %v7151_v31, %v7153_v55  ;;  %v6625_v31 = vld [vmem:[#allocation2 + $0x92] sm:$0xff]  ;;  %v7165_v19 = vrot.slane %v7061_v17, 1 }
 0x2dc   : > { %v9581_v28 = vpop.f32.mrf.mxu0  ;;  %9868 = vmatmul.mubr.bf16.gmra.mxu0 %v6358_v12  ;;  %v9601_v63 = vpop.f32.mrf.mxu1  ;;  %9888 = vmatmul.mubr.bf16.vlgmr.msra.gmra.mxu1 %v6650_v61  ;;  %v6623_v12 = vld [vmem:[#allocation2 + $0x7a] sm:$0xff]  ;;  %v7258_v55 = vpack.c.bf16 %v7154_v49, %v7152_v9 }
 0x2dd   : > { %v12954_v53 = vadd.f32 %v9581_v28, %v9533_v15  ;;  %9921 = vmatprep.mubr.msk.bf16.mxu0 %vm653_vm2, %v7257_v7  ;;  %v5056_v16 = vadd.f32 %v9601_v63, %v12860_v45  ;;  %9891 = vmatprep.mubr.bf16.mxu1 %v6651_v57  ;;  %v7161_v45 = vrot.slane %v8651_v50, 1  ;;  %v6626_v7 = vld [vmem:[#allocation2 + $0x9a] sm:$0xff]  ;;  %v6652_v6 = vpack.c.bf16 %v6624_v38, %v6623_v12 }
 0x2de   : > { %v4765_v1 = vpop.f32.mrf.mxu0  ;;  %v4927_v36 = vpop.f32.mrf.mxu1  ;;  %v6653_v28 = vpack.c.bf16 %v6626_v7, %v6625_v31  ;;  %v8465_v63 = vld [vmem:[%s10206_s24 + $0x54] sm:$0xff]   ;;  %v7167_v43 = vsel %vm522_vm1, %v7165_v19, %v7166_v35  ;;  %v7066_v12 = vunpack.c.l.bf16 %v8464_v26  ;;  %v8775_v19 = vld [vmem:[%s10206_s24 + $0x60] sm:$0xff]  }
 0x2df   : > { %v12961_v58 = vadd.f32 %v4765_v1, %v4556_v5  ;;  %v5054_v15 = vadd.f32 %v4927_v36, %v12863_v10  ;;  %v8774_v10 = vld [vmem:[%s10206_s24 + $0x48] sm:$0xff]   ;;  %v7162_v17 = vsel %vm522_vm1, %v7160_v39, %v7161_v45  ;;  %v7169_v39 = vsel %vm522_vm1, %v7166_v35, %v7168_v21 }
 0x2e0   : > { %v9582_v61 = vpop.f32.mrf.mxu0  ;;  %v9602_v51 = vpop.f32.mrf.mxu1  ;;  %v6627_v36 = vld [vmem:[#allocation2 + $0xaa] sm:$0xff]  ;;  %v8654_v47 = vunpack.c.l.bf16 %v8774_v10  ;;  %v7068_v7 = vunpack.c.h.bf16 %v8465_v63  ;;  %v7261_v26 = vpack.c.bf16 %v7169_v39, %v7167_v43  ;;  %v6629_v21 = vld [vmem:[#allocation2 + $0xc2] sm:$0xff] }
 0x2e1   : > { %v12964_v60 = vadd.f32 %v9582_v61, %v9534_v14  ;;  %v5057_v5 = vadd.f32 %v9602_v51, %v12868_v52  ;;  %v7164_v14 = vsel %vm522_vm1, %v7161_v45, %v7163_v29  ;;  %v7067_v45 = vunpack.c.l.bf16 %v8465_v63 }
 0x2e2   : > { %v4768_v57 = vpop.f32.mrf.mxu0  ;;  %v4930_v50 = vpop.f32.mrf.mxu1  ;;  %v7069_v61 = vunpack.c.l.bf16 %v8467_v59  ;;  %v7173_v63 = vrot.slane %v7066_v12, 1 }
 0x2e3   : > { %v12970_v1 = vadd.f32 %v4768_v57, %v4559_v4  ;;  %v5055_v9 = vadd.f32 %v4930_v50, %v12870_v40  ;;  %v8655_v4 = vunpack.c.h.bf16 %v8774_v10  ;;  %v7260_v10 = vpack.c.bf16 %v7164_v14, %v7162_v17  ;;  %v6630_v50 = vld [vmem:[#allocation2 + $0xca] sm:$0xff] }
 0x2e4   : > { %v9649_v49 = vpop.f32.mrf.mxu0  ;;  %9922 = vmatmul.mubr.msk.bf16.vlgmr.msra.gmra.mxu0 %vm653_vm2, %v7258_v55  ;;  %v9605_v52 = vpop.f32.mrf.mxu1  ;;  %9892 = vmatmul.mubr.bf16.gmra.mxu1 %v6652_v6  ;;  %v7170_v57 = vrot.slane %v8654_v47, 1  ;;  %v8470_v6 = vld [vmem:[%s10206_s24 + $0x68] sm:$0x1]  ;;  %v7175_v59 = vrot.slane %v7067_v45, 1  ;;  %v8658_v17 = vunpack.c.l.bf16 %v8775_v19  ;;  %v8659_v14 = vunpack.c.h.bf16 %v8775_v19 }
 0x2e5   : > { %v12978_v38 = vadd.f32 %v9649_v49, %v5056_v16  ;;  %9925 = vmatprep.mubr.msk.bf16.mxu0 %vm653_vm2, %v7259_v25  ;;  %v5060_v40 = vadd.f32 %v9605_v52, %v12876_v34  ;;  %9895 = vmatprep.mubr.bf16.mxu1 %v6653_v28  ;;  %v6654_v16 = vpack.c.bf16 %v6628_v62, %v6627_v36  ;;  %v7171_v35 = vrot.slane %v8655_v4, 1  ;;  %v8473_v49 = vld [vmem:[%s10206_s24 + $0x74] sm:$0x1] }
 0x2e6   : > { %v5233_v29 = vpop.f32.mrf.mxu0  ;;  %v4943_v31 = vpop.f32.mrf.mxu1  ;;  %v7176_v62 = vrot.slane %v7068_v7, 1  ;;  %v6655_v4 = vpack.c.bf16 %v6630_v50, %v6629_v21  ;;  %v7072_v39 = vunpack.c.l.bf16 %v8470_v6  ;;  %v6633_v21 = vld [vmem:[#allocation2 + $0xf2] sm:$0xff] }
 0x2e7   : > { %v12983_v55 = vadd.f32 %v5233_v29, %v5054_v15  ;;  %v5058_v51 = vadd.f32 %v4943_v31, %v12879_v13  ;;  %v8471_v13 = vld [vmem:[%s10206_s24 + $0x6c] sm:$0xff]   ;;  %v7178_v29 = vrot.slane %v7069_v61, 1  ;;  %v7172_v12 = vsel %vm522_vm1, %v7170_v57, %v7171_v35 }
 0x2e8   : > { %v9650_v25 = vpop.f32.mrf.mxu0  ;;  %v9606_v34 = vpop.f32.mrf.mxu1  ;;  %v7073_v45 = vunpack.c.l.bf16 %v8471_v13  ;;  %v7074_v31 = vunpack.c.h.bf16 %v8471_v13  ;;  %v7181_v57 = vrot.slane %v8659_v14, 1  ;;  %v7183_v6 = vrot.slane %v7072_v39, 1  ;;  %v8476_v14 = vld [vmem:[%s10206_s24 + $0x80] sm:$0x1] }
 0x2e9   : > { %v12988_v28 = vadd.f32 %v9650_v25, %v5057_v5  ;;  %v5061_v15 = vadd.f32 %v9606_v34, %v12884_v32  ;;  %v7075_v25 = vunpack.c.l.bf16 %v8473_v49  ;;  %v7180_v34 = vrot.slane %v8658_v17, 1 }
 0x2ea   : > { %v5236_v52 = vpop.f32.mrf.mxu0  ;;  %v4946_v36 = vpop.f32.mrf.mxu1 }
 0x2eb   : > { %v12993_v43 = vadd.f32 %v5236_v52, %v5055_v9  ;;  %v5059_v47 = vadd.f32 %v4946_v36, %v12886_v2  ;;  %v7174_v2 = vsel %vm522_vm1, %v7171_v35, %v7173_v63  ;;  %v6634_v35 = vld [vmem:[#allocation2 + $0xfa] sm:$0xff]  ;;  %v7186_v52 = vrot.slane %v7074_v31, 1 }
 0x2ec   : > { %v9653_v5 = vpop.f32.mrf.mxu0  ;;  %9926 = vmatmul.mubr.msk.bf16.gmra.mxu0 %vm653_vm2, %v7260_v10  ;;  %v9609_v32 = vpop.f32.mrf.mxu1  ;;  %9896 = vmatmul.mubr.bf16.gmra.mxu1 %v6654_v16  ;;  %v7177_v10 = vsel %vm522_vm1, %v7175_v59, %v7176_v62  ;;  %v7179_v16 = vsel %vm522_vm1, %v7176_v62, %v7178_v29  ;;  %v7262_v13 = vpack.c.bf16 %v7174_v2, %v7172_v12  ;;  %v7185_v59 = vrot.slane %v7073_v45, 1  ;;  %v8776_v62 = vld [vmem:[%s10206_s24 + $0x78] sm:$0xff]  }
 0x2ed   : > { %v12998_v7 = vadd.f32 %v9653_v5, %v5060_v40  ;;  %9929 = vmatprep.mubr.msk.bf16.mxu0 %vm653_vm2, %v7261_v26  ;;  %v5064_v9 = vadd.f32 %v9609_v32, %v12892_v41  ;;  %9899 = vmatprep.mubr.bf16.mxu1 %v6655_v4  ;;  %v6631_v26 = vld [vmem:[#allocation2 + $0xda] sm:$0xff]  ;;  %v6632_v41 = vld [vmem:[#allocation2 + $0xe2] sm:$0xff]  ;;  %v7188_v36 = vrot.slane %v7075_v25, 1  ;;  %v7263_v17 = vpack.c.bf16 %v7179_v16, %v7177_v10 }
 0x2ee   : > { %v5249_v61 = vpop.f32.mrf.mxu0  ;;  %v4959_v19 = vpop.f32.mrf.mxu1  ;;  %v6656_v5 = vpack.c.bf16 %v6632_v41, %v6631_v26  ;;  %v7182_v39 = vsel %vm522_vm1, %v7180_v34, %v7181_v57  ;;  %v6657_v32 = vpack.c.bf16 %v6634_v35, %v6633_v21  ;;  %v7184_v31 = vsel %vm522_vm1, %v7181_v57, %v7183_v6 }
 0x2ef   : > { %v13005_v50 = vadd.f32 %v5249_v61, %v5058_v51  ;;  %v5062_v40 = vadd.f32 %v4959_v19, %v12895_v33  ;;  %v8477_v61 = vld [vmem:[%s10206_s24 + $0x84] sm:$0xff]   ;;  %v8662_v25 = vunpack.c.l.bf16 %v8776_v62  ;;  %v7187_v19 = vsel %vm522_vm1, %v7185_v59, %v7186_v52  ;;  %v6636_v59 = vld [vmem:[#allocation2 + $0x112] sm:$0xff] }
 0x2f0   : > { %v9654_v63 = vpop.f32.mrf.mxu0  ;;  %v9610_v49 = vpop.f32.mrf.mxu1  ;;  %v7189_v10 = vsel %vm522_vm1, %v7186_v52, %v7188_v36  ;;  %v8663_v16 = vunpack.c.h.bf16 %v8776_v62  ;;  %v7078_v34 = vunpack.c.l.bf16 %v8476_v14  ;;  %v7080_v57 = vunpack.c.h.bf16 %v8477_v61  ;;  %v6637_v14 = vld [vmem:[#allocation2 + $0x122] sm:$0xff] }
 0x2f1   : > { %v13009_v29 = vadd.f32 %v9654_v63, %v5061_v15  ;;  %v5065_v51 = vadd.f32 %v9610_v49, %v12897_v8  ;;  %v8479_v15 = vld [vmem:[%s10206_s24 + $0x8c] sm:$0x1]  ;;  %v7264_v63 = vpack.c.bf16 %v7184_v31, %v7182_v39  ;;  %v7265_v36 = vpack.c.bf16 %v7189_v10, %v7187_v19  ;;  %v8483_v10 = vld [vmem:[%s10206_s24 + $0x9c] sm:$0xff]  }
 0x2f2   : > { %v5252_v33 = vpop.f32.mrf.mxu0  ;;  %v4962_v4 = vpop.f32.mrf.mxu1  ;;  %v7081_v6 = vunpack.c.l.bf16 %v8479_v15  ;;  %v6635_v49 = vld [vmem:[#allocation2 + $0x10a] sm:$0xff]  ;;  %v7190_v62 = vrot.slane %v8662_v25, 1  ;;  %v7196_v39 = vrot.slane %v7080_v57, 1 }
 0x2f3   : > { %v13015_v12 = vadd.f32 %v5252_v33, %v5059_v47  ;;  %v5063_v45 = vadd.f32 %v4962_v4, %v12899_v37  ;;  %v7079_v47 = vunpack.c.l.bf16 %v8477_v61  ;;  %v6638_v33 = vld [vmem:[#allocation2 + $0x12a] sm:$0xff]  ;;  %v6658_v31 = vpack.c.bf16 %v6636_v59, %v6635_v49  ;;  %v6640_v49 = vld [vmem:[#allocation2 + $0x142] sm:$0xff] }
 0x2f4   : > { %v9657_v2 = vpop.f32.mrf.mxu0  ;;  %9930 = vmatmul.mubr.msk.bf16.gmra.mxu0 %vm653_vm2, %v7262_v13  ;;  %v9613_v8 = vpop.f32.mrf.mxu1  ;;  %9900 = vmatmul.mubr.bf16.gmra.mxu1 %v6656_v5  ;;  %v7198_v15 = vrot.slane %v7081_v6, 1  ;;  %v6659_v19 = vpack.c.bf16 %v6638_v33, %v6637_v14  ;;  %v6639_v6 = vld [vmem:[#allocation2 + $0x13a] sm:$0xff] }
 0x2f5   : > { %v13023_v21 = vadd.f32 %v9657_v2, %v5064_v9  ;;  %9933 = vmatprep.mubr.msk.bf16.mxu0 %vm653_vm2, %v7263_v17  ;;  %v5068_v37 = vadd.f32 %v9613_v8, %v12902_v23  ;;  %9903 = vmatprep.mubr.bf16.mxu1 %v6657_v32  ;;  %v7191_v23 = vrot.slane %v8663_v16, 1  ;;  %v7193_v17 = vrot.slane %v7078_v34, 1  ;;  %v8482_v2 = vld [vmem:[%s10206_s24 + $0x98] sm:$0x1]  ;;  %v8485_v16 = vld [vmem:[%s10206_s24 + $0xa4] sm:$0x1] }
 0x2f6   : > { %v5265_v26 = vpop.f32.mrf.mxu0  ;;  %v4975_v41 = vpop.f32.mrf.mxu1  ;;  %v7195_v5 = vrot.slane %v7079_v47, 1  ;;  %v6642_v14 = vld [vmem:[#allocation2 + $0x15a] sm:$0xff] }
 0x2f7   : > { %v13027_v35 = vadd.f32 %v5265_v26, %v5062_v40  ;;  %v5066_v13 = vadd.f32 %v4975_v41, %v12905_v22  ;;  %v8777_v22 = vld [vmem:[%s10206_s24 + $0x90] sm:$0xff]   ;;  %v7194_v47 = vsel %vm522_vm1, %v7191_v23, %v7193_v17  ;;  %v7087_v17 = vunpack.c.l.bf16 %v8485_v16 }
 0x2f8   : > { %v9658_v9 = vpop.f32.mrf.mxu0  ;;  %v9614_v52 = vpop.f32.mrf.mxu1  ;;  %v8666_v57 = vunpack.c.l.bf16 %v8777_v22  ;;  %v8667_v26 = vunpack.c.h.bf16 %v8777_v22  ;;  %v8489_v16 = vld [vmem:[%s10206_s24 + $0xb4] sm:$0xff]  }
 0x2f9   : > { %v13030_v4 = vadd.f32 %v9658_v9, %v5065_v51  ;;  %v5069_v40 = vadd.f32 %v9614_v52, %v12907_v20  ;;  %v7192_v20 = vsel %vm522_vm1, %v7190_v62, %v7191_v23  ;;  %v7199_v52 = vsel %vm522_vm1, %v7196_v39, %v7198_v15 }
 0x2fa   : > { %v5268_v32 = vpop.f32.mrf.mxu0  ;;  %v4978_v61 = vpop.f32.mrf.mxu1  ;;  %v7085_v62 = vunpack.c.l.bf16 %v8483_v10  ;;  %v7086_v23 = vunpack.c.h.bf16 %v8483_v10  ;;  %v8488_v10 = vld [vmem:[%s10206_s24 + $0xb0] sm:$0x1] }
 0x2fb   : > { %v13035_v8 = vadd.f32 %v5268_v32, %v5063_v45  ;;  %v5067_v25 = vadd.f32 %v4978_v61, %v12909_v11  ;;  %v7197_v45 = vsel %vm522_vm1, %v7195_v5, %v7196_v39  ;;  %v7266_v5 = vpack.c.bf16 %v7194_v47, %v7192_v20  ;;  %v8491_v47 = vld [vmem:[%s10206_s24 + $0xbc] sm:$0x1] }
 0x2fc   : > { %v9661_v34 = vpop.f32.mrf.mxu0  ;;  %9934 = vmatmul.mubr.msk.bf16.gmra.mxu0 %vm653_vm2, %v7264_v63  ;;  %v9617_v51 = vpop.f32.mrf.mxu1  ;;  %9904 = vmatmul.mubr.bf16.gmra.mxu1 %v6658_v31  ;;  %v7084_v63 = vunpack.c.l.bf16 %v8482_v2  ;;  %v6660_v32 = vpack.c.bf16 %v6640_v49, %v6639_v6  ;;  %v7200_v61 = vrot.slane %v8666_v57, 1  ;;  %v7201_v31 = vrot.slane %v8667_v26, 1  ;;  %v8778_v2 = vld [vmem:[%s10206_s24 + $0xa8] sm:$0xff]  }
 0x2fd   : > { %v13043_v41 = vadd.f32 %v9661_v34, %v5068_v37  ;;  %9937 = vmatprep.mubr.msk.bf16.mxu0 %vm653_vm2, %v7265_v36  ;;  %v5072_v11 = vadd.f32 %v9617_v51, %v12912_v18  ;;  %9907 = vmatprep.mubr.bf16.mxu1 %v6659_v19  ;;  %v6641_v36 = vld [vmem:[#allocation2 + $0x152] sm:$0xff]  ;;  %v7267_v19 = vpack.c.bf16 %v7199_v52, %v7197_v45  ;;  %v7208_v20 = vrot.slane %v7087_v17, 1 }
 0x2fe   : > { %v5281_v59 = vpop.f32.mrf.mxu0  ;;  %v4991_v9 = vpop.f32.mrf.mxu1  ;;  %v6661_v51 = vpack.c.bf16 %v6642_v14, %v6641_v36  ;;  %v8670_v26 = vunpack.c.l.bf16 %v8778_v2  ;;  %v7202_v45 = vsel %vm522_vm1, %v7200_v61, %v7201_v31  ;;  %v7091_v52 = vunpack.c.l.bf16 %v8489_v16  ;;  %v6644_v61 = vld [vmem:[#allocation2 + $0x172] sm:$0xff] }
 0x2ff   : > { %v13049_v37 = vadd.f32 %v5281_v59, %v5066_v13  ;;  %v5070_v18 = vadd.f32 %v4991_v9, %v12915_v24  ;;  %v7203_v13 = vrot.slane %v7084_v63, 1  ;;  %v7205_v59 = vrot.slane %v7085_v62, 1 }
 0x300   : > { %v9662_v33 = vpop.f32.mrf.mxu0  ;;  %v9618_v22 = vpop.f32.mrf.mxu1  ;;  %v7206_v9 = vrot.slane %v7086_v23, 1  ;;  %v7090_v63 = vunpack.c.l.bf16 %v8488_v10  ;;  %v7092_v36 = vunpack.c.h.bf16 %v8489_v16  ;;  %v7093_v23 = vunpack.c.l.bf16 %v8491_v47  ;;  %v6645_v16 = vld [vmem:[#allocation2 + $0x182] sm:$0xff] }
 0x301   : > { %v13053_v39 = vadd.f32 %v9662_v33, %v5069_v40  ;;  %v5073_v15 = vadd.f32 %v9618_v22, %v12917_v0  ;;  %v8671_v40 = vunpack.c.h.bf16 %v8778_v2  ;;  %v7210_v2 = vrot.slane %v8670_v26, 1 }
 0x302   : > { %v5284_v34 = vpop.f32.mrf.mxu0  ;;  %v4994_v24 = vpop.f32.mrf.mxu1  ;;  %v7207_v33 = vsel %vm522_vm1, %v7205_v59, %v7206_v9  ;;  %v7213_v10 = vrot.slane %v7090_v63, 1 }
 0x303   : > { %v13059_v6 = vadd.f32 %v5284_v34, %v5067_v25  ;;  %v5071_v57 = vadd.f32 %v4994_v24, %v12921_v3  ;;  %v7204_v3 = vsel %vm522_vm1, %v7201_v31, %v7203_v13  ;;  %v6646_v34 = vld [vmem:[#allocation2 + $0x18a] sm:$0xff]  ;;  %v7215_v24 = vrot.slane %v7091_v52, 1 }
 0x304   : > { %v9665_v49 = vpop.f32.mrf.mxu0  ;;  %9938 = vmatmul.mubr.msk.bf16.gmra.mxu0 %vm653_vm2, %v7266_v5  ;;  %v9621_v0 = vpop.f32.mrf.mxu1  ;;  %9908 = vmatmul.mubr.bf16.gmra.mxu1 %v6660_v32  ;;  %v7209_v5 = vsel %vm522_vm1, %v7206_v9, %v7208_v20  ;;  %v7268_v31 = vpack.c.bf16 %v7204_v3, %v7202_v45  ;;  %v8779_v20 = vld [vmem:[%s10206_s24 + $0xc0] sm:$0xff]   ;;  %v6663_v3 = vpack.c.bf16 %v6646_v34, %v6645_v16 }
 0x305   : > { %v13064_v62 = vadd.f32 %v9665_v49, %v5072_v11  ;;  %9941 = vmatprep.mubr.msk.bf16.mxu0 %vm653_vm2, %v7267_v19  ;;  %v5076_v25 = vadd.f32 %v9621_v0, %v12924_v30  ;;  %9911 = vmatprep.mubr.bf16.mxu1 %v6661_v51  ;;  %v6643_v11 = vld [vmem:[#allocation2 + $0x16a] sm:$0xff]  ;;  %v7211_v19 = vrot.slane %v8671_v40, 1  ;;  %v7216_v51 = vrot.slane %v7092_v36, 1  ;;  %v8494_v40 = vld [vmem:[%s10206_s24 + $0xc8] sm:$0x1] }
 0x306   : > { %v5297_v17 = vpop.f32.mrf.mxu0  ;;  %v5007_v14 = vpop.f32.mrf.mxu1  ;;  %v7269_v9 = vpack.c.bf16 %v7209_v5, %v7207_v33  ;;  %v6662_v26 = vpack.c.bf16 %v6644_v61, %v6643_v11  ;;  %v6647_v33 = vld [vmem:[#allocation2 + $0x19a] sm:$0xff]  ;;  %v6648_v5 = vld [vmem:[#allocation2 + $0x1a2] sm:$0xff]  ;;  %v7096_v11 = vunpack.c.l.bf16 %v8494_v40 }
 0x307   : > { %v13071_v22 = vadd.f32 %v5297_v17, %v5070_v18  ;;  %v5074_v32 = vadd.f32 %v5007_v14, %v12928_v46  ;;  %v7218_v46 = vrot.slane %v7093_v23, 1  ;;  %v7212_v63 = vsel %vm522_vm1, %v7210_v2, %v7211_v19 }
 0x308   : > { %v9666_v30 = vpop.f32.mrf.mxu0  ;;  %v9622_v13 = vpop.f32.mrf.mxu1  ;;  %v7217_v36 = vsel %vm522_vm1, %v7215_v24, %v7216_v51  ;;  %v8674_v23 = vunpack.c.l.bf16 %v8779_v20  ;;  %v8675_v17 = vunpack.c.h.bf16 %v8779_v20  ;;  %v6664_v16 = vpack.c.bf16 %v6648_v5, %v6647_v33 }
 0x309   : > { %v13074_v59 = vadd.f32 %v9666_v30, %v5073_v15  ;;  %v5077_v18 = vadd.f32 %v9622_v13, %v12930_v42  ;;  %v7214_v42 = vsel %vm522_vm1, %v7211_v19, %v7213_v10 }
 0x30a   : > { %v5300_v47 = vpop.f32.mrf.mxu0  ;;  %v5010_v49 = vpop.f32.mrf.mxu1  ;;  %v7270_v13 = vpack.c.bf16 %v7214_v42, %v7212_v63  ;;  %v7220_v34 = vrot.slane %v8674_v23, 1 }
 0x30b   : > { %v13079_v0 = vadd.f32 %v5300_v47, %v5071_v57  ;;  %v5075_v45 = vadd.f32 %v5010_v49, %v12934_v56  ;;  %v7219_v57 = vsel %vm522_vm1, %v7216_v51, %v7218_v46  ;;  %v7221_v51 = vrot.slane %v8675_v17, 1 }
 0x30c   : > { %v9669_v52 = vpop.f32.mrf.mxu0  ;;  %9942 = vmatmul.mubr.msk.bf16.gmra.mxu0 %vm653_vm2, %v7268_v31  ;;  %v9625_v15 = vpop.f32.mrf.mxu1  ;;  %9912 = vmatmul.mubr.bf16.gmra.mxu1 %v6662_v26  ;;  %v7271_v10 = vpack.c.bf16 %v7219_v57, %v7217_v36 }
 0x30d   : > { %v13086_v14 = vadd.f32 %v9669_v52, %v5076_v25  ;;  %9945 = vmatprep.mubr.msk.bf16.mxu0 %vm653_vm2, %v7269_v9  ;;  %v5080_v56 = vadd.f32 %v9625_v15, %v12939_v54  ;;  %9915 = vmatprep.mubr.bf16.mxu1 %v6663_v3  ;;  %v7223_v9 = vrot.slane %v7096_v11, 1 }
 0x30e   : > { %v5313_v61 = vpop.f32.mrf.mxu0  ;;  %v5023_v2 = vpop.f32.mrf.mxu1 }
 0x30f   : > { %v13091_v30 = vadd.f32 %v5313_v61, %v5074_v32  ;;  %v5078_v19 = vadd.f32 %v5023_v2, %v12943_v44  ;;  %v7224_v40 = vsel %vm522_vm1, %v7221_v51, %v7223_v9 }
 0x310   : > { %v9670_v31 = vpop.f32.mrf.mxu0  ;;  %v9626_v25 = vpop.f32.mrf.mxu1 }
 0x311   : > { %v13094_v24 = vadd.f32 %v9670_v31, %v5077_v18  ;;  %v5081_v54 = vadd.f32 %v9626_v25, %v12947_v48  ;;  %v7222_v48 = vsel %vm522_vm1, %v7220_v34, %v7221_v51 }
 0x312   : > { %v5316_v46 = vpop.f32.mrf.mxu0  ;;  %v5026_v20 = vpop.f32.mrf.mxu1  ;;  %v7272_v15 = vpack.c.bf16 %v7224_v40, %v7222_v48 }
 0x313   : > { %v13097_v47 = vadd.f32 %v5316_v46, %v5075_v45  ;;  %v5079_v32 = vadd.f32 %v5026_v20, %v12951_v27 }
 0x314   : > { %v9673_v49 = vpop.f32.mrf.mxu0  ;;  %9946 = vmatmul.mubr.msk.bf16.gmra.mxu0 %vm653_vm2, %v7270_v13  ;;  %v9629_v44 = vpop.f32.mrf.mxu1  ;;  %9916 = vmatmul.mubr.bf16.gmra.mxu1 %v6664_v16 }
 0x315   : > { %v13101_v26 = vadd.f32 %v9673_v49, %v5080_v56  ;;  %9949 = vmatprep.mubr.msk.bf16.mxu0 %vm653_vm2, %v7271_v10  ;;  %v5084_v18 = vadd.f32 %v9629_v44, %v12954_v53 }
 0x316   : > { %v5329_v63 = vpop.f32.mrf.mxu0  ;;  %v5039_v45 = vpop.f32.mrf.mxu1 }
 0x317   : > { %v13107_v3 = vadd.f32 %v5329_v63, %v5078_v19  ;;  %v5082_v27 = vadd.f32 %v5039_v45, %v12961_v58 }
 0x318   : > { %v9674_v52 = vpop.f32.mrf.mxu0  ;;  %v9630_v42 = vpop.f32.mrf.mxu1 }
 0x319   : > { %v13110_v36 = vadd.f32 %v9674_v52, %v5081_v54  ;;  %v5085_v23 = vadd.f32 %v9630_v42, %v12964_v60 }
 0x31a   : > { %v5332_v17 = vpop.f32.mrf.mxu0  ;;  %v5042_v56 = vpop.f32.mrf.mxu1 }
 0x31b   : > { %v13113_v53 = vadd.f32 %v5332_v17, %v5079_v32  ;;  %v5083_v57 = vadd.f32 %v5042_v56, %v12970_v1 }
 0x31c   : > { %v9677_v33 = vpop.f32.mrf.mxu0  ;;  %9950 = vmatmul.mubr.msk.bf16.gmra.mxu0 %vm653_vm2, %v7272_v15  ;;  %v9697_v5 = vpop.f32.mrf.mxu1 }
 0x31d   : > { %v13117_v11 = vadd.f32 %v9677_v33, %v5084_v18  ;;  %v5668_v58 = vadd.f32 %v9697_v5, %v12978_v38 }
 0x31e   : > { %v5345_v61 = vpop.f32.mrf.mxu0  ;;  %v5539_v2 = vpop.f32.mrf.mxu1 }
 0x31f   : > { %v13120_v19 = vadd.f32 %v5345_v61, %v5082_v27  ;;  %v5666_v60 = vadd.f32 %v5539_v2, %v12983_v55 }
 0x320   : > { %v9678_v31 = vpop.f32.mrf.mxu0  ;;  %v9698_v13 = vpop.f32.mrf.mxu1 }
 0x321   : > { %v13123_v25 = vadd.f32 %v9678_v31, %v5085_v23  ;;  %v5669_v1 = vadd.f32 %v9698_v13, %v12988_v28 }
 0x322   : > { %v5348_v10 = vpop.f32.mrf.mxu0  ;;  %v5542_v16 = vpop.f32.mrf.mxu1 }
 0x323   : > { %v13126_v34 = vadd.f32 %v5348_v10, %v5083_v57  ;;  %v5667_v54 = vadd.f32 %v5542_v16, %v12993_v43 }
 0x324   : > { %v9745_v51 = vpop.f32.mrf.mxu0  ;;  %v9701_v38 = vpop.f32.mrf.mxu1 }
 0x325   : > { %v13129_v9 = vadd.f32 %v9745_v51, %v5668_v58  ;;  %v5672_v46 = vadd.f32 %v9701_v38, %v12998_v7 }
 0x326   : > { %v5845_v20 = vpop.f32.mrf.mxu0  ;;  %v5555_v55 = vpop.f32.mrf.mxu1 }
 0x327   : > { %v13132_v32 = vadd.f32 %v5845_v20, %v5666_v60  ;;  %v5670_v49 = vadd.f32 %v5555_v55, %v13005_v50 }
 0x328   : > { %v9746_v44 = vpop.f32.mrf.mxu0  ;;  %v9702_v28 = vpop.f32.mrf.mxu1 }
 0x329   : > { %v13135_v18 = vadd.f32 %v9746_v44, %v5669_v1  ;;  %v5673_v48 = vadd.f32 %v9702_v28, %v13009_v29 }
 0x32a   : > { %v5848_v40 = vpop.f32.mrf.mxu0  ;;  %v5558_v43 = vpop.f32.mrf.mxu1 }
 0x32b   : > { %v13138_v63 = vadd.f32 %v5848_v40, %v5667_v54  ;;  %v5671_v45 = vadd.f32 %v5558_v43, %v13015_v12 }
 0x32c   : > { %v9749_v27 = vpop.f32.mrf.mxu0  ;;  %v9705_v7 = vpop.f32.mrf.mxu1 }
 0x32d   : > { %v13141_v52 = vadd.f32 %v9749_v27, %v5672_v46  ;;  %v5676_v15 = vadd.f32 %v9705_v7, %v13023_v21 }
 0x32e   : > { %v5861_v42 = vpop.f32.mrf.mxu0  ;;  %v5571_v50 = vpop.f32.mrf.mxu1 }
 0x32f   : > { %v13144_v23 = vadd.f32 %v5861_v42, %v5670_v49  ;;  %v5674_v17 = vadd.f32 %v5571_v50, %v13027_v35 }
 0x330   : > { %v9750_v56 = vpop.f32.mrf.mxu0  ;;  %v9706_v29 = vpop.f32.mrf.mxu1 }
 0x331   : > { %v13147_v57 = vadd.f32 %v9750_v56, %v5673_v48  ;;  %v5677_v33 = vadd.f32 %v9706_v29, %v13030_v4 }
 0x332   : > { %v5864_v5 = vpop.f32.mrf.mxu0  ;;  %v5574_v12 = vpop.f32.mrf.mxu1 }
 0x333   : > { %v13150_v58 = vadd.f32 %v5864_v5, %v5671_v45  ;;  %v5675_v61 = vadd.f32 %v5574_v12, %v13035_v8 }
 0x334   : > { %v9753_v2 = vpop.f32.mrf.mxu0  ;;  %v9709_v21 = vpop.f32.mrf.mxu1 }
 0x335   : > { %v13153_v60 = vadd.f32 %v9753_v2, %v5676_v15  ;;  %v5680_v31 = vadd.f32 %v9709_v21, %v13043_v41 }
 0x336   : > { %v5877_v13 = vpop.f32.mrf.mxu0  ;;  %v5587_v35 = vpop.f32.mrf.mxu1 }
 0x337   : > { %v13156_v1 = vadd.f32 %v5877_v13, %v5674_v17  ;;  %v5678_v10 = vadd.f32 %v5587_v35, %v13049_v37 }
 0x338   : > { %v9754_v16 = vpop.f32.mrf.mxu0  ;;  %v9710_v4 = vpop.f32.mrf.mxu1 }
 0x339   : > { %v13159_v54 = vadd.f32 %v9754_v16, %v5677_v33  ;;  %v5681_v51 = vadd.f32 %v9710_v4, %v13053_v39 }
 0x33a   : > { %v5880_v38 = vpop.f32.mrf.mxu0  ;;  %v5590_v8 = vpop.f32.mrf.mxu1 }
 0x33b   : > { %v13162_v46 = vadd.f32 %v5880_v38, %v5675_v61  ;;  %v5679_v20 = vadd.f32 %v5590_v8, %v13059_v6 }
 0x33c   : > { %v9757_v55 = vpop.f32.mrf.mxu0  ;;  %v9713_v41 = vpop.f32.mrf.mxu1 }
 0x33d   : > { %v13165_v49 = vadd.f32 %v9757_v55, %v5680_v31  ;;  %v5684_v44 = vadd.f32 %v9713_v41, %v13064_v62 }
 0x33e   : > { %v5893_v28 = vpop.f32.mrf.mxu0  ;;  %v5603_v37 = vpop.f32.mrf.mxu1 }
 0x33f   : > { %v13168_v48 = vadd.f32 %v5893_v28, %v5678_v10  ;;  %v5682_v40 = vadd.f32 %v5603_v37, %v13071_v22 }
 0x340   : > { %v9758_v43 = vpop.f32.mrf.mxu0  ;;  %v9714_v39 = vpop.f32.mrf.mxu1 }
 0x341   : > { %v13171_v45 = vadd.f32 %v9758_v43, %v5681_v51  ;;  %v5685_v27 = vadd.f32 %v9714_v39, %v13074_v59 }
 0x342   : > { %v5896_v7 = vpop.f32.mrf.mxu0  ;;  %v5606_v6 = vpop.f32.mrf.mxu1 }
 0x343   : > { %v13174_v15 = vadd.f32 %v5896_v7, %v5679_v20  ;;  %v5683_v42 = vadd.f32 %v5606_v6, %v13079_v0 }
 0x344   : > { %v9761_v50 = vpop.f32.mrf.mxu0  ;;  %v9717_v62 = vpop.f32.mrf.mxu1 }
 0x345   : > { %v13177_v17 = vadd.f32 %v9761_v50, %v5684_v44  ;;  %v5688_v56 = vadd.f32 %v9717_v62, %v13086_v14 }
 0x346   : > { %v5909_v29 = vpop.f32.mrf.mxu0  ;;  %v5619_v22 = vpop.f32.mrf.mxu1 }
 0x347   : > { %v13180_v33 = vadd.f32 %v5909_v29, %v5682_v40  ;;  %v5686_v5 = vadd.f32 %v5619_v22, %v13091_v30 }
 0x348   : > { %v9762_v12 = vpop.f32.mrf.mxu0  ;;  %v9718_v59 = vpop.f32.mrf.mxu1 }
 0x349   : > { %v13183_v61 = vadd.f32 %v9762_v12, %v5685_v27  ;;  %v5689_v2 = vadd.f32 %v9718_v59, %v13094_v24 }
 0x34a   : > { %v5912_v21 = vpop.f32.mrf.mxu0  ;;  %v5622_v0 = vpop.f32.mrf.mxu1 }
 0x34b   : > { %v13186_v31 = vadd.f32 %v5912_v21, %v5683_v42  ;;  %v5687_v13 = vadd.f32 %v5622_v0, %v13097_v47 }
 0x34c   : > { %v9765_v35 = vpop.f32.mrf.mxu0  ;;  %v9721_v14 = vpop.f32.mrf.mxu1 }
 0x34d   : > { %v13189_v10 = vadd.f32 %v9765_v35, %v5688_v56  ;;  %v5692_v16 = vadd.f32 %v9721_v14, %v13101_v26 }
 0x34e   : > { %v5925_v4 = vpop.f32.mrf.mxu0  ;;  %v5635_v30 = vpop.f32.mrf.mxu1 }
 0x34f   : > { %v13192_v51 = vadd.f32 %v5925_v4, %v5686_v5  ;;  %v5690_v38 = vadd.f32 %v5635_v30, %v13107_v3 }
 0x350   : > { %v9766_v8 = vpop.f32.mrf.mxu0  ;;  %v9722_v24 = vpop.f32.mrf.mxu1 }
 0x351   : > { %v13195_v20 = vadd.f32 %v9766_v8, %v5689_v2  ;;  %v5693_v55 = vadd.f32 %v9722_v24, %v13110_v36 }
 0x352   : > { %v5928_v41 = vpop.f32.mrf.mxu0  ;;  %v5638_v47 = vpop.f32.mrf.mxu1 }
 0x353   : > { %v13198_v44 = vadd.f32 %v5928_v41, %v5687_v13  ;;  %v5691_v28 = vadd.f32 %v5638_v47, %v13113_v53 }
 0x354   : > { %v9769_v37 = vpop.f32.mrf.mxu0  ;;  %v9725_v26 = vpop.f32.mrf.mxu1 }
 0x355   : > { %v13201_v40 = vadd.f32 %v9769_v37, %v5692_v16  ;;  %v5696_v43 = vadd.f32 %v9725_v26, %v13117_v11 }
 0x356   : > { %v5941_v39 = vpop.f32.mrf.mxu0  ;;  %v5651_v3 = vpop.f32.mrf.mxu1 }
 0x357   : > { %v13204_v27 = vadd.f32 %v5941_v39, %v5690_v38  ;;  %v5694_v7 = vadd.f32 %v5651_v3, %v13120_v19 }
 0x358   : > { %v9770_v6 = vpop.f32.mrf.mxu0  ;;  %v9726_v36 = vpop.f32.mrf.mxu1 }
 0x359   : > { %v13207_v42 = vadd.f32 %v9770_v6, %v5693_v55  ;;  %v5697_v50 = vadd.f32 %v9726_v36, %v13123_v25 }
 0x35a   : > { %v5944_v62 = vpop.f32.mrf.mxu0  ;;  %v5654_v53 = vpop.f32.mrf.mxu1 }
 0x35b   : > { %v13210_v56 = vadd.f32 %v5944_v62, %v5691_v28  ;;  %v5695_v29 = vadd.f32 %v5654_v53, %v13126_v34 }
 0x35c   : > { %v9773_v22 = vpop.f32.mrf.mxu0  ;;  %v9793_v11 = vpop.f32.mrf.mxu1 }
 0x35d   : > { %13931 = vst [vmem:[#allocation5_spill] sm:$0xff] %v13210_v56  ;;  %v13213_v5 = vadd.f32 %v9773_v22, %v5696_v43  ;;  %v6281_v12 = vadd.f32 %v9793_v11, %v13129_v9 }
 0x35e   : > { %v5957_v59 = vpop.f32.mrf.mxu0  ;;  %v6152_v19 = vpop.f32.mrf.mxu1 }
 0x35f   : > { %v13216_v2 = vadd.f32 %v5957_v59, %v5694_v7  ;;  %v6279_v21 = vadd.f32 %v6152_v19, %v13132_v32 }
 0x360   : > { %v9774_v0 = vpop.f32.mrf.mxu0  ;;  %v13219_v25 = vpop.f32.mrf.mxu1 }
 0x361   : > { %v13221_v13 = vadd.f32 %v9774_v0, %v5697_v50 }
 0x362   : > { %v5960_v35 = vpop.f32.mrf.mxu0  ;;  %v13223_v14 = vpop.f32.mrf.mxu1 }
 0x363   : > { %13932 = vst [vmem:[#allocation3_spill] sm:$0xff] %v13221_v13  ;;  %v13225_v34 = vadd.f32 %v5960_v35, %v5695_v29 }
 0x364   : > { %v9841_v16 = vpop.f32.mrf.mxu0  ;;  %v9797_v4 = vpop.f32.mrf.mxu1 }
 0x365   : > { %13933 = vst [vmem:[#allocation10_spill] sm:$0xff] %v13225_v34  ;;  %v13227_v30 = vadd.f32 %v9841_v16, %v6281_v12  ;;  %v6285_v9 = vadd.f32 %v9797_v4, %v13141_v52 }
 0x366   : > { %v6458_v38 = vpop.f32.mrf.mxu0  ;;  %v6168_v8 = vpop.f32.mrf.mxu1 }
 0x367   : > { %v13230_v24 = vadd.f32 %v6458_v38, %v6279_v21  ;;  %v6283_v32 = vadd.f32 %v6168_v8, %v13144_v23 }
 0x368   : > { %v13233_v55 = vpop.f32.mrf.mxu0  ;;  %v13235_v41 = vpop.f32.mrf.mxu1 }
 0x36a   : > { %v13237_v47 = vpop.f32.mrf.mxu0  ;;  %v13239_v28 = vpop.f32.mrf.mxu1 }
 0x36c   : > { %v9845_v37 = vpop.f32.mrf.mxu0  ;;  %v9801_v26 = vpop.f32.mrf.mxu1 }
 0x36d   : > { %v13241_v43 = vadd.f32 %v9845_v37, %v6285_v9  ;;  %v6289_v52 = vadd.f32 %v9801_v26, %v13153_v60 }
 0x36e   : > { %v6474_v39 = vpop.f32.mrf.mxu0  ;;  %v6184_v3 = vpop.f32.mrf.mxu1 }
 0x36f   : > { %v13244_v7 = vadd.f32 %v6474_v39, %v6283_v32  ;;  %v6287_v23 = vadd.f32 %v6184_v3, %v13156_v1 }
 0x370   : > { %v13247_v6 = vpop.f32.mrf.mxu0  ;;  %v13249_v36 = vpop.f32.mrf.mxu1 }
 0x372   : > { %v13251_v50 = vpop.f32.mrf.mxu0  ;;  %v13253_v62 = vpop.f32.mrf.mxu1 }
 0x374   : > { %v9849_v53 = vpop.f32.mrf.mxu0  ;;  %v9805_v29 = vpop.f32.mrf.mxu1 }
 0x375   : > { %v13255_v22 = vadd.f32 %v9849_v53, %v6289_v52  ;;  %v6293_v60 = vadd.f32 %v9805_v29, %v13165_v49 }
 0x376   : > { %v6490_v11 = vpop.f32.mrf.mxu0  ;;  %v6200_v12 = vpop.f32.mrf.mxu1 }
 0x377   : > { %v13258_v59 = vadd.f32 %v6490_v11, %v6287_v23  ;;  %v6291_v1 = vadd.f32 %v6200_v12, %v13168_v48 }
 0x378   : > { %v13261_v19 = vpop.f32.mrf.mxu0  ;;  %v13263_v21 = vpop.f32.mrf.mxu1 }
 0x37a   : > { %v13265_v0 = vpop.f32.mrf.mxu0  ;;  %v13267_v35 = vpop.f32.mrf.mxu1 }
 0x37c   : > { %v9853_v16 = vpop.f32.mrf.mxu0  ;;  %v9809_v4 = vpop.f32.mrf.mxu1 }
 0x37d   : > { %v13269_v9 = vadd.f32 %v9853_v16, %v6293_v60  ;;  %v6297_v49 = vadd.f32 %v9809_v4, %v13177_v17 }
 0x37e   : > { %v6506_v38 = vpop.f32.mrf.mxu0  ;;  %v6216_v8 = vpop.f32.mrf.mxu1 }
 0x37f   : > { %v13272_v32 = vadd.f32 %v6506_v38, %v6291_v1  ;;  %v6295_v48 = vadd.f32 %v6216_v8, %v13180_v33 }
 0x380   : > { %v13275_v37 = vpop.f32.mrf.mxu0  ;;  %v13277_v26 = vpop.f32.mrf.mxu1 }
 0x382   : > { %v13279_v52 = vpop.f32.mrf.mxu0  ;;  %v13281_v39 = vpop.f32.mrf.mxu1 }
 0x384   : > { %v9857_v3 = vpop.f32.mrf.mxu0  ;;  %v9813_v23 = vpop.f32.mrf.mxu1 }
 0x385   : > { %v13283_v53 = vadd.f32 %v9857_v3, %v6297_v49  ;;  %v6301_v17 = vadd.f32 %v9813_v23, %v13189_v10 }
 0x386   : > { %v6522_v29 = vpop.f32.mrf.mxu0  ;;  %v6232_v60 = vpop.f32.mrf.mxu1 }
 0x387   : > { %13934 = vst [vmem:[#allocation9_spill] sm:$0xff] %v13283_v53  ;;  %v13286_v11 = vadd.f32 %v6522_v29, %v6295_v48  ;;  %v6299_v33 = vadd.f32 %v6232_v60, %v13192_v51 }
 0x388   : > { %v13289_v12 = vpop.f32.mrf.mxu0  ;;  %v13291_v1 = vpop.f32.mrf.mxu1 }
 0x389   : > { %13935 = vst [vmem:[#allocation4_spill] sm:$0xff] %v13286_v11 }
 0x38a   : > { %v13293_v16 = vpop.f32.mrf.mxu0  ;;  %v13295_v4 = vpop.f32.mrf.mxu1 }
 0x38c   : > { %v9861_v38 = vpop.f32.mrf.mxu0  ;;  %v9817_v8 = vpop.f32.mrf.mxu1 }
 0x38d   : > { %v13297_v49 = vadd.f32 %v9861_v38, %v6301_v17  ;;  %v6305_v10 = vadd.f32 %v9817_v8, %v13201_v40 }
 0x38e   : > { %v6538_v3 = vpop.f32.mrf.mxu0  ;;  %v6248_v23 = vpop.f32.mrf.mxu1 }
 0x38f   : > { %13936 = vst [vmem:[#allocation31_spill] sm:$0xff] %v13297_v49  ;;  %v13300_v48 = vadd.f32 %v6538_v3, %v6299_v33  ;;  %v6303_v51 = vadd.f32 %v6248_v23, %v13204_v27 }
 0x390   : > { %v13303_v29 = vpop.f32.mrf.mxu0  ;;  %v13305_v60 = vpop.f32.mrf.mxu1 }
 0x391   : > { %13937 = vst [vmem:[#allocation25_spill] sm:$0xff] %v13300_v48 }
 0x392   : > { %v13307_v34 = vpop.f32.mrf.mxu0  ;;  %v13309_v13 = vpop.f32.mrf.mxu1 }
 0x393   : > { %13938 = vst [vmem:[#allocation26_spill] sm:$0xff] %v13309_v13 }
 0x394   : > { %v9865_v11 = vpop.f32.mrf.mxu0  ;;  %v9821_v53 = vpop.f32.mrf.mxu1 }
 0x395   : > { %v13311_v17 = vadd.f32 %v9865_v11, %v6305_v10  ;;  %v6309_v40 = vadd.f32 %v9821_v53, %v13213_v5  ;;  %v6282_v53 = vadd.f32 %v13219_v25, %v13135_v18  ;;  %v13345_v18 = vld [vmem:[%s13611_s5] ss:$0 sm:$0xff] }
 0x396   : > { %v6554_v38 = vpop.f32.mrf.mxu0  ;;  %v6264_v8 = vpop.f32.mrf.mxu1 }
 0x397   : > { %13939 = vst [vmem:[#allocation33_spill] sm:$0xff] %v13311_v17  ;;  %v13314_v33 = vadd.f32 %v6554_v38, %v6303_v51  ;;  %v6307_v27 = vadd.f32 %v6264_v8, %v13216_v2  ;;  %v6280_v2 = vadd.f32 %v13223_v14, %v13138_v63  ;;  %v13350_v63 = vld [vmem:[%s13614_s8] ss:$0 sm:$0xff]  ;;  %v6284_v14 = vadd.f32 %v13239_v28, %v13150_v58 }
 0x398   : > { %v13317_v3 = vpop.f32.mrf.mxu0  ;;  %v13319_v23 = vpop.f32.mrf.mxu1 }
 0x399   : > { %13940 = vst [vmem:[#allocation27_spill] sm:$0xff] %v13314_v33  ;;  %v6588_v33 = vadd.f32 %v13233_v55, %v6282_v53  ;;  %v6290_v55 = vadd.f32 %v13249_v36, %v13159_v54  ;;  %v6294_v54 = vadd.f32 %v13263_v21, %v13171_v45  ;;  %v6292_v36 = vadd.f32 %v13267_v35, %v13174_v15 }
 0x39a   : > { %v13321_v48 = vpop.f32.mrf.mxu0  ;;  %v13323_v49 = vpop.f32.mrf.mxu1  ;;  %v6298_v35 = vadd.f32 %v13277_v26, %v13183_v61 }
 0x39b   : > { %v13388_v15 = vadd.f32 %v13275_v37, %v6294_v54  ;;  %v13391_v21 = vadd.f32 %v13279_v52, %v6292_v36 }
 0x39c   : > { %v9869_v13 = vpop.f32.mrf.mxu0  ;;  %v9889_v56 = vpop.f32.mrf.mxu1 }
 0x39d   : > { %v13325_v11 = vadd.f32 %v9869_v13, %v6309_v40  ;;  %v6893_v17 = vadd.f32 %v9889_v56, %v13227_v30  ;;  %v6586_v13 = vadd.f32 %v13237_v47, %v6280_v2  ;;  %v6286_v40 = vadd.f32 %v13235_v41, %v13147_v57  ;;  %v13361_v47 = vld [vmem:[%s13615_s9] ss:$0 sm:$0xff] }
 0x39e   : > { %v6570_v10 = vpop.f32.mrf.mxu0  ;;  %v6764_v5 = vpop.f32.mrf.mxu1 }
 0x39f   : > { %13941 = vst [vmem:[#allocation28_spill] sm:$0xff] %v13325_v11  ;;  %v13329_v51 = vadd.f32 %v6570_v10, %v6307_v27  ;;  %v6891_v25 = vadd.f32 %v6764_v5, %v13230_v24  ;;  %v6592_v57 = vadd.f32 %v13247_v6, %v6286_v40  ;;  %v6590_v24 = vadd.f32 %v13251_v50, %v6284_v14  ;;  %v13378_v50 = vld [vmem:[%s13612_s6] ss:$0 sm:$0xff] }
 0x3a0   : > { %v13333_v38 = vpop.f32.mrf.mxu0  ;;  %v9890_v8 = vpop.f32.mrf.mxu1  ;;  %v6288_v5 = vadd.f32 %v13253_v62, %v13162_v46  ;;  %v6932_v58 = vmul.f32 %v13345_v18, %v6893_v17  ;;  %v13369_v6 = vadd.f32 %v13261_v19, %v6290_v55 }
 0x3a1   : > { %v6894_v30 = vadd.f32 %v9890_v8, %v6588_v33  ;;  %v6930_v46 = vmul.f32 %v13345_v18, %v6891_v25 }
 0x3a2   : > { %v13340_v11 = vpop.f32.mrf.mxu0  ;;  %v6767_v56 = vpop.f32.mrf.mxu1  ;;  %v13382_v33 = vadd.f32 %v13265_v0, %v6288_v5  ;;  %v6971_v40 = vadd.f32 %v13378_v50, %v6932_v58 }
 0x3a3   : > { %v6892_v27 = vadd.f32 %v6767_v56, %v6586_v13  ;;  %v6933_v45 = vmul.f32 %v13345_v18, %v6894_v30  ;;  %v6296_v13 = vadd.f32 %v13281_v39, %v13186_v31  ;;  %v13402_v56 = vadd.f32 %v13289_v12, %v6298_v35 }
 0x3a4   : > { %v9923_v41 = vpop.f32.mrf.mxu0  ;;  %v9893_v10 = vpop.f32.mrf.mxu1  ;;  %v6969_v52 = vadd.f32 %v13378_v50, %v6930_v46  ;;  %v6302_v12 = vadd.f32 %v13291_v1, %v13195_v20 }
 0x3a5   : > { %v7495_v28 = vmul.f32 %v9923_v41, %v13350_v63  ;;  %v6931_v8 = vmul.f32 %v13345_v18, %v6892_v27  ;;  %v6897_v26 = vadd.f32 %v9893_v10, %v13241_v43  ;;  %v6972_v31 = vadd.f32 %v13378_v50, %v6933_v45 }
 0x3a6   : > { %v7359_v62 = vpop.f32.mrf.mxu0  ;;  %v6780_v17 = vpop.f32.mrf.mxu1  ;;  %v13417_v46 = vadd.f32 %v13293_v16, %v6296_v13 }
 0x3a7   : > { %v7534_v19 = vadd.f32 %v13361_v47, %v7495_v28  ;;  %v7493_v53 = vmul.f32 %v13350_v63, %v7359_v62  ;;  %v6895_v14 = vadd.f32 %v6780_v17, %v13244_v7  ;;  %v6970_v5 = vadd.f32 %v13378_v50, %v6931_v8 }
 0x3a8   : > { %v9924_v2 = vpop.f32.mrf.mxu0  ;;  %v9894_v0 = vpop.f32.mrf.mxu1  ;;  %v6936_v62 = vmul.f32 %v13345_v18, %v6897_v26 }
 0x3a9   : > { %v7532_v25 = vadd.f32 %v13361_v47, %v7493_v53  ;;  %v7496_v37 = vmul.f32 %v9924_v2, %v13350_v63  ;;  %v7566_v55 = vadd.f32 %v7534_v19, %v6971_v40  ;;  %v6898_v28 = vadd.f32 %v9894_v0, %v6592_v57 }
 0x3aa   : > { %v7362_v61 = vpop.f32.mrf.mxu0  ;;  %v6783_v30 = vpop.f32.mrf.mxu1  ;;  %v6934_v20 = vmul.f32 %v13345_v18, %v6895_v14  ;;  %v13425_v2 = vadd.f32 %v13295_v4, %v13198_v44  ;;  %v13437_v4 = vadd.f32 %v13303_v29, %v6302_v12 }
 0x3ab   : > { %v7535_v39 = vadd.f32 %v13361_v47, %v7496_v37  ;;  %v7494_v41 = vmul.f32 %v13350_v63, %v7362_v61  ;;  %v7564_v27 = vadd.f32 %v7532_v25, %v6969_v52  ;;  %v6896_v36 = vadd.f32 %v6783_v30, %v6590_v24 }
 0x3ac   : > { %v9927_v58 = vpop.f32.mrf.mxu0  ;;  %v9897_v54 = vpop.f32.mrf.mxu1  ;;  %v7598_v57 = vmax.f32 %v7566_v55, 0.0  ;;  %v6975_v37 = vadd.f32 %v13378_v50, %v6936_v62  ;;  %v6973_v55 = vadd.f32 %v13378_v50, %v6934_v20 }
 0x3ad   : > { %v7567_v43 = vadd.f32 %v7535_v39, %v6972_v31  ;;  %v7533_v7 = vadd.f32 %v13361_v47, %v7494_v41  ;;  %v7499_v10 = vmul.f32 %v9927_v58, %v13350_v63  ;;  %v6901_v17 = vadd.f32 %v9897_v54, %v13255_v22 }
 0x3ae   : > { %v7375_v1 = vpop.f32.mrf.mxu0  ;;  %v6796_v19 = vpop.f32.mrf.mxu1  ;;  %v7596_v24 = vmax.f32 %v7564_v27, 0.0  ;;  %v6937_v22 = vmul.f32 %v13345_v18, %v6898_v28  ;;  %v6935_v44 = vmul.f32 %v13345_v18, %v6896_v36 }
 0x3af   : > { %v7599_v53 = vmax.f32 %v7567_v43, 0.0  ;;  %v7565_v45 = vadd.f32 %v7533_v7, %v6970_v5  ;;  %v7497_v35 = vmul.f32 %v13350_v63, %v7375_v1  ;;  %v7538_v16 = vadd.f32 %v13361_v47, %v7499_v10 }
 0x3b0   : > { %v9928_v8 = vpop.f32.mrf.mxu0  ;;  %v9898_v0 = vpop.f32.mrf.mxu1  ;;  %v6940_v26 = vmul.f32 %v13345_v18, %v6901_v17  ;;  %v6976_v29 = vadd.f32 %v13378_v50, %v6937_v22  ;;  %v6899_v5 = vadd.f32 %v6796_v19, %v13258_v59  ;;  %v6974_v54 = vadd.f32 %v13378_v50, %v6935_v44 }
 0x3b1   : > { %v8684_v13 = vpack.c.bf16 %v7599_v53, %v7598_v57  ;;  %v7597_v40 = vmax.f32 %v7565_v45, 0.0  ;;  %v7536_v25 = vadd.f32 %v13361_v47, %v7497_v35  ;;  %v7500_v52 = vmul.f32 %v9928_v8, %v13350_v63 }
 0x3b2   : > { %v7378_v61 = vpop.f32.mrf.mxu0  ;;  %v6799_v14 = vpop.f32.mrf.mxu1  ;;  %v6902_v39 = vadd.f32 %v9898_v0, %v13369_v6  ;;  %v7570_v41 = vadd.f32 %v7538_v16, %v6975_v37  ;;  %v13455_v6 = vadd.f32 %v13305_v60, %v13207_v42  ;;  %v6979_v36 = vadd.f32 %v13378_v50, %v6940_v26 }
 0x3b3   : > { %8780 = vst [vmem:[%s13430_s26 + $0x8] sm:$0xff] %v8684_v13   ;;  %v8679_v30 = vpack.c.bf16 %v7597_v40, %v7596_v24  ;;  %v7498_v31 = vmul.f32 %v13350_v63, %v7378_v61  ;;  %v7539_v12 = vadd.f32 %v13361_v47, %v7500_v52  ;;  %v7568_v28 = vadd.f32 %v7536_v25, %v6973_v55 }
 0x3b4   : > { %v9931_v27 = vpop.f32.mrf.mxu0  ;;  %v9901_v58 = vpop.f32.mrf.mxu1  ;;  %v6900_v20 = vadd.f32 %v6799_v14, %v13382_v33  ;;  %v6941_v57 = vmul.f32 %v13345_v18, %v6902_v39  ;;  %v7602_v53 = vmax.f32 %v7570_v41, 0.0  ;;  %v6938_v35 = vmul.f32 %v13345_v18, %v6899_v5 }
 0x3b5   : > { %8680 = vst [vmem:[%s13430_s26] sm:$0xff] %v8679_v30   ;;  %v7537_v43 = vadd.f32 %v13361_v47, %v7498_v31  ;;  %v7503_v7 = vmul.f32 %v9931_v27, %v13350_v63  ;;  %v7571_v10 = vadd.f32 %v7539_v12, %v6976_v29  ;;  %v6905_v60 = vadd.f32 %v9901_v58, %v13269_v9 }
 0x3b6   : > { %v7391_v62 = vpop.f32.mrf.mxu0  ;;  %v6812_v59 = vpop.f32.mrf.mxu1  ;;  %v7600_v16 = vmax.f32 %v7568_v28, 0.0  ;;  %v6939_v25 = vmul.f32 %v13345_v18, %v6900_v20  ;;  %v6980_v9 = vadd.f32 %v13378_v50, %v6941_v57  ;;  %v6977_v14 = vadd.f32 %v13378_v50, %v6938_v35 }
 0x3b7   : > { %v7569_v1 = vadd.f32 %v7537_v43, %v6974_v54  ;;  %v7542_v17 = vadd.f32 %v13361_v47, %v7503_v7  ;;  %v7501_v19 = vmul.f32 %v13350_v63, %v7391_v62  ;;  %v7603_v45 = vmax.f32 %v7571_v10, 0.0  ;;  %v13942_v10 = vld [vmem:[#allocation5_spill] sm:$0xff] }
 0x3b8   : > { %v9932_v42 = vpop.f32.mrf.mxu0  ;;  %v9902_v24 = vpop.f32.mrf.mxu1  ;;  %v6903_v8 = vadd.f32 %v6812_v59, %v13272_v32  ;;  %v6944_v30 = vmul.f32 %v13345_v18, %v6905_v60  ;;  %v13478_v41 = vadd.f32 %v13307_v34, %v13425_v2  ;;  %v6978_v58 = vadd.f32 %v13378_v50, %v6939_v25 }
 0x3b9   : > { %v7601_v22 = vmax.f32 %v7569_v1, 0.0  ;;  %v7504_v33 = vmul.f32 %v9932_v42, %v13350_v63  ;;  %v8694_v0 = vpack.c.bf16 %v7603_v45, %v7602_v53  ;;  %v7574_v13 = vadd.f32 %v7542_v17, %v6979_v36  ;;  %v13943_v36 = vld [vmem:[#allocation26_spill] sm:$0xff] }
 0x3ba   : > { %v7540_v40 = vadd.f32 %v13361_v47, %v7501_v19  ;;  %v7394_v44 = vpop.f32.mrf.mxu0  ;;  %v6815_v37 = vpop.f32.mrf.mxu1  ;;  %v6906_v26 = vadd.f32 %v9902_v24, %v13388_v15  ;;  %v6942_v15 = vmul.f32 %v13345_v18, %v6903_v8  ;;  %v6304_v62 = vadd.f32 %v13943_v36, %v13942_v10 }
 0x3bb   : > { %v8689_v52 = vpack.c.bf16 %v7601_v22, %v7600_v16  ;;  %v7543_v61 = vadd.f32 %v13361_v47, %v7504_v33  ;;  %8782 = vst [vmem:[%s13430_s26 + $0x18] sm:$0xff] %v8694_v0   ;;  %v7502_v32 = vmul.f32 %v13350_v63, %v7394_v44  ;;  %v6904_v31 = vadd.f32 %v6815_v37, %v13391_v21  ;;  %v13944_v16 = vld [vmem:[#allocation9_spill] sm:$0xff]  ;;  %v13945_v33 = vld [vmem:[#allocation4_spill] sm:$0xff] }
 0x3bc   : > { %v9935_v55 = vpop.f32.mrf.mxu0  ;;  %v9905_v39 = vpop.f32.mrf.mxu1  ;;  %v7606_v27 = vmax.f32 %v7574_v13, 0.0  ;;  %v7572_v5 = vadd.f32 %v7540_v40, %v6977_v14  ;;  %v6945_v2 = vmul.f32 %v13345_v18, %v6906_v26  ;;  %v6983_v59 = vadd.f32 %v13378_v50, %v6944_v30 }
 0x3bd   : > { %8781 = vst [vmem:[%s13430_s26 + $0x10] sm:$0xff] %v8689_v52   ;;  %v7575_v29 = vadd.f32 %v7543_v61, %v6980_v9  ;;  %v7507_v12 = vmul.f32 %v9935_v55, %v13350_v63  ;;  %v7541_v28 = vadd.f32 %v13361_v47, %v7502_v32  ;;  %v6943_v17 = vmul.f32 %v13345_v18, %v6904_v31 }
 0x3be   : > { %v7407_v54 = vpop.f32.mrf.mxu0  ;;  %v6828_v43 = vpop.f32.mrf.mxu1  ;;  %v6981_v53 = vadd.f32 %v13378_v50, %v6942_v15  ;;  %v7604_v42 = vmax.f32 %v7572_v5, 0.0  ;;  %v6909_v22 = vadd.f32 %v9905_v39, %v13944_v16  ;;  %v6984_v40 = vadd.f32 %v13378_v50, %v6945_v2 }
 0x3bf   : > { %v7607_v21 = vmax.f32 %v7575_v29, 0.0  ;;  %v7546_v7 = vadd.f32 %v13361_v47, %v7507_v12  ;;  %v7505_v34 = vmul.f32 %v13350_v63, %v7407_v54  ;;  %v7573_v20 = vadd.f32 %v7541_v28, %v6978_v58 }
 0x3c0   : > { %v9936_v1 = vpop.f32.mrf.mxu0  ;;  %v9906_v19 = vpop.f32.mrf.mxu1  ;;  %v6907_v8 = vadd.f32 %v6828_v43, %v13945_v33  ;;  %v6982_v9 = vadd.f32 %v13378_v50, %v6943_v17  ;;  %v13508_v39 = vadd.f32 %v13317_v3, %v13455_v6  ;;  %v6948_v29 = vmul.f32 %v13345_v18, %v6909_v22  ;;  %v13948_v22 = vld [vmem:[#allocation25_spill] sm:$0xff] }
 0x3c1   : > { %v8704_v57 = vpack.c.bf16 %v7607_v21, %v7606_v27  ;;  %v7544_v45 = vadd.f32 %v13361_v47, %v7505_v34  ;;  %v7508_v35 = vmul.f32 %v9936_v1, %v13350_v63  ;;  %v7605_v60 = vmax.f32 %v7573_v20, 0.0  ;;  %v13946_v27 = vld [vmem:[#allocation31_spill] sm:$0xff] }
 0x3c2   : > { %v7410_v24 = vpop.f32.mrf.mxu0  ;;  %v6831_v0 = vpop.f32.mrf.mxu1  ;;  %v7578_v13 = vadd.f32 %v7546_v7, %v6983_v59  ;;  %v6910_v26 = vadd.f32 %v9906_v19, %v13402_v56  ;;  %v6946_v12 = vmul.f32 %v13345_v18, %v6907_v8  ;;  %v13947_v21 = vld [vmem:[#allocation3_spill] sm:$0xff]  ;;  %v6610_v1 = vadd.f32 %v13321_v48, %v6304_v62 }
 0x3c3   : > { %8784 = vst [vmem:[%s13430_s26 + $0x28] sm:$0xff] %v8704_v57   ;;  %v7547_v25 = vadd.f32 %v13361_v47, %v7508_v35  ;;  %v7506_v44 = vmul.f32 %v13350_v63, %v7410_v24  ;;  %v8699_v37 = vpack.c.bf16 %v7605_v60, %v7604_v42  ;;  %v7576_v52 = vadd.f32 %v7544_v45, %v6981_v53 }
 0x3c4   : > { %v9939_v61 = vpop.f32.mrf.mxu0  ;;  %v9909_v14 = vpop.f32.mrf.mxu1  ;;  %v6908_v31 = vadd.f32 %v6831_v0, %v13417_v46  ;;  %v7610_v58 = vmax.f32 %v7578_v13, 0.0  ;;  %v13517_v46 = vadd.f32 %v13319_v23, %v13947_v21  ;;  %v6949_v7 = vmul.f32 %v13345_v18, %v6910_v26 }
 0x3c5   : > { %v7579_v32 = vadd.f32 %v7547_v25, %v6984_v40  ;;  %v7545_v30 = vadd.f32 %v13361_v47, %v7506_v44  ;;  %v7511_v55 = vmul.f32 %v9939_v61, %v13350_v63  ;;  %8783 = vst [vmem:[%s13430_s26 + $0x20] sm:$0xff] %v8699_v37   ;;  %v6913_v56 = vadd.f32 %v9909_v14, %v13946_v27  ;;  %v13949_v44 = vld [vmem:[#allocation10_spill] sm:$0xff] }
 0x3c6   : > { %v7423_v15 = vpop.f32.mrf.mxu0  ;;  %v6844_v5 = vpop.f32.mrf.mxu1  ;;  %v7608_v3 = vmax.f32 %v7576_v52, 0.0  ;;  %v6947_v59 = vmul.f32 %v13345_v18, %v6908_v31  ;;  %v6987_v17 = vadd.f32 %v13378_v50, %v6948_v29  ;;  %v6985_v35 = vadd.f32 %v13378_v50, %v6946_v12 }
 0x3c7   : > { %v7611_v28 = vmax.f32 %v7579_v32, 0.0  ;;  %v7577_v54 = vadd.f32 %v7545_v30, %v6982_v9  ;;  %v7509_v43 = vmul.f32 %v13350_v63, %v7423_v15  ;;  %v7550_v6 = vadd.f32 %v13361_v47, %v7511_v55 }
 0x3c8   : > { %v9940_v34 = vpop.f32.mrf.mxu0  ;;  %v9910_v2 = vpop.f32.mrf.mxu1  ;;  %v6952_v57 = vmul.f32 %v13345_v18, %v6913_v56  ;;  %v6988_v48 = vadd.f32 %v13378_v50, %v6949_v7  ;;  %v6911_v33 = vadd.f32 %v6844_v5, %v13948_v22  ;;  %v6986_v13 = vadd.f32 %v13378_v50, %v6947_v59 }
 0x3c9   : > { %v8714_v10 = vpack.c.bf16 %v7611_v28, %v7610_v58  ;;  %v7609_v36 = vmax.f32 %v7577_v54, 0.0  ;;  %v7548_v20 = vadd.f32 %v13361_v47, %v7509_v43  ;;  %v7512_v23 = vmul.f32 %v9940_v34, %v13350_v63  ;;  %v13951_v28 = vld [vmem:[#allocation27_spill] sm:$0xff] }
 0x3ca   : > { %v7426_v19 = vpop.f32.mrf.mxu0  ;;  %v6847_v53 = vpop.f32.mrf.mxu1  ;;  %v6914_v60 = vadd.f32 %v9910_v2, %v13437_v4  ;;  %v7582_v24 = vadd.f32 %v7550_v6, %v6987_v17  ;;  %v6308_v4 = vadd.f32 %v13323_v49, %v13949_v44  ;;  %v6991_v52 = vadd.f32 %v13378_v50, %v6952_v57  ;;  %v13950_v49 = vld [vmem:[#allocation33_spill] sm:$0xff] }
 0x3cb   : > { %8786 = vst [vmem:[%s13430_s26 + $0x38] sm:$0xff] %v8714_v10   ;;  %v8709_v45 = vpack.c.bf16 %v7609_v36, %v7608_v3  ;;  %v7510_v42 = vmul.f32 %v13350_v63, %v7426_v19  ;;  %v7551_v62 = vadd.f32 %v13361_v47, %v7512_v23  ;;  %v7580_v0 = vadd.f32 %v7548_v20, %v6985_v35 }
 0x3cc   : > { %v9943_v16 = vpop.f32.mrf.mxu0  ;;  %v9913_v8 = vpop.f32.mrf.mxu1  ;;  %v6912_v61 = vadd.f32 %v6847_v53, %v13478_v41  ;;  %v6953_v55 = vmul.f32 %v13345_v18, %v6914_v60  ;;  %v7614_v31 = vmax.f32 %v7582_v24, 0.0  ;;  %v6950_v12 = vmul.f32 %v13345_v18, %v6911_v33 }
 0x3cd   : > { %8785 = vst [vmem:[%s13430_s26 + $0x30] sm:$0xff] %v8709_v45   ;;  %v7549_v40 = vadd.f32 %v13361_v47, %v7510_v42  ;;  %v7515_v25 = vmul.f32 %v9943_v16, %v13350_v63  ;;  %v7583_v37 = vadd.f32 %v7551_v62, %v6988_v48  ;;  %v6917_v27 = vadd.f32 %v9913_v8, %v13950_v49 }
 0x3ce   : > { %v7439_v9 = vpop.f32.mrf.mxu0  ;;  %v6860_v26 = vpop.f32.mrf.mxu1  ;;  %v7612_v5 = vmax.f32 %v7580_v0, 0.0  ;;  %v6951_v6 = vmul.f32 %v13345_v18, %v6912_v61  ;;  %v6992_v10 = vadd.f32 %v13378_v50, %v6953_v55  ;;  %v6989_v59 = vadd.f32 %v13378_v50, %v6950_v12 }
 0x3cf   : > { %v7581_v14 = vadd.f32 %v7549_v40, %v6986_v13  ;;  %v7554_v32 = vadd.f32 %v13361_v47, %v7515_v25  ;;  %v7513_v30 = vmul.f32 %v13350_v63, %v7439_v9  ;;  %v7615_v29 = vmax.f32 %v7583_v37, 0.0 }
 0x3d0   : > { %v9944_v15 = vpop.f32.mrf.mxu0  ;;  %v9914_v56 = vpop.f32.mrf.mxu1  ;;  %v6915_v54 = vadd.f32 %v6860_v26, %v13951_v28  ;;  %v6956_v23 = vmul.f32 %v13345_v18, %v6917_v27  ;;  %v6616_v45 = vadd.f32 %v13333_v38, %v13517_v46  ;;  %v6990_v48 = vadd.f32 %v13378_v50, %v6951_v6 }
 0x3d1   : > { %v7613_v58 = vmax.f32 %v7581_v14, 0.0  ;;  %v7516_v41 = vmul.f32 %v9944_v15, %v13350_v63  ;;  %v8724_v43 = vpack.c.bf16 %v7615_v29, %v7614_v31  ;;  %v7586_v21 = vadd.f32 %v7554_v32, %v6991_v52 }
 0x3d2   : > { %v7552_v3 = vadd.f32 %v13361_v47, %v7513_v30  ;;  %v7442_v7 = vpop.f32.mrf.mxu0  ;;  %v6863_v34 = vpop.f32.mrf.mxu1  ;;  %v6918_v20 = vadd.f32 %v9914_v56, %v13508_v39  ;;  %v6954_v60 = vmul.f32 %v13345_v18, %v6915_v54  ;;  %v6614_v46 = vadd.f32 %v13340_v11, %v6308_v4  ;;  %v13952_v30 = vld [vmem:[#allocation28_spill] sm:$0xff] }
 0x3d3   : > { %v8719_v2 = vpack.c.bf16 %v7613_v58, %v7612_v5  ;;  %v7555_v36 = vadd.f32 %v13361_v47, %v7516_v41  ;;  %8788 = vst [vmem:[%s13430_s26 + $0x48] sm:$0xff] %v8724_v43   ;;  %v7514_v17 = vmul.f32 %v13350_v63, %v7442_v7  ;;  %v6916_v57 = vadd.f32 %v6863_v34, %v6610_v1 }
 0x3d4   : > { %v9947_v19 = vpop.f32.mrf.mxu0  ;;  %v9917_v53 = vpop.f32.mrf.mxu1  ;;  %v7618_v39 = vmax.f32 %v7586_v21, 0.0  ;;  %v7584_v24 = vadd.f32 %v7552_v3, %v6989_v59  ;;  %v6957_v38 = vmul.f32 %v13345_v18, %v6918_v20  ;;  %v6995_v13 = vadd.f32 %v13378_v50, %v6956_v23 }
 0x3d5   : > { %8787 = vst [vmem:[%s13430_s26 + $0x40] sm:$0xff] %v8719_v2   ;;  %v7587_v35 = vadd.f32 %v7555_v36, %v6992_v10  ;;  %v7519_v42 = vmul.f32 %v9947_v19, %v13350_v63  ;;  %v7553_v62 = vadd.f32 %v13361_v47, %v7514_v17  ;;  %v6955_v25 = vmul.f32 %v13345_v18, %v6916_v57 }
 0x3d6   : > { %v7455_v16 = vpop.f32.mrf.mxu0  ;;  %v6876_v22 = vpop.f32.mrf.mxu1  ;;  %v6993_v52 = vadd.f32 %v13378_v50, %v6954_v60  ;;  %v7616_v26 = vmax.f32 %v7584_v24, 0.0  ;;  %v6921_v11 = vadd.f32 %v9917_v53, %v13952_v30  ;;  %v6996_v29 = vadd.f32 %v13378_v50, %v6957_v38 }
 0x3d7   : > { %v7619_v33 = vmax.f32 %v7587_v35, 0.0  ;;  %v7558_v1 = vadd.f32 %v13361_v47, %v7519_v42  ;;  %v7517_v8 = vmul.f32 %v13350_v63, %v7455_v16  ;;  %v7585_v0 = vadd.f32 %v7553_v62, %v6990_v48 }
 0x3d8   : > { %v9948_v40 = vpop.f32.mrf.mxu0  ;;  %v9918_v44 = vpop.f32.mrf.mxu1  ;;  %v6919_v4 = vadd.f32 %v6876_v22, %v13329_v51  ;;  %v6994_v56 = vadd.f32 %v13378_v50, %v6955_v25  ;;  %v6960_v43 = vmul.f32 %v13345_v18, %v6921_v11 }
 0x3d9   : > { %v8734_v37 = vpack.c.bf16 %v7619_v33, %v7618_v39  ;;  %v7556_v9 = vadd.f32 %v13361_v47, %v7517_v8  ;;  %v7520_v61 = vmul.f32 %v9948_v40, %v13350_v63  ;;  %v7617_v14 = vmax.f32 %v7585_v0, 0.0 }
 0x3da   : > { %v7458_v32 = vpop.f32.mrf.mxu0  ;;  %v6879_v55 = vpop.f32.mrf.mxu1  ;;  %v7590_v31 = vadd.f32 %v7558_v1, %v6995_v13  ;;  %v6922_v58 = vadd.f32 %v9918_v44, %v6616_v45  ;;  %v6958_v21 = vmul.f32 %v13345_v18, %v6919_v4  ;;  %v6999_v53 = vadd.f32 %v13378_v50, %v6960_v43 }
 0x3db   : > { %8790 = vst [vmem:[%s13430_s26 + $0x58] sm:$0xff] %v8734_v37   ;;  %v7559_v12 = vadd.f32 %v13361_v47, %v7520_v61  ;;  %v7518_v15 = vmul.f32 %v13350_v63, %v7458_v32  ;;  %v8729_v49 = vpack.c.bf16 %v7617_v14, %v7616_v26  ;;  %v7588_v27 = vadd.f32 %v7556_v9, %v6993_v52 }
 0x3dc   : > { %v9951_v5 = vpop.f32.mrf.mxu0  ;;  %v6920_v54 = vadd.f32 %v6879_v55, %v6614_v46  ;;  %v7622_v6 = vmax.f32 %v7590_v31, 0.0  ;;  %v6961_v20 = vmul.f32 %v13345_v18, %v6922_v58  ;;  %v6997_v60 = vadd.f32 %v13378_v50, %v6958_v21 }
 0x3dd   : > { %v7591_v41 = vadd.f32 %v7559_v12, %v6996_v29  ;;  %v7557_v28 = vadd.f32 %v13361_v47, %v7518_v15  ;;  %v7523_v51 = vmul.f32 %v9951_v5, %v13350_v63  ;;  %8789 = vst [vmem:[%s13430_s26 + $0x50] sm:$0xff] %v8729_v49   ;;  %v7620_v10 = vmax.f32 %v7588_v27, 0.0 }
 0x3de   : > { %v7471_v3 = vpop.f32.mrf.mxu0  ;;  %v6959_v57 = vmul.f32 %v13345_v18, %v6920_v54  ;;  %v7000_v48 = vadd.f32 %v13378_v50, %v6961_v20 }
 0x3df   : > { %v7623_v7 = vmax.f32 %v7591_v41, 0.0  ;;  %v7589_v34 = vadd.f32 %v7557_v28, %v6994_v56  ;;  %v7521_v2 = vmul.f32 %v13350_v63, %v7471_v3  ;;  %v7562_v36 = vadd.f32 %v13361_v47, %v7523_v51 }
 0x3e0   : > { %v9952_v59 = vpop.f32.mrf.mxu0  ;;  %v6998_v16 = vadd.f32 %v13378_v50, %v6959_v57 }
 0x3e1   : > { %v8744_v17 = vpack.c.bf16 %v7623_v7, %v7622_v6  ;;  %v7621_v23 = vmax.f32 %v7589_v34, 0.0  ;;  %v7560_v19 = vadd.f32 %v13361_v47, %v7521_v2  ;;  %v7524_v45 = vmul.f32 %v9952_v59, %v13350_v63 }
 0x3e2   : > { %v7474_v35 = vpop.f32.mrf.mxu0  ;;  %v7594_v24 = vadd.f32 %v7562_v36, %v6999_v53 }
 0x3e3   : > { %8792 = vst [vmem:[%s13430_s26 + $0x68] sm:$0xff] %v8744_v17   ;;  %v8739_v42 = vpack.c.bf16 %v7621_v23, %v7620_v10  ;;  %v7522_v39 = vmul.f32 %v13350_v63, %v7474_v35  ;;  %v7563_v62 = vadd.f32 %v13361_v47, %v7524_v45  ;;  %v7592_v18 = vadd.f32 %v7560_v19, %v6997_v60 }
 0x3e4   : > { %v7626_v8 = vmax.f32 %v7594_v24, 0.0 }
 0x3e5   : > { %8791 = vst [vmem:[%s13430_s26 + $0x60] sm:$0xff] %v8739_v42   ;;  %v7561_v22 = vadd.f32 %v13361_v47, %v7522_v39  ;;  %v7595_v33 = vadd.f32 %v7563_v62, %v7000_v48  ;;  %v7624_v46 = vmax.f32 %v7592_v18, 0.0 }
 0x3e7   : > { %v7593_v1 = vadd.f32 %v7561_v22, %v6998_v16  ;;  %v7627_v38 = vmax.f32 %v7595_v33, 0.0 }
 0x3e9   : > { %v7625_v0 = vmax.f32 %v7593_v1, 0.0  ;;  %v8754_v63 = vpack.c.bf16 %v7627_v38, %v7626_v8 }
 0x3eb   : > { %v8749_v13 = vpack.c.bf16 %v7625_v0, %v7624_v46  ;;  %8794 = vst [vmem:[%s13430_s26 + $0x78] sm:$0xff] %v8754_v63  }
 0x3ed   : > { %8793 = vst [vmem:[%s13430_s26 + $0x70] sm:$0xff] %v8749_v13  }
 0x3ee PF: > { %s20_s13 = sadd.s32 1, %s10119_s13  }
 0x3ef   : > { %p17_p4 = scmp.ge.s32.totalorder %s20_s13, 4  }
 0x3f1   :  { %19 = sbr.rel (!%p17_p4) target bundleno = 1 (0x1), region = 110 }

</bundles_post_ra>
